<compile_context>
chip_gen: v7x
topology: tpu7x:2x2x1
jax: 0.10.0
libtpu: 0.0.40
codegen_flags: <defaults>
</compile_context>

<pallas_src>
import math

import jax
import jax.numpy as jnp
from jax.experimental import pallas as pl
from jax.experimental.pallas import tpu as pltpu

# ---- model config (small, consistent with the module's forward) -------------
INPUT_SIZE = 16
HIDDEN = 32
OUTPUT = 4
NUM_HEADS = 8
HEAD_DIM = HIDDEN // NUM_HEADS          # 4
NUM_LAYERS = 4
FFN = HIDDEN                            # dim_feedforward == hidden_size
EPS = 1e-5

BATCH = 2
SEQ = 8
BS = BATCH * SEQ                        # batch folded into rows (16)
NK = NUM_HEADS * BS                     # head-folded key/lane axis (128)

LOG2_SEQ = SEQ.bit_length() - 1
LOG2_BS = BS.bit_length() - 1
LOG2_HD = HEAD_DIM.bit_length() - 1
assert (1 << LOG2_SEQ) == SEQ and (1 << LOG2_BS) == BS and (1 << LOG2_HD) == HEAD_DIM

# w_misc leading indices: [wo_0, w1_0, w2_0, ..., wo_3, w1_3, w2_3, emb_pad, fc_pad]
EMB_IDX = 3 * NUM_LAYERS
FC_IDX = 3 * NUM_LAYERS + 1

# b_vec (f32, width HIDDEN) row layout
ROW_EMB_B = 0
ROW_FC_B = 1
ROWS_PER_LAYER = 10                     # bq, bk, bv, bo, ln1w, ln1b, b1, b2, ln2w, ln2b


def _layer_norm(h, w, b):
    mean = jnp.mean(h, axis=-1, keepdims=True)
    c = h - mean
    var = jnp.mean(c * c, axis=-1, keepdims=True)
    return c * jax.lax.rsqrt(var + EPS) * w + b


def transformer_kernel(x_ref, wqkv_ref, wmisc_ref, bvec_ref, out_ref):
    f32 = jnp.float32
    bf16 = jnp.bfloat16
    scale = 1.0 / math.sqrt(HEAD_DIM)

    def vrow(i):                                          # (1, H) f32, static row
        return bvec_ref[i:i + 1, :]

    # ---- static masks (built once, shared by all unrolled layers) -----------
    # block-diag K^T head selector, 1/sqrt(d) folded in:  (H, NK)
    hr = jax.lax.broadcasted_iota(jnp.int32, (HIDDEN, NK), 0)
    hc = jax.lax.broadcasted_iota(jnp.int32, (HIDDEN, NK), 1)
    kt_mask = jnp.where((hr >> LOG2_HD) == (hc >> LOG2_BS), scale, 0.0).astype(f32)
    # block-diag V head selector / per-head softmax-denominator map:  (NK, H)
    vr = jax.lax.broadcasted_iota(jnp.int32, (NK, HIDDEN), 0)
    vc = jax.lax.broadcasted_iota(jnp.int32, (NK, HIDDEN), 1)
    v_sel = jnp.where((vr >> LOG2_BS) == (vc >> LOG2_HD), 1.0, 0.0).astype(f32)
    v_sel_bf = v_sel.astype(bf16)
    # cross-batch additive mask on the (BS, NK) score slab
    qr = jax.lax.broadcasted_iota(jnp.int32, (BS, NK), 0)
    qc = jax.lax.broadcasted_iota(jnp.int32, (BS, NK), 1)
    neg_mask = jnp.where((qr >> LOG2_SEQ) == ((qc & (BS - 1)) >> LOG2_SEQ),
                         0.0, -1e9).astype(f32)
    # mean-over-seq pooling matrix (B, BS)
    pr = jax.lax.broadcasted_iota(jnp.int32, (BATCH, BS), 0)
    pc = jax.lax.broadcasted_iota(jnp.int32, (BATCH, BS), 1)
    pool = jnp.where(pr == (pc >> LOG2_SEQ), 1.0 / SEQ, 0.0).astype(bf16)

    # ---- embedding: (BS, H)bf16 @ (H, H)bf16 (zero-padded rows) -> f32 ------
    h = jnp.dot(x_ref[...], wmisc_ref[EMB_IDX],
                preferred_element_type=f32) + vrow(ROW_EMB_B)

    # 4 layers, statically unrolled (live vregs per layer are small after the
    # lane-packed layout; unrolling keeps full LLO scheduling visibility).
    for l in range(NUM_LAYERS):
        base = 2 + ROWS_PER_LAYER * l
        wo_l = wmisc_ref[3 * l + 0]                       # (H, H) bf16
        w1_l = wmisc_ref[3 * l + 1]
        w2_l = wmisc_ref[3 * l + 2]

        # ---- multi-head self attention (post-norm layer), heads lane-folded --
        hb = h.astype(bf16)
        qkv = jnp.dot(hb, wqkv_ref[l], preferred_element_type=f32)   # (BS, 3H)
        q = qkv[:, :HIDDEN] + vrow(base + 0)
        k = qkv[:, HIDDEN:2 * HIDDEN] + vrow(base + 1)
        v = qkv[:, 2 * HIDDEN:] + vrow(base + 2)

        # block-diag(K^T): (H, NK); block-diag(V): (NK, H)
        bd_kt = (jnp.tile(k.T, (1, NUM_HEADS)) * kt_mask).astype(bf16)
        bd_v = (jnp.tile(v, (NUM_HEADS, 1)) * v_sel).astype(bf16)

        s = jnp.dot(q.astype(bf16), bd_kt,
                    preferred_element_type=f32) + neg_mask           # (BS, NK)
        # Row-global max: same constant for every head block of a query row, so
        # the per-head softmax is mathematically exact; guards exp overflow.
        # TODO(synk): segmented per-head max if per-head score spreads ever get huge.
        s = s - jnp.max(s, axis=-1, keepdims=True)
        e = jnp.exp(s).astype(bf16)                                  # (BS, NK)

        a = jnp.dot(e, bd_v, preferred_element_type=f32)             # (BS, H), unnorm
        denom = jnp.dot(e, v_sel_bf, preferred_element_type=f32)     # per-head sums
        a = a * pl.reciprocal(denom, approx=True)                    # softmax-normalized

        attn = jnp.dot(a.astype(bf16), wo_l,
                       preferred_element_type=f32) + vrow(base + 3)  # + bo
        h = _layer_norm(h + attn, vrow(base + 4), vrow(base + 5))

        # ---- feed-forward (relu) ----
        ff = jnp.dot(h.astype(bf16), w1_l,
                     preferred_element_type=f32) + vrow(base + 6)
        ff = jnp.maximum(ff, 0.0)
        ff = jnp.dot(ff.astype(bf16), w2_l,
                     preferred_element_type=f32) + vrow(base + 7)

        h = _layer_norm(h + ff, vrow(base + 8), vrow(base + 9))

    # ---- mean over seq (pooling matmul) + final fc, lane-aligned store -------
    pooled = jnp.dot(pool, h.astype(bf16), preferred_element_type=f32)      # (B, H)
    out = jnp.dot(pooled.astype(bf16), wmisc_ref[FC_IDX],
                  preferred_element_type=f32) + vrow(ROW_FC_B)              # (B, H)
    out_ref[...] = out


# ---- host-side packing of the 20 natural params into 3 buffers ---------------
def pack_params(params):
    (emb_w, emb_b, wq, wk, wv, bq, bk, bv, wo, bo,
     ln1w, ln1b, ln2w, ln2b, w1, b1, w2, b2, fcw, fcb) = params
    L, H = NUM_LAYERS, HIDDEN

    # hidden-packed QKV slab: (L, H, 3H) bf16
    w_qkv = jnp.concatenate([wq, wk, wv], axis=-1).astype(jnp.bfloat16)

    # uniform (H, H) weight stack: wo/w1/w2 per layer + padded emb / fc
    emb_pad = jnp.zeros((H, H), jnp.float32).at[:INPUT_SIZE, :].set(emb_w)
    fc_pad = jnp.zeros((H, H), jnp.float32).at[:, :OUTPUT].set(fcw)
    mats = []
    for l in range(L):
        mats += [wo[l], w1[l], w2[l]]
    mats += [emb_pad, fc_pad]
    w_misc = jnp.stack(mats, axis=0).astype(jnp.bfloat16)        # (3L+2, H, H)

    # bias / LN rows, all width H, f32
    fc_b_pad = jnp.zeros((1, H), jnp.float32).at[:, :OUTPUT].set(fcb)
    rows = [emb_b, fc_b_pad]
    for l in range(L):
        rows += [bq[l], bk[l], bv[l], bo[l], ln1w[l], ln1b[l],
                 b1[l], b2[l], ln2w[l], ln2b[l]]
    b_vec = jnp.concatenate(rows, axis=0).astype(jnp.float32)    # (2+10L, H)

    return w_qkv, w_misc, b_vec


@jax.jit
def transformer_forward(x, w_qkv, w_misc, b_vec):
    """x: (B, 1, S, INPUT_SIZE) f32, packed params -> (B, OUTPUT) f32."""
    x2 = x.reshape(BS, INPUT_SIZE)                               # squeeze(1) + batch fold
    x_p = (jnp.zeros((BS, HIDDEN), jnp.float32)
           .at[:, :INPUT_SIZE].set(x2).astype(jnp.bfloat16))     # zero-pad lanes to H
    out = pl.pallas_call(
        transformer_kernel,
        out_shape=jax.ShapeDtypeStruct((BATCH, HIDDEN), jnp.float32),
        in_specs=[pl.BlockSpec(memory_space=pltpu.MemorySpace.VMEM)] * 4,
        out_specs=pl.BlockSpec(memory_space=pltpu.MemorySpace.VMEM),
    )(x_p, w_qkv, w_misc, b_vec)
    return out[:, :OUTPUT]


# ---- deterministic synthetic parameter init ---------------------------------
def init_params(key):
    ks = jax.random.split(key, 16)

    def w(k, shape, fan_in):
        lim = 1.0 / math.sqrt(fan_in)
        return jax.random.uniform(k, shape, jnp.float32, -lim, lim)

    emb_w = w(ks[0], (INPUT_SIZE, HIDDEN), INPUT_SIZE)
    emb_b = w(ks[1], (1, HIDDEN), INPUT_SIZE)

    wq = w(ks[2], (NUM_LAYERS, HIDDEN, HIDDEN), HIDDEN)
    wk = w(ks[3], (NUM_LAYERS, HIDDEN, HIDDEN), HIDDEN)
    wv = w(ks[4], (NUM_LAYERS, HIDDEN, HIDDEN), HIDDEN)
    bq = w(ks[5], (NUM_LAYERS, 1, HIDDEN), HIDDEN)
    bk = w(ks[6], (NUM_LAYERS, 1, HIDDEN), HIDDEN)
    bv = w(ks[7], (NUM_LAYERS, 1, HIDDEN), HIDDEN)

    wo = w(ks[8], (NUM_LAYERS, HIDDEN, HIDDEN), HIDDEN)
    bo = w(ks[9], (NUM_LAYERS, 1, HIDDEN), HIDDEN)

    ln1w = jnp.ones((NUM_LAYERS, 1, HIDDEN), jnp.float32)
    ln1b = jnp.zeros((NUM_LAYERS, 1, HIDDEN), jnp.float32)
    ln2w = jnp.ones((NUM_LAYERS, 1, HIDDEN), jnp.float32)
    ln2b = jnp.zeros((NUM_LAYERS, 1, HIDDEN), jnp.float32)

    w1 = w(ks[10], (NUM_LAYERS, HIDDEN, FFN), HIDDEN)
    b1 = w(ks[11], (NUM_LAYERS, 1, FFN), HIDDEN)
    w2 = w(ks[12], (NUM_LAYERS, FFN, HIDDEN), FFN)
    b2 = w(ks[13], (NUM_LAYERS, 1, HIDDEN), FFN)

    fcw = w(ks[14], (HIDDEN, OUTPUT), HIDDEN)
    fcb = w(ks[15], (1, OUTPUT), HIDDEN)

    return (emb_w, emb_b, wq, wk, wv, bq, bk, bv, wo, bo,
            ln1w, ln1b, ln2w, ln2b, w1, b1, w2, b2, fcw, fcb)


# ---- pure-JAX reference (same math, full f32) for a sanity check -------------
def reference_forward(x, params):
    (emb_w, emb_b, wq, wk, wv, bq, bk, bv, wo, bo,
     ln1w, ln1b, ln2w, ln2b, w1, b1, w2, b2, fcw, fcb) = params
    hp = jax.lax.Precision.HIGHEST
    h = jnp.einsum('bsi,ih->bsh', x.reshape(BATCH, SEQ, INPUT_SIZE), emb_w,
                   precision=hp) + emb_b
    for l in range(NUM_LAYERS):
        q = jnp.einsum('bsh,hk->bsk', h, wq[l], precision=hp) + bq[l]
        k = jnp.einsum('bsh,hk->bsk', h, wk[l], precision=hp) + bk[l]
        v = jnp.einsum('bsh,hk->bsk', h, wv[l], precision=hp) + bv[l]
        qh = q.reshape(BATCH, SEQ, NUM_HEADS, HEAD_DIM)
        kh = k.reshape(BATCH, SEQ, NUM_HEADS, HEAD_DIM)
        vh = v.reshape(BATCH, SEQ, NUM_HEADS, HEAD_DIM)
        s = jnp.einsum('bqnd,bknd->bnqk', qh, kh, precision=hp) / math.sqrt(HEAD_DIM)
        p = jax.nn.softmax(s, axis=-1)
        a = jnp.einsum('bnqk,bknd->bqnd', p, vh,
                       precision=hp).reshape(BATCH, SEQ, HIDDEN)
        attn = jnp.einsum('bsh,hk->bsk', a, wo[l], precision=hp) + bo[l]
        h = _layer_norm(h + attn, ln1w[l], ln1b[l])
        ff = jax.nn.relu(jnp.einsum('bsh,hk->bsk', h, w1[l], precision=hp) + b1[l])
        ff = jnp.einsum('bsh,hk->bsk', ff, w2[l], precision=hp) + b2[l]
        h = _layer_norm(h + ff, ln2w[l], ln2b[l])
    pooled = jnp.mean(h, axis=1)
    return jnp.einsum('bh,ho->bo', pooled, fcw, precision=hp) + fcb


if __name__ == "__main__":
    key = jax.random.PRNGKey(0)
    pkey, xkey = jax.random.split(key)
    params = init_params(pkey)
    x = jax.random.normal(xkey, (BATCH, 1, SEQ, INPUT_SIZE), jnp.float32)

    # Pack once (cached outside the per-forward path), then call the jitted wrapper.
    packed = pack_params(params)
    packed = jax.block_until_ready(packed)

    out = transformer_forward(x, *packed)
    out = jax.block_until_ready(out)

    ref = reference_forward(x, params)
    assert out.shape == (BATCH, OUTPUT), out.shape
    assert bool(jnp.all(jnp.isfinite(out)))
    # kernel uses bf16 MXU operands (f32 accumulation); reference is full-f32 HIGHEST
    assert bool(jnp.allclose(out, ref, rtol=2e-2, atol=2e-2)), (out, ref)
    print("KERNEL_OK")
</pallas_src>

<mosaic_0001>
module attributes {stable_mosaic.version = 11 : i64} {
  func.func @transformer_kernel(%arg0: memref<16x32xbf16, #tpu.memory_space<vmem>>, %arg1: memref<4x32x96xbf16, #tpu.memory_space<vmem>>, %arg2: memref<14x32x32xbf16, #tpu.memory_space<vmem>>, %arg3: memref<42x32xf32, #tpu.memory_space<vmem>>, %arg4: memref<2x32xf32, #tpu.memory_space<vmem>>) attributes {dimension_semantics = [], scalar_prefetch = 0 : i64, scratch_operands = 0 : i64, tpu.core_type = #tpu.core_type<tc>} {
    %0 = tpu.iota {dimensions = array<i32: 0>} : vector<32x128xi32>
    %1 = tpu.iota {dimensions = array<i32: 1>} : vector<32x128xi32>
    %c2_i32 = arith.constant 2 : i32
    %2 = vector.broadcast %c2_i32 : i32 to vector<32x128xi32>
    %3 = arith.shrsi %0, %2 : vector<32x128xi32>
    %c4_i32 = arith.constant 4 : i32
    %4 = vector.broadcast %c4_i32 : i32 to vector<32x128xi32>
    %5 = arith.shrsi %1, %4 : vector<32x128xi32>
    %6 = arith.cmpi eq, %3, %5 : vector<32x128xi32>
    %cst = arith.constant 5.000000e-01 : f32
    %cst_0 = arith.constant 0.000000e+00 : f32
    %7 = vector.broadcast %cst : f32 to vector<32x128xf32>
    %8 = vector.broadcast %cst_0 : f32 to vector<32x128xf32>
    %9 = arith.select %6, %7, %8 : vector<32x128xi1>, vector<32x128xf32>
    %10 = tpu.iota {dimensions = array<i32: 0>} : vector<128x32xi32>
    %11 = tpu.iota {dimensions = array<i32: 1>} : vector<128x32xi32>
    %c4_i32_1 = arith.constant 4 : i32
    %12 = vector.broadcast %c4_i32_1 : i32 to vector<128x32xi32>
    %13 = arith.shrsi %10, %12 : vector<128x32xi32>
    %c2_i32_2 = arith.constant 2 : i32
    %14 = vector.broadcast %c2_i32_2 : i32 to vector<128x32xi32>
    %15 = arith.shrsi %11, %14 : vector<128x32xi32>
    %16 = arith.cmpi eq, %13, %15 : vector<128x32xi32>
    %cst_3 = arith.constant 1.000000e+00 : f32
    %cst_4 = arith.constant 0.000000e+00 : f32
    %17 = vector.broadcast %cst_3 : f32 to vector<128x32xf32>
    %18 = vector.broadcast %cst_4 : f32 to vector<128x32xf32>
    %19 = arith.select %16, %17, %18 : vector<128x32xi1>, vector<128x32xf32>
    %20 = arith.truncf %19 : vector<128x32xf32> to vector<128x32xbf16>
    %21 = tpu.iota {dimensions = array<i32: 0>} : vector<16x128xi32>
    %22 = tpu.iota {dimensions = array<i32: 1>} : vector<16x128xi32>
    %c3_i32 = arith.constant 3 : i32
    %23 = vector.broadcast %c3_i32 : i32 to vector<16x128xi32>
    %24 = arith.shrsi %21, %23 : vector<16x128xi32>
    %c15_i32 = arith.constant 15 : i32
    %25 = vector.broadcast %c15_i32 : i32 to vector<16x128xi32>
    %26 = arith.andi %22, %25 : vector<16x128xi32>
    %c3_i32_5 = arith.constant 3 : i32
    %27 = vector.broadcast %c3_i32_5 : i32 to vector<16x128xi32>
    %28 = arith.shrsi %26, %27 : vector<16x128xi32>
    %29 = arith.cmpi eq, %24, %28 : vector<16x128xi32>
    %cst_6 = arith.constant 0.000000e+00 : f32
    %cst_7 = arith.constant -1.000000e+09 : f32
    %30 = vector.broadcast %cst_6 : f32 to vector<16x128xf32>
    %31 = vector.broadcast %cst_7 : f32 to vector<16x128xf32>
    %32 = arith.select %29, %30, %31 : vector<16x128xi1>, vector<16x128xf32>
    %33 = tpu.iota {dimensions = array<i32: 0>} : vector<2x16xi32>
    %34 = tpu.iota {dimensions = array<i32: 1>} : vector<2x16xi32>
    %c3_i32_8 = arith.constant 3 : i32
    %35 = vector.broadcast %c3_i32_8 : i32 to vector<2x16xi32>
    %36 = arith.shrsi %34, %35 : vector<2x16xi32>
    %37 = arith.cmpi eq, %33, %36 : vector<2x16xi32>
    %cst_9 = arith.constant 1.250000e-01 : f32
    %cst_10 = arith.constant 0.000000e+00 : f32
    %38 = vector.broadcast %cst_9 : f32 to vector<2x16xf32>
    %39 = vector.broadcast %cst_10 : f32 to vector<2x16xf32>
    %40 = arith.select %37, %38, %39 : vector<2x16xi1>, vector<2x16xf32>
    %41 = arith.truncf %40 : vector<2x16xf32> to vector<2x16xbf16>
    %c0 = arith.constant 0 : index
    %c0_11 = arith.constant 0 : index
    %42 = vector.load %arg0[%c0, %c0_11] : memref<16x32xbf16, #tpu.memory_space<vmem>>, vector<16x32xbf16>
    %c12 = arith.constant 12 : index
    %c0_12 = arith.constant 0 : index
    %c0_13 = arith.constant 0 : index
    %43 = vector.load %arg2[%c12, %c0_12, %c0_13] : memref<14x32x32xbf16, #tpu.memory_space<vmem>>, vector<1x32x32xbf16>
    %44 = vector.shape_cast %43 : vector<1x32x32xbf16> to vector<32x32xbf16>
    %cst_14 = arith.constant dense<0.000000e+00> : vector<16x32xf32>
    %45 = tpu.matmul %42, %44, %cst_14 {dimension_numbers = #tpu.dot_dimension_numbers<[1], [0], [0], [1], [0, 0, 1, 1], [], []>} : vector<16x32xbf16>, vector<32x32xbf16>, vector<16x32xf32> -> vector<16x32xf32>
    %c0_15 = arith.constant 0 : index
    %c0_16 = arith.constant 0 : index
    %46 = vector.load %arg3[%c0_15, %c0_16] : memref<42x32xf32, #tpu.memory_space<vmem>>, vector<1x32xf32>
    %47 = vector.broadcast %46 : vector<1x32xf32> to vector<16x32xf32>
    %48 = arith.addf %45, %47 : vector<16x32xf32>
    %c0_17 = arith.constant 0 : index
    %c0_18 = arith.constant 0 : index
    %c0_19 = arith.constant 0 : index
    %49 = vector.load %arg2[%c0_17, %c0_18, %c0_19] : memref<14x32x32xbf16, #tpu.memory_space<vmem>>, vector<1x32x32xbf16>
    %50 = vector.shape_cast %49 : vector<1x32x32xbf16> to vector<32x32xbf16>
    %c1 = arith.constant 1 : index
    %c0_20 = arith.constant 0 : index
    %c0_21 = arith.constant 0 : index
    %51 = vector.load %arg2[%c1, %c0_20, %c0_21] : memref<14x32x32xbf16, #tpu.memory_space<vmem>>, vector<1x32x32xbf16>
    %52 = vector.shape_cast %51 : vector<1x32x32xbf16> to vector<32x32xbf16>
    %c2 = arith.constant 2 : index
    %c0_22 = arith.constant 0 : index
    %c0_23 = arith.constant 0 : index
    %53 = vector.load %arg2[%c2, %c0_22, %c0_23] : memref<14x32x32xbf16, #tpu.memory_space<vmem>>, vector<1x32x32xbf16>
    %54 = vector.shape_cast %53 : vector<1x32x32xbf16> to vector<32x32xbf16>
    %55 = arith.truncf %48 : vector<16x32xf32> to vector<16x32xbf16>
    %c0_24 = arith.constant 0 : index
    %c0_25 = arith.constant 0 : index
    %c0_26 = arith.constant 0 : index
    %56 = vector.load %arg1[%c0_24, %c0_25, %c0_26] : memref<4x32x96xbf16, #tpu.memory_space<vmem>>, vector<1x32x96xbf16>
    %57 = vector.shape_cast %56 : vector<1x32x96xbf16> to vector<32x96xbf16>
    %cst_27 = arith.constant dense<0.000000e+00> : vector<16x96xf32>
    %58 = tpu.matmul %55, %57, %cst_27 {dimension_numbers = #tpu.dot_dimension_numbers<[1], [0], [0], [1], [0, 0, 1, 1], [], []>} : vector<16x32xbf16>, vector<32x96xbf16>, vector<16x96xf32> -> vector<16x96xf32>
    %59 = vector.extract_strided_slice %58 {offsets = [0, 0], sizes = [16, 32], strides = [1, 1]} : vector<16x96xf32> to vector<16x32xf32>
    %c2_28 = arith.constant 2 : index
    %c0_29 = arith.constant 0 : index
    %60 = vector.load %arg3[%c2_28, %c0_29] : memref<42x32xf32, #tpu.memory_space<vmem>>, vector<1x32xf32>
    %61 = vector.broadcast %60 : vector<1x32xf32> to vector<16x32xf32>
    %62 = arith.addf %59, %61 : vector<16x32xf32>
    %63 = vector.extract_strided_slice %58 {offsets = [0, 32], sizes = [16, 32], strides = [1, 1]} : vector<16x96xf32> to vector<16x32xf32>
    %c3 = arith.constant 3 : index
    %c0_30 = arith.constant 0 : index
    %64 = vector.load %arg3[%c3, %c0_30] : memref<42x32xf32, #tpu.memory_space<vmem>>, vector<1x32xf32>
    %65 = vector.broadcast %64 : vector<1x32xf32> to vector<16x32xf32>
    %66 = arith.addf %63, %65 : vector<16x32xf32>
    %67 = vector.extract_strided_slice %58 {offsets = [0, 64], sizes = [16, 32], strides = [1, 1]} : vector<16x96xf32> to vector<16x32xf32>
    %c4 = arith.constant 4 : index
    %c0_31 = arith.constant 0 : index
    %68 = vector.load %arg3[%c4, %c0_31] : memref<42x32xf32, #tpu.memory_space<vmem>>, vector<1x32xf32>
    %69 = vector.broadcast %68 : vector<1x32xf32> to vector<16x32xf32>
    %70 = arith.addf %67, %69 : vector<16x32xf32>
    %71 = tpu.transpose %66, [1, 0] : vector<16x32xf32> -> vector<32x16xf32>
    %72 = tpu.concatenate %71, %71, %71, %71, %71, %71, %71, %71 in 1 : vector<32x16xf32>, vector<32x16xf32>, vector<32x16xf32>, vector<32x16xf32>, vector<32x16xf32>, vector<32x16xf32>, vector<32x16xf32>, vector<32x16xf32> -> vector<32x128xf32>
    %73 = arith.mulf %72, %9 : vector<32x128xf32>
    %74 = arith.truncf %73 : vector<32x128xf32> to vector<32x128xbf16>
    %75 = tpu.concatenate %70, %70, %70, %70, %70, %70, %70, %70 in 0 : vector<16x32xf32>, vector<16x32xf32>, vector<16x32xf32>, vector<16x32xf32>, vector<16x32xf32>, vector<16x32xf32>, vector<16x32xf32>, vector<16x32xf32> -> vector<128x32xf32>
    %76 = arith.mulf %75, %19 : vector<128x32xf32>
    %77 = arith.truncf %76 : vector<128x32xf32> to vector<128x32xbf16>
    %78 = arith.truncf %62 : vector<16x32xf32> to vector<16x32xbf16>
    %cst_32 = arith.constant dense<0.000000e+00> : vector<16x128xf32>
    %79 = tpu.matmul %78, %74, %cst_32 {dimension_numbers = #tpu.dot_dimension_numbers<[1], [0], [0], [1], [0, 0, 1, 1], [], []>} : vector<16x32xbf16>, vector<32x128xbf16>, vector<16x128xf32> -> vector<16x128xf32>
    %80 = arith.addf %79, %32 : vector<16x128xf32>
    %cst_33 = arith.constant dense<0xFF800000> : vector<16xf32>
    %81 = vector.multi_reduction <maximumf>, %80, %cst_33 [1] : vector<16x128xf32> to vector<16xf32>
    %82 = vector.shape_cast %81 : vector<16xf32> to vector<16x1xf32>
    %83 = vector.broadcast %82 : vector<16x1xf32> to vector<16x128xf32>
    %84 = arith.subf %80, %83 : vector<16x128xf32>
    %85 = math.exp %84 : vector<16x128xf32>
    %86 = arith.truncf %85 : vector<16x128xf32> to vector<16x128xbf16>
    %cst_34 = arith.constant dense<0.000000e+00> : vector<16x32xf32>
    %87 = tpu.matmul %86, %77, %cst_34 {dimension_numbers = #tpu.dot_dimension_numbers<[1], [0], [0], [1], [0, 0, 1, 1], [], []>} : vector<16x128xbf16>, vector<128x32xbf16>, vector<16x32xf32> -> vector<16x32xf32>
    %cst_35 = arith.constant dense<0.000000e+00> : vector<16x32xf32>
    %88 = tpu.matmul %86, %20, %cst_35 {dimension_numbers = #tpu.dot_dimension_numbers<[1], [0], [0], [1], [0, 0, 1, 1], [], []>} : vector<16x128xbf16>, vector<128x32xbf16>, vector<16x32xf32> -> vector<16x32xf32>
    %89 = tpu.reciprocal %88 {approx = true} : vector<16x32xf32> -> vector<16x32xf32>
    %90 = arith.mulf %87, %89 : vector<16x32xf32>
    %91 = arith.truncf %90 : vector<16x32xf32> to vector<16x32xbf16>
    %cst_36 = arith.constant dense<0.000000e+00> : vector<16x32xf32>
    %92 = tpu.matmul %91, %50, %cst_36 {dimension_numbers = #tpu.dot_dimension_numbers<[1], [0], [0], [1], [0, 0, 1, 1], [], []>} : vector<16x32xbf16>, vector<32x32xbf16>, vector<16x32xf32> -> vector<16x32xf32>
    %c5 = arith.constant 5 : index
    %c0_37 = arith.constant 0 : index
    %93 = vector.load %arg3[%c5, %c0_37] : memref<42x32xf32, #tpu.memory_space<vmem>>, vector<1x32xf32>
    %94 = vector.broadcast %93 : vector<1x32xf32> to vector<16x32xf32>
    %95 = arith.addf %92, %94 : vector<16x32xf32>
    %96 = arith.addf %48, %95 : vector<16x32xf32>
    %c6 = arith.constant 6 : index
    %c0_38 = arith.constant 0 : index
    %97 = vector.load %arg3[%c6, %c0_38] : memref<42x32xf32, #tpu.memory_space<vmem>>, vector<1x32xf32>
    %c7 = arith.constant 7 : index
    %c0_39 = arith.constant 0 : index
    %98 = vector.load %arg3[%c7, %c0_39] : memref<42x32xf32, #tpu.memory_space<vmem>>, vector<1x32xf32>
    %cst_40 = arith.constant dense<0.000000e+00> : vector<16xf32>
    %99 = vector.multi_reduction <add>, %96, %cst_40 [1] : vector<16x32xf32> to vector<16xf32>
    %100 = vector.shape_cast %99 : vector<16xf32> to vector<16x1xf32>
    %cst_41 = arith.constant 3.200000e+01 : f32
    %101 = vector.broadcast %cst_41 : f32 to vector<16x1xf32>
    %102 = arith.divf %100, %101 : vector<16x1xf32>
    %103 = vector.broadcast %102 : vector<16x1xf32> to vector<16x32xf32>
    %104 = arith.subf %96, %103 : vector<16x32xf32>
    %105 = arith.mulf %104, %104 : vector<16x32xf32>
    %cst_42 = arith.constant dense<0.000000e+00> : vector<16xf32>
    %106 = vector.multi_reduction <add>, %105, %cst_42 [1] : vector<16x32xf32> to vector<16xf32>
    %107 = vector.shape_cast %106 : vector<16xf32> to vector<16x1xf32>
    %cst_43 = arith.constant 3.200000e+01 : f32
    %108 = vector.broadcast %cst_43 : f32 to vector<16x1xf32>
    %109 = arith.divf %107, %108 : vector<16x1xf32>
    %cst_44 = arith.constant 9.99999974E-6 : f32
    %110 = vector.broadcast %cst_44 : f32 to vector<16x1xf32>
    %111 = arith.addf %109, %110 : vector<16x1xf32>
    %112 = math.rsqrt %111 : vector<16x1xf32>
    %113 = vector.broadcast %112 : vector<16x1xf32> to vector<16x32xf32>
    %114 = arith.mulf %104, %113 : vector<16x32xf32>
    %115 = vector.broadcast %97 : vector<1x32xf32> to vector<16x32xf32>
    %116 = arith.mulf %114, %115 : vector<16x32xf32>
    %117 = vector.broadcast %98 : vector<1x32xf32> to vector<16x32xf32>
    %118 = arith.addf %116, %117 : vector<16x32xf32>
    %119 = arith.truncf %118 : vector<16x32xf32> to vector<16x32xbf16>
    %cst_45 = arith.constant dense<0.000000e+00> : vector<16x32xf32>
    %120 = tpu.matmul %119, %52, %cst_45 {dimension_numbers = #tpu.dot_dimension_numbers<[1], [0], [0], [1], [0, 0, 1, 1], [], []>} : vector<16x32xbf16>, vector<32x32xbf16>, vector<16x32xf32> -> vector<16x32xf32>
    %c8 = arith.constant 8 : index
    %c0_46 = arith.constant 0 : index
    %121 = vector.load %arg3[%c8, %c0_46] : memref<42x32xf32, #tpu.memory_space<vmem>>, vector<1x32xf32>
    %122 = vector.broadcast %121 : vector<1x32xf32> to vector<16x32xf32>
    %123 = arith.addf %120, %122 : vector<16x32xf32>
    %cst_47 = arith.constant 0.000000e+00 : f32
    %124 = vector.broadcast %cst_47 : f32 to vector<16x32xf32>
    %125 = arith.maximumf %123, %124 : vector<16x32xf32>
    %126 = arith.truncf %125 : vector<16x32xf32> to vector<16x32xbf16>
    %cst_48 = arith.constant dense<0.000000e+00> : vector<16x32xf32>
    %127 = tpu.matmul %126, %54, %cst_48 {dimension_numbers = #tpu.dot_dimension_numbers<[1], [0], [0], [1], [0, 0, 1, 1], [], []>} : vector<16x32xbf16>, vector<32x32xbf16>, vector<16x32xf32> -> vector<16x32xf32>
    %c9 = arith.constant 9 : index
    %c0_49 = arith.constant 0 : index
    %128 = vector.load %arg3[%c9, %c0_49] : memref<42x32xf32, #tpu.memory_space<vmem>>, vector<1x32xf32>
    %129 = vector.broadcast %128 : vector<1x32xf32> to vector<16x32xf32>
    %130 = arith.addf %127, %129 : vector<16x32xf32>
    %131 = arith.addf %118, %130 : vector<16x32xf32>
    %c10 = arith.constant 10 : index
    %c0_50 = arith.constant 0 : index
    %132 = vector.load %arg3[%c10, %c0_50] : memref<42x32xf32, #tpu.memory_space<vmem>>, vector<1x32xf32>
    %c11 = arith.constant 11 : index
    %c0_51 = arith.constant 0 : index
    %133 = vector.load %arg3[%c11, %c0_51] : memref<42x32xf32, #tpu.memory_space<vmem>>, vector<1x32xf32>
    %cst_52 = arith.constant dense<0.000000e+00> : vector<16xf32>
    %134 = vector.multi_reduction <add>, %131, %cst_52 [1] : vector<16x32xf32> to vector<16xf32>
    %135 = vector.shape_cast %134 : vector<16xf32> to vector<16x1xf32>
    %cst_53 = arith.constant 3.200000e+01 : f32
    %136 = vector.broadcast %cst_53 : f32 to vector<16x1xf32>
    %137 = arith.divf %135, %136 : vector<16x1xf32>
    %138 = vector.broadcast %137 : vector<16x1xf32> to vector<16x32xf32>
    %139 = arith.subf %131, %138 : vector<16x32xf32>
    %140 = arith.mulf %139, %139 : vector<16x32xf32>
    %cst_54 = arith.constant dense<0.000000e+00> : vector<16xf32>
    %141 = vector.multi_reduction <add>, %140, %cst_54 [1] : vector<16x32xf32> to vector<16xf32>
    %142 = vector.shape_cast %141 : vector<16xf32> to vector<16x1xf32>
    %cst_55 = arith.constant 3.200000e+01 : f32
    %143 = vector.broadcast %cst_55 : f32 to vector<16x1xf32>
    %144 = arith.divf %142, %143 : vector<16x1xf32>
    %cst_56 = arith.constant 9.99999974E-6 : f32
    %145 = vector.broadcast %cst_56 : f32 to vector<16x1xf32>
    %146 = arith.addf %144, %145 : vector<16x1xf32>
    %147 = math.rsqrt %146 : vector<16x1xf32>
    %148 = vector.broadcast %147 : vector<16x1xf32> to vector<16x32xf32>
    %149 = arith.mulf %139, %148 : vector<16x32xf32>
    %150 = vector.broadcast %132 : vector<1x32xf32> to vector<16x32xf32>
    %151 = arith.mulf %149, %150 : vector<16x32xf32>
    %152 = vector.broadcast %133 : vector<1x32xf32> to vector<16x32xf32>
    %153 = arith.addf %151, %152 : vector<16x32xf32>
    %c3_57 = arith.constant 3 : index
    %c0_58 = arith.constant 0 : index
    %c0_59 = arith.constant 0 : index
    %154 = vector.load %arg2[%c3_57, %c0_58, %c0_59] : memref<14x32x32xbf16, #tpu.memory_space<vmem>>, vector<1x32x32xbf16>
    %155 = vector.shape_cast %154 : vector<1x32x32xbf16> to vector<32x32xbf16>
    %c4_60 = arith.constant 4 : index
    %c0_61 = arith.constant 0 : index
    %c0_62 = arith.constant 0 : index
    %156 = vector.load %arg2[%c4_60, %c0_61, %c0_62] : memref<14x32x32xbf16, #tpu.memory_space<vmem>>, vector<1x32x32xbf16>
    %157 = vector.shape_cast %156 : vector<1x32x32xbf16> to vector<32x32xbf16>
    %c5_63 = arith.constant 5 : index
    %c0_64 = arith.constant 0 : index
    %c0_65 = arith.constant 0 : index
    %158 = vector.load %arg2[%c5_63, %c0_64, %c0_65] : memref<14x32x32xbf16, #tpu.memory_space<vmem>>, vector<1x32x32xbf16>
    %159 = vector.shape_cast %158 : vector<1x32x32xbf16> to vector<32x32xbf16>
    %160 = arith.truncf %153 : vector<16x32xf32> to vector<16x32xbf16>
    %c1_66 = arith.constant 1 : index
    %c0_67 = arith.constant 0 : index
    %c0_68 = arith.constant 0 : index
    %161 = vector.load %arg1[%c1_66, %c0_67, %c0_68] : memref<4x32x96xbf16, #tpu.memory_space<vmem>>, vector<1x32x96xbf16>
    %162 = vector.shape_cast %161 : vector<1x32x96xbf16> to vector<32x96xbf16>
    %cst_69 = arith.constant dense<0.000000e+00> : vector<16x96xf32>
    %163 = tpu.matmul %160, %162, %cst_69 {dimension_numbers = #tpu.dot_dimension_numbers<[1], [0], [0], [1], [0, 0, 1, 1], [], []>} : vector<16x32xbf16>, vector<32x96xbf16>, vector<16x96xf32> -> vector<16x96xf32>
    %164 = vector.extract_strided_slice %163 {offsets = [0, 0], sizes = [16, 32], strides = [1, 1]} : vector<16x96xf32> to vector<16x32xf32>
    %c12_70 = arith.constant 12 : index
    %c0_71 = arith.constant 0 : index
    %165 = vector.load %arg3[%c12_70, %c0_71] : memref<42x32xf32, #tpu.memory_space<vmem>>, vector<1x32xf32>
    %166 = vector.broadcast %165 : vector<1x32xf32> to vector<16x32xf32>
    %167 = arith.addf %164, %166 : vector<16x32xf32>
    %168 = vector.extract_strided_slice %163 {offsets = [0, 32], sizes = [16, 32], strides = [1, 1]} : vector<16x96xf32> to vector<16x32xf32>
    %c13 = arith.constant 13 : index
    %c0_72 = arith.constant 0 : index
    %169 = vector.load %arg3[%c13, %c0_72] : memref<42x32xf32, #tpu.memory_space<vmem>>, vector<1x32xf32>
    %170 = vector.broadcast %169 : vector<1x32xf32> to vector<16x32xf32>
    %171 = arith.addf %168, %170 : vector<16x32xf32>
    %172 = vector.extract_strided_slice %163 {offsets = [0, 64], sizes = [16, 32], strides = [1, 1]} : vector<16x96xf32> to vector<16x32xf32>
    %c14 = arith.constant 14 : index
    %c0_73 = arith.constant 0 : index
    %173 = vector.load %arg3[%c14, %c0_73] : memref<42x32xf32, #tpu.memory_space<vmem>>, vector<1x32xf32>
    %174 = vector.broadcast %173 : vector<1x32xf32> to vector<16x32xf32>
    %175 = arith.addf %172, %174 : vector<16x32xf32>
    %176 = tpu.transpose %171, [1, 0] : vector<16x32xf32> -> vector<32x16xf32>
    %177 = tpu.concatenate %176, %176, %176, %176, %176, %176, %176, %176 in 1 : vector<32x16xf32>, vector<32x16xf32>, vector<32x16xf32>, vector<32x16xf32>, vector<32x16xf32>, vector<32x16xf32>, vector<32x16xf32>, vector<32x16xf32> -> vector<32x128xf32>
    %178 = arith.mulf %177, %9 : vector<32x128xf32>
    %179 = arith.truncf %178 : vector<32x128xf32> to vector<32x128xbf16>
    %180 = tpu.concatenate %175, %175, %175, %175, %175, %175, %175, %175 in 0 : vector<16x32xf32>, vector<16x32xf32>, vector<16x32xf32>, vector<16x32xf32>, vector<16x32xf32>, vector<16x32xf32>, vector<16x32xf32>, vector<16x32xf32> -> vector<128x32xf32>
    %181 = arith.mulf %180, %19 : vector<128x32xf32>
    %182 = arith.truncf %181 : vector<128x32xf32> to vector<128x32xbf16>
    %183 = arith.truncf %167 : vector<16x32xf32> to vector<16x32xbf16>
    %cst_74 = arith.constant dense<0.000000e+00> : vector<16x128xf32>
    %184 = tpu.matmul %183, %179, %cst_74 {dimension_numbers = #tpu.dot_dimension_numbers<[1], [0], [0], [1], [0, 0, 1, 1], [], []>} : vector<16x32xbf16>, vector<32x128xbf16>, vector<16x128xf32> -> vector<16x128xf32>
    %185 = arith.addf %184, %32 : vector<16x128xf32>
    %cst_75 = arith.constant dense<0xFF800000> : vector<16xf32>
    %186 = vector.multi_reduction <maximumf>, %185, %cst_75 [1] : vector<16x128xf32> to vector<16xf32>
    %187 = vector.shape_cast %186 : vector<16xf32> to vector<16x1xf32>
    %188 = vector.broadcast %187 : vector<16x1xf32> to vector<16x128xf32>
    %189 = arith.subf %185, %188 : vector<16x128xf32>
    %190 = math.exp %189 : vector<16x128xf32>
    %191 = arith.truncf %190 : vector<16x128xf32> to vector<16x128xbf16>
    %cst_76 = arith.constant dense<0.000000e+00> : vector<16x32xf32>
    %192 = tpu.matmul %191, %182, %cst_76 {dimension_numbers = #tpu.dot_dimension_numbers<[1], [0], [0], [1], [0, 0, 1, 1], [], []>} : vector<16x128xbf16>, vector<128x32xbf16>, vector<16x32xf32> -> vector<16x32xf32>
    %cst_77 = arith.constant dense<0.000000e+00> : vector<16x32xf32>
    %193 = tpu.matmul %191, %20, %cst_77 {dimension_numbers = #tpu.dot_dimension_numbers<[1], [0], [0], [1], [0, 0, 1, 1], [], []>} : vector<16x128xbf16>, vector<128x32xbf16>, vector<16x32xf32> -> vector<16x32xf32>
    %194 = tpu.reciprocal %193 {approx = true} : vector<16x32xf32> -> vector<16x32xf32>
    %195 = arith.mulf %192, %194 : vector<16x32xf32>
    %196 = arith.truncf %195 : vector<16x32xf32> to vector<16x32xbf16>
    %cst_78 = arith.constant dense<0.000000e+00> : vector<16x32xf32>
    %197 = tpu.matmul %196, %155, %cst_78 {dimension_numbers = #tpu.dot_dimension_numbers<[1], [0], [0], [1], [0, 0, 1, 1], [], []>} : vector<16x32xbf16>, vector<32x32xbf16>, vector<16x32xf32> -> vector<16x32xf32>
    %c15 = arith.constant 15 : index
    %c0_79 = arith.constant 0 : index
    %198 = vector.load %arg3[%c15, %c0_79] : memref<42x32xf32, #tpu.memory_space<vmem>>, vector<1x32xf32>
    %199 = vector.broadcast %198 : vector<1x32xf32> to vector<16x32xf32>
    %200 = arith.addf %197, %199 : vector<16x32xf32>
    %201 = arith.addf %153, %200 : vector<16x32xf32>
    %c16 = arith.constant 16 : index
    %c0_80 = arith.constant 0 : index
    %202 = vector.load %arg3[%c16, %c0_80] : memref<42x32xf32, #tpu.memory_space<vmem>>, vector<1x32xf32>
    %c17 = arith.constant 17 : index
    %c0_81 = arith.constant 0 : index
    %203 = vector.load %arg3[%c17, %c0_81] : memref<42x32xf32, #tpu.memory_space<vmem>>, vector<1x32xf32>
    %cst_82 = arith.constant dense<0.000000e+00> : vector<16xf32>
    %204 = vector.multi_reduction <add>, %201, %cst_82 [1] : vector<16x32xf32> to vector<16xf32>
    %205 = vector.shape_cast %204 : vector<16xf32> to vector<16x1xf32>
    %cst_83 = arith.constant 3.200000e+01 : f32
    %206 = vector.broadcast %cst_83 : f32 to vector<16x1xf32>
    %207 = arith.divf %205, %206 : vector<16x1xf32>
    %208 = vector.broadcast %207 : vector<16x1xf32> to vector<16x32xf32>
    %209 = arith.subf %201, %208 : vector<16x32xf32>
    %210 = arith.mulf %209, %209 : vector<16x32xf32>
    %cst_84 = arith.constant dense<0.000000e+00> : vector<16xf32>
    %211 = vector.multi_reduction <add>, %210, %cst_84 [1] : vector<16x32xf32> to vector<16xf32>
    %212 = vector.shape_cast %211 : vector<16xf32> to vector<16x1xf32>
    %cst_85 = arith.constant 3.200000e+01 : f32
    %213 = vector.broadcast %cst_85 : f32 to vector<16x1xf32>
    %214 = arith.divf %212, %213 : vector<16x1xf32>
    %cst_86 = arith.constant 9.99999974E-6 : f32
    %215 = vector.broadcast %cst_86 : f32 to vector<16x1xf32>
    %216 = arith.addf %214, %215 : vector<16x1xf32>
    %217 = math.rsqrt %216 : vector<16x1xf32>
    %218 = vector.broadcast %217 : vector<16x1xf32> to vector<16x32xf32>
    %219 = arith.mulf %209, %218 : vector<16x32xf32>
    %220 = vector.broadcast %202 : vector<1x32xf32> to vector<16x32xf32>
    %221 = arith.mulf %219, %220 : vector<16x32xf32>
    %222 = vector.broadcast %203 : vector<1x32xf32> to vector<16x32xf32>
    %223 = arith.addf %221, %222 : vector<16x32xf32>
    %224 = arith.truncf %223 : vector<16x32xf32> to vector<16x32xbf16>
    %cst_87 = arith.constant dense<0.000000e+00> : vector<16x32xf32>
    %225 = tpu.matmul %224, %157, %cst_87 {dimension_numbers = #tpu.dot_dimension_numbers<[1], [0], [0], [1], [0, 0, 1, 1], [], []>} : vector<16x32xbf16>, vector<32x32xbf16>, vector<16x32xf32> -> vector<16x32xf32>
    %c18 = arith.constant 18 : index
    %c0_88 = arith.constant 0 : index
    %226 = vector.load %arg3[%c18, %c0_88] : memref<42x32xf32, #tpu.memory_space<vmem>>, vector<1x32xf32>
    %227 = vector.broadcast %226 : vector<1x32xf32> to vector<16x32xf32>
    %228 = arith.addf %225, %227 : vector<16x32xf32>
    %cst_89 = arith.constant 0.000000e+00 : f32
    %229 = vector.broadcast %cst_89 : f32 to vector<16x32xf32>
    %230 = arith.maximumf %228, %229 : vector<16x32xf32>
    %231 = arith.truncf %230 : vector<16x32xf32> to vector<16x32xbf16>
    %cst_90 = arith.constant dense<0.000000e+00> : vector<16x32xf32>
    %232 = tpu.matmul %231, %159, %cst_90 {dimension_numbers = #tpu.dot_dimension_numbers<[1], [0], [0], [1], [0, 0, 1, 1], [], []>} : vector<16x32xbf16>, vector<32x32xbf16>, vector<16x32xf32> -> vector<16x32xf32>
    %c19 = arith.constant 19 : index
    %c0_91 = arith.constant 0 : index
    %233 = vector.load %arg3[%c19, %c0_91] : memref<42x32xf32, #tpu.memory_space<vmem>>, vector<1x32xf32>
    %234 = vector.broadcast %233 : vector<1x32xf32> to vector<16x32xf32>
    %235 = arith.addf %232, %234 : vector<16x32xf32>
    %236 = arith.addf %223, %235 : vector<16x32xf32>
    %c20 = arith.constant 20 : index
    %c0_92 = arith.constant 0 : index
    %237 = vector.load %arg3[%c20, %c0_92] : memref<42x32xf32, #tpu.memory_space<vmem>>, vector<1x32xf32>
    %c21 = arith.constant 21 : index
    %c0_93 = arith.constant 0 : index
    %238 = vector.load %arg3[%c21, %c0_93] : memref<42x32xf32, #tpu.memory_space<vmem>>, vector<1x32xf32>
    %cst_94 = arith.constant dense<0.000000e+00> : vector<16xf32>
    %239 = vector.multi_reduction <add>, %236, %cst_94 [1] : vector<16x32xf32> to vector<16xf32>
    %240 = vector.shape_cast %239 : vector<16xf32> to vector<16x1xf32>
    %cst_95 = arith.constant 3.200000e+01 : f32
    %241 = vector.broadcast %cst_95 : f32 to vector<16x1xf32>
    %242 = arith.divf %240, %241 : vector<16x1xf32>
    %243 = vector.broadcast %242 : vector<16x1xf32> to vector<16x32xf32>
    %244 = arith.subf %236, %243 : vector<16x32xf32>
    %245 = arith.mulf %244, %244 : vector<16x32xf32>
    %cst_96 = arith.constant dense<0.000000e+00> : vector<16xf32>
    %246 = vector.multi_reduction <add>, %245, %cst_96 [1] : vector<16x32xf32> to vector<16xf32>
    %247 = vector.shape_cast %246 : vector<16xf32> to vector<16x1xf32>
    %cst_97 = arith.constant 3.200000e+01 : f32
    %248 = vector.broadcast %cst_97 : f32 to vector<16x1xf32>
    %249 = arith.divf %247, %248 : vector<16x1xf32>
    %cst_98 = arith.constant 9.99999974E-6 : f32
    %250 = vector.broadcast %cst_98 : f32 to vector<16x1xf32>
    %251 = arith.addf %249, %250 : vector<16x1xf32>
    %252 = math.rsqrt %251 : vector<16x1xf32>
    %253 = vector.broadcast %252 : vector<16x1xf32> to vector<16x32xf32>
    %254 = arith.mulf %244, %253 : vector<16x32xf32>
    %255 = vector.broadcast %237 : vector<1x32xf32> to vector<16x32xf32>
    %256 = arith.mulf %254, %255 : vector<16x32xf32>
    %257 = vector.broadcast %238 : vector<1x32xf32> to vector<16x32xf32>
    %258 = arith.addf %256, %257 : vector<16x32xf32>
    %c6_99 = arith.constant 6 : index
    %c0_100 = arith.constant 0 : index
    %c0_101 = arith.constant 0 : index
    %259 = vector.load %arg2[%c6_99, %c0_100, %c0_101] : memref<14x32x32xbf16, #tpu.memory_space<vmem>>, vector<1x32x32xbf16>
    %260 = vector.shape_cast %259 : vector<1x32x32xbf16> to vector<32x32xbf16>
    %c7_102 = arith.constant 7 : index
    %c0_103 = arith.constant 0 : index
    %c0_104 = arith.constant 0 : index
    %261 = vector.load %arg2[%c7_102, %c0_103, %c0_104] : memref<14x32x32xbf16, #tpu.memory_space<vmem>>, vector<1x32x32xbf16>
    %262 = vector.shape_cast %261 : vector<1x32x32xbf16> to vector<32x32xbf16>
    %c8_105 = arith.constant 8 : index
    %c0_106 = arith.constant 0 : index
    %c0_107 = arith.constant 0 : index
    %263 = vector.load %arg2[%c8_105, %c0_106, %c0_107] : memref<14x32x32xbf16, #tpu.memory_space<vmem>>, vector<1x32x32xbf16>
    %264 = vector.shape_cast %263 : vector<1x32x32xbf16> to vector<32x32xbf16>
    %265 = arith.truncf %258 : vector<16x32xf32> to vector<16x32xbf16>
    %c2_108 = arith.constant 2 : index
    %c0_109 = arith.constant 0 : index
    %c0_110 = arith.constant 0 : index
    %266 = vector.load %arg1[%c2_108, %c0_109, %c0_110] : memref<4x32x96xbf16, #tpu.memory_space<vmem>>, vector<1x32x96xbf16>
    %267 = vector.shape_cast %266 : vector<1x32x96xbf16> to vector<32x96xbf16>
    %cst_111 = arith.constant dense<0.000000e+00> : vector<16x96xf32>
    %268 = tpu.matmul %265, %267, %cst_111 {dimension_numbers = #tpu.dot_dimension_numbers<[1], [0], [0], [1], [0, 0, 1, 1], [], []>} : vector<16x32xbf16>, vector<32x96xbf16>, vector<16x96xf32> -> vector<16x96xf32>
    %269 = vector.extract_strided_slice %268 {offsets = [0, 0], sizes = [16, 32], strides = [1, 1]} : vector<16x96xf32> to vector<16x32xf32>
    %c22 = arith.constant 22 : index
    %c0_112 = arith.constant 0 : index
    %270 = vector.load %arg3[%c22, %c0_112] : memref<42x32xf32, #tpu.memory_space<vmem>>, vector<1x32xf32>
    %271 = vector.broadcast %270 : vector<1x32xf32> to vector<16x32xf32>
    %272 = arith.addf %269, %271 : vector<16x32xf32>
    %273 = vector.extract_strided_slice %268 {offsets = [0, 32], sizes = [16, 32], strides = [1, 1]} : vector<16x96xf32> to vector<16x32xf32>
    %c23 = arith.constant 23 : index
    %c0_113 = arith.constant 0 : index
    %274 = vector.load %arg3[%c23, %c0_113] : memref<42x32xf32, #tpu.memory_space<vmem>>, vector<1x32xf32>
    %275 = vector.broadcast %274 : vector<1x32xf32> to vector<16x32xf32>
    %276 = arith.addf %273, %275 : vector<16x32xf32>
    %277 = vector.extract_strided_slice %268 {offsets = [0, 64], sizes = [16, 32], strides = [1, 1]} : vector<16x96xf32> to vector<16x32xf32>
    %c24 = arith.constant 24 : index
    %c0_114 = arith.constant 0 : index
    %278 = vector.load %arg3[%c24, %c0_114] : memref<42x32xf32, #tpu.memory_space<vmem>>, vector<1x32xf32>
    %279 = vector.broadcast %278 : vector<1x32xf32> to vector<16x32xf32>
    %280 = arith.addf %277, %279 : vector<16x32xf32>
    %281 = tpu.transpose %276, [1, 0] : vector<16x32xf32> -> vector<32x16xf32>
    %282 = tpu.concatenate %281, %281, %281, %281, %281, %281, %281, %281 in 1 : vector<32x16xf32>, vector<32x16xf32>, vector<32x16xf32>, vector<32x16xf32>, vector<32x16xf32>, vector<32x16xf32>, vector<32x16xf32>, vector<32x16xf32> -> vector<32x128xf32>
    %283 = arith.mulf %282, %9 : vector<32x128xf32>
    %284 = arith.truncf %283 : vector<32x128xf32> to vector<32x128xbf16>
    %285 = tpu.concatenate %280, %280, %280, %280, %280, %280, %280, %280 in 0 : vector<16x32xf32>, vector<16x32xf32>, vector<16x32xf32>, vector<16x32xf32>, vector<16x32xf32>, vector<16x32xf32>, vector<16x32xf32>, vector<16x32xf32> -> vector<128x32xf32>
    %286 = arith.mulf %285, %19 : vector<128x32xf32>
    %287 = arith.truncf %286 : vector<128x32xf32> to vector<128x32xbf16>
    %288 = arith.truncf %272 : vector<16x32xf32> to vector<16x32xbf16>
    %cst_115 = arith.constant dense<0.000000e+00> : vector<16x128xf32>
    %289 = tpu.matmul %288, %284, %cst_115 {dimension_numbers = #tpu.dot_dimension_numbers<[1], [0], [0], [1], [0, 0, 1, 1], [], []>} : vector<16x32xbf16>, vector<32x128xbf16>, vector<16x128xf32> -> vector<16x128xf32>
    %290 = arith.addf %289, %32 : vector<16x128xf32>
    %cst_116 = arith.constant dense<0xFF800000> : vector<16xf32>
    %291 = vector.multi_reduction <maximumf>, %290, %cst_116 [1] : vector<16x128xf32> to vector<16xf32>
    %292 = vector.shape_cast %291 : vector<16xf32> to vector<16x1xf32>
    %293 = vector.broadcast %292 : vector<16x1xf32> to vector<16x128xf32>
    %294 = arith.subf %290, %293 : vector<16x128xf32>
    %295 = math.exp %294 : vector<16x128xf32>
    %296 = arith.truncf %295 : vector<16x128xf32> to vector<16x128xbf16>
    %cst_117 = arith.constant dense<0.000000e+00> : vector<16x32xf32>
    %297 = tpu.matmul %296, %287, %cst_117 {dimension_numbers = #tpu.dot_dimension_numbers<[1], [0], [0], [1], [0, 0, 1, 1], [], []>} : vector<16x128xbf16>, vector<128x32xbf16>, vector<16x32xf32> -> vector<16x32xf32>
    %cst_118 = arith.constant dense<0.000000e+00> : vector<16x32xf32>
    %298 = tpu.matmul %296, %20, %cst_118 {dimension_numbers = #tpu.dot_dimension_numbers<[1], [0], [0], [1], [0, 0, 1, 1], [], []>} : vector<16x128xbf16>, vector<128x32xbf16>, vector<16x32xf32> -> vector<16x32xf32>
    %299 = tpu.reciprocal %298 {approx = true} : vector<16x32xf32> -> vector<16x32xf32>
    %300 = arith.mulf %297, %299 : vector<16x32xf32>
    %301 = arith.truncf %300 : vector<16x32xf32> to vector<16x32xbf16>
    %cst_119 = arith.constant dense<0.000000e+00> : vector<16x32xf32>
    %302 = tpu.matmul %301, %260, %cst_119 {dimension_numbers = #tpu.dot_dimension_numbers<[1], [0], [0], [1], [0, 0, 1, 1], [], []>} : vector<16x32xbf16>, vector<32x32xbf16>, vector<16x32xf32> -> vector<16x32xf32>
    %c25 = arith.constant 25 : index
    %c0_120 = arith.constant 0 : index
    %303 = vector.load %arg3[%c25, %c0_120] : memref<42x32xf32, #tpu.memory_space<vmem>>, vector<1x32xf32>
    %304 = vector.broadcast %303 : vector<1x32xf32> to vector<16x32xf32>
    %305 = arith.addf %302, %304 : vector<16x32xf32>
    %306 = arith.addf %258, %305 : vector<16x32xf32>
    %c26 = arith.constant 26 : index
    %c0_121 = arith.constant 0 : index
    %307 = vector.load %arg3[%c26, %c0_121] : memref<42x32xf32, #tpu.memory_space<vmem>>, vector<1x32xf32>
    %c27 = arith.constant 27 : index
    %c0_122 = arith.constant 0 : index
    %308 = vector.load %arg3[%c27, %c0_122] : memref<42x32xf32, #tpu.memory_space<vmem>>, vector<1x32xf32>
    %cst_123 = arith.constant dense<0.000000e+00> : vector<16xf32>
    %309 = vector.multi_reduction <add>, %306, %cst_123 [1] : vector<16x32xf32> to vector<16xf32>
    %310 = vector.shape_cast %309 : vector<16xf32> to vector<16x1xf32>
    %cst_124 = arith.constant 3.200000e+01 : f32
    %311 = vector.broadcast %cst_124 : f32 to vector<16x1xf32>
    %312 = arith.divf %310, %311 : vector<16x1xf32>
    %313 = vector.broadcast %312 : vector<16x1xf32> to vector<16x32xf32>
    %314 = arith.subf %306, %313 : vector<16x32xf32>
    %315 = arith.mulf %314, %314 : vector<16x32xf32>
    %cst_125 = arith.constant dense<0.000000e+00> : vector<16xf32>
    %316 = vector.multi_reduction <add>, %315, %cst_125 [1] : vector<16x32xf32> to vector<16xf32>
    %317 = vector.shape_cast %316 : vector<16xf32> to vector<16x1xf32>
    %cst_126 = arith.constant 3.200000e+01 : f32
    %318 = vector.broadcast %cst_126 : f32 to vector<16x1xf32>
    %319 = arith.divf %317, %318 : vector<16x1xf32>
    %cst_127 = arith.constant 9.99999974E-6 : f32
    %320 = vector.broadcast %cst_127 : f32 to vector<16x1xf32>
    %321 = arith.addf %319, %320 : vector<16x1xf32>
    %322 = math.rsqrt %321 : vector<16x1xf32>
    %323 = vector.broadcast %322 : vector<16x1xf32> to vector<16x32xf32>
    %324 = arith.mulf %314, %323 : vector<16x32xf32>
    %325 = vector.broadcast %307 : vector<1x32xf32> to vector<16x32xf32>
    %326 = arith.mulf %324, %325 : vector<16x32xf32>
    %327 = vector.broadcast %308 : vector<1x32xf32> to vector<16x32xf32>
    %328 = arith.addf %326, %327 : vector<16x32xf32>
    %329 = arith.truncf %328 : vector<16x32xf32> to vector<16x32xbf16>
    %cst_128 = arith.constant dense<0.000000e+00> : vector<16x32xf32>
    %330 = tpu.matmul %329, %262, %cst_128 {dimension_numbers = #tpu.dot_dimension_numbers<[1], [0], [0], [1], [0, 0, 1, 1], [], []>} : vector<16x32xbf16>, vector<32x32xbf16>, vector<16x32xf32> -> vector<16x32xf32>
    %c28 = arith.constant 28 : index
    %c0_129 = arith.constant 0 : index
    %331 = vector.load %arg3[%c28, %c0_129] : memref<42x32xf32, #tpu.memory_space<vmem>>, vector<1x32xf32>
    %332 = vector.broadcast %331 : vector<1x32xf32> to vector<16x32xf32>
    %333 = arith.addf %330, %332 : vector<16x32xf32>
    %cst_130 = arith.constant 0.000000e+00 : f32
    %334 = vector.broadcast %cst_130 : f32 to vector<16x32xf32>
    %335 = arith.maximumf %333, %334 : vector<16x32xf32>
    %336 = arith.truncf %335 : vector<16x32xf32> to vector<16x32xbf16>
    %cst_131 = arith.constant dense<0.000000e+00> : vector<16x32xf32>
    %337 = tpu.matmul %336, %264, %cst_131 {dimension_numbers = #tpu.dot_dimension_numbers<[1], [0], [0], [1], [0, 0, 1, 1], [], []>} : vector<16x32xbf16>, vector<32x32xbf16>, vector<16x32xf32> -> vector<16x32xf32>
    %c29 = arith.constant 29 : index
    %c0_132 = arith.constant 0 : index
    %338 = vector.load %arg3[%c29, %c0_132] : memref<42x32xf32, #tpu.memory_space<vmem>>, vector<1x32xf32>
    %339 = vector.broadcast %338 : vector<1x32xf32> to vector<16x32xf32>
    %340 = arith.addf %337, %339 : vector<16x32xf32>
    %341 = arith.addf %328, %340 : vector<16x32xf32>
    %c30 = arith.constant 30 : index
    %c0_133 = arith.constant 0 : index
    %342 = vector.load %arg3[%c30, %c0_133] : memref<42x32xf32, #tpu.memory_space<vmem>>, vector<1x32xf32>
    %c31 = arith.constant 31 : index
    %c0_134 = arith.constant 0 : index
    %343 = vector.load %arg3[%c31, %c0_134] : memref<42x32xf32, #tpu.memory_space<vmem>>, vector<1x32xf32>
    %cst_135 = arith.constant dense<0.000000e+00> : vector<16xf32>
    %344 = vector.multi_reduction <add>, %341, %cst_135 [1] : vector<16x32xf32> to vector<16xf32>
    %345 = vector.shape_cast %344 : vector<16xf32> to vector<16x1xf32>
    %cst_136 = arith.constant 3.200000e+01 : f32
    %346 = vector.broadcast %cst_136 : f32 to vector<16x1xf32>
    %347 = arith.divf %345, %346 : vector<16x1xf32>
    %348 = vector.broadcast %347 : vector<16x1xf32> to vector<16x32xf32>
    %349 = arith.subf %341, %348 : vector<16x32xf32>
    %350 = arith.mulf %349, %349 : vector<16x32xf32>
    %cst_137 = arith.constant dense<0.000000e+00> : vector<16xf32>
    %351 = vector.multi_reduction <add>, %350, %cst_137 [1] : vector<16x32xf32> to vector<16xf32>
    %352 = vector.shape_cast %351 : vector<16xf32> to vector<16x1xf32>
    %cst_138 = arith.constant 3.200000e+01 : f32
    %353 = vector.broadcast %cst_138 : f32 to vector<16x1xf32>
    %354 = arith.divf %352, %353 : vector<16x1xf32>
    %cst_139 = arith.constant 9.99999974E-6 : f32
    %355 = vector.broadcast %cst_139 : f32 to vector<16x1xf32>
    %356 = arith.addf %354, %355 : vector<16x1xf32>
    %357 = math.rsqrt %356 : vector<16x1xf32>
    %358 = vector.broadcast %357 : vector<16x1xf32> to vector<16x32xf32>
    %359 = arith.mulf %349, %358 : vector<16x32xf32>
    %360 = vector.broadcast %342 : vector<1x32xf32> to vector<16x32xf32>
    %361 = arith.mulf %359, %360 : vector<16x32xf32>
    %362 = vector.broadcast %343 : vector<1x32xf32> to vector<16x32xf32>
    %363 = arith.addf %361, %362 : vector<16x32xf32>
    %c9_140 = arith.constant 9 : index
    %c0_141 = arith.constant 0 : index
    %c0_142 = arith.constant 0 : index
    %364 = vector.load %arg2[%c9_140, %c0_141, %c0_142] : memref<14x32x32xbf16, #tpu.memory_space<vmem>>, vector<1x32x32xbf16>
    %365 = vector.shape_cast %364 : vector<1x32x32xbf16> to vector<32x32xbf16>
    %c10_143 = arith.constant 10 : index
    %c0_144 = arith.constant 0 : index
    %c0_145 = arith.constant 0 : index
    %366 = vector.load %arg2[%c10_143, %c0_144, %c0_145] : memref<14x32x32xbf16, #tpu.memory_space<vmem>>, vector<1x32x32xbf16>
    %367 = vector.shape_cast %366 : vector<1x32x32xbf16> to vector<32x32xbf16>
    %c11_146 = arith.constant 11 : index
    %c0_147 = arith.constant 0 : index
    %c0_148 = arith.constant 0 : index
    %368 = vector.load %arg2[%c11_146, %c0_147, %c0_148] : memref<14x32x32xbf16, #tpu.memory_space<vmem>>, vector<1x32x32xbf16>
    %369 = vector.shape_cast %368 : vector<1x32x32xbf16> to vector<32x32xbf16>
    %370 = arith.truncf %363 : vector<16x32xf32> to vector<16x32xbf16>
    %c3_149 = arith.constant 3 : index
    %c0_150 = arith.constant 0 : index
    %c0_151 = arith.constant 0 : index
    %371 = vector.load %arg1[%c3_149, %c0_150, %c0_151] : memref<4x32x96xbf16, #tpu.memory_space<vmem>>, vector<1x32x96xbf16>
    %372 = vector.shape_cast %371 : vector<1x32x96xbf16> to vector<32x96xbf16>
    %cst_152 = arith.constant dense<0.000000e+00> : vector<16x96xf32>
    %373 = tpu.matmul %370, %372, %cst_152 {dimension_numbers = #tpu.dot_dimension_numbers<[1], [0], [0], [1], [0, 0, 1, 1], [], []>} : vector<16x32xbf16>, vector<32x96xbf16>, vector<16x96xf32> -> vector<16x96xf32>
    %374 = vector.extract_strided_slice %373 {offsets = [0, 0], sizes = [16, 32], strides = [1, 1]} : vector<16x96xf32> to vector<16x32xf32>
    %c32 = arith.constant 32 : index
    %c0_153 = arith.constant 0 : index
    %375 = vector.load %arg3[%c32, %c0_153] : memref<42x32xf32, #tpu.memory_space<vmem>>, vector<1x32xf32>
    %376 = vector.broadcast %375 : vector<1x32xf32> to vector<16x32xf32>
    %377 = arith.addf %374, %376 : vector<16x32xf32>
    %378 = vector.extract_strided_slice %373 {offsets = [0, 32], sizes = [16, 32], strides = [1, 1]} : vector<16x96xf32> to vector<16x32xf32>
    %c33 = arith.constant 33 : index
    %c0_154 = arith.constant 0 : index
    %379 = vector.load %arg3[%c33, %c0_154] : memref<42x32xf32, #tpu.memory_space<vmem>>, vector<1x32xf32>
    %380 = vector.broadcast %379 : vector<1x32xf32> to vector<16x32xf32>
    %381 = arith.addf %378, %380 : vector<16x32xf32>
    %382 = vector.extract_strided_slice %373 {offsets = [0, 64], sizes = [16, 32], strides = [1, 1]} : vector<16x96xf32> to vector<16x32xf32>
    %c34 = arith.constant 34 : index
    %c0_155 = arith.constant 0 : index
    %383 = vector.load %arg3[%c34, %c0_155] : memref<42x32xf32, #tpu.memory_space<vmem>>, vector<1x32xf32>
    %384 = vector.broadcast %383 : vector<1x32xf32> to vector<16x32xf32>
    %385 = arith.addf %382, %384 : vector<16x32xf32>
    %386 = tpu.transpose %381, [1, 0] : vector<16x32xf32> -> vector<32x16xf32>
    %387 = tpu.concatenate %386, %386, %386, %386, %386, %386, %386, %386 in 1 : vector<32x16xf32>, vector<32x16xf32>, vector<32x16xf32>, vector<32x16xf32>, vector<32x16xf32>, vector<32x16xf32>, vector<32x16xf32>, vector<32x16xf32> -> vector<32x128xf32>
    %388 = arith.mulf %387, %9 : vector<32x128xf32>
    %389 = arith.truncf %388 : vector<32x128xf32> to vector<32x128xbf16>
    %390 = tpu.concatenate %385, %385, %385, %385, %385, %385, %385, %385 in 0 : vector<16x32xf32>, vector<16x32xf32>, vector<16x32xf32>, vector<16x32xf32>, vector<16x32xf32>, vector<16x32xf32>, vector<16x32xf32>, vector<16x32xf32> -> vector<128x32xf32>
    %391 = arith.mulf %390, %19 : vector<128x32xf32>
    %392 = arith.truncf %391 : vector<128x32xf32> to vector<128x32xbf16>
    %393 = arith.truncf %377 : vector<16x32xf32> to vector<16x32xbf16>
    %cst_156 = arith.constant dense<0.000000e+00> : vector<16x128xf32>
    %394 = tpu.matmul %393, %389, %cst_156 {dimension_numbers = #tpu.dot_dimension_numbers<[1], [0], [0], [1], [0, 0, 1, 1], [], []>} : vector<16x32xbf16>, vector<32x128xbf16>, vector<16x128xf32> -> vector<16x128xf32>
    %395 = arith.addf %394, %32 : vector<16x128xf32>
    %cst_157 = arith.constant dense<0xFF800000> : vector<16xf32>
    %396 = vector.multi_reduction <maximumf>, %395, %cst_157 [1] : vector<16x128xf32> to vector<16xf32>
    %397 = vector.shape_cast %396 : vector<16xf32> to vector<16x1xf32>
    %398 = vector.broadcast %397 : vector<16x1xf32> to vector<16x128xf32>
    %399 = arith.subf %395, %398 : vector<16x128xf32>
    %400 = math.exp %399 : vector<16x128xf32>
    %401 = arith.truncf %400 : vector<16x128xf32> to vector<16x128xbf16>
    %cst_158 = arith.constant dense<0.000000e+00> : vector<16x32xf32>
    %402 = tpu.matmul %401, %392, %cst_158 {dimension_numbers = #tpu.dot_dimension_numbers<[1], [0], [0], [1], [0, 0, 1, 1], [], []>} : vector<16x128xbf16>, vector<128x32xbf16>, vector<16x32xf32> -> vector<16x32xf32>
    %cst_159 = arith.constant dense<0.000000e+00> : vector<16x32xf32>
    %403 = tpu.matmul %401, %20, %cst_159 {dimension_numbers = #tpu.dot_dimension_numbers<[1], [0], [0], [1], [0, 0, 1, 1], [], []>} : vector<16x128xbf16>, vector<128x32xbf16>, vector<16x32xf32> -> vector<16x32xf32>
    %404 = tpu.reciprocal %403 {approx = true} : vector<16x32xf32> -> vector<16x32xf32>
    %405 = arith.mulf %402, %404 : vector<16x32xf32>
    %406 = arith.truncf %405 : vector<16x32xf32> to vector<16x32xbf16>
    %cst_160 = arith.constant dense<0.000000e+00> : vector<16x32xf32>
    %407 = tpu.matmul %406, %365, %cst_160 {dimension_numbers = #tpu.dot_dimension_numbers<[1], [0], [0], [1], [0, 0, 1, 1], [], []>} : vector<16x32xbf16>, vector<32x32xbf16>, vector<16x32xf32> -> vector<16x32xf32>
    %c35 = arith.constant 35 : index
    %c0_161 = arith.constant 0 : index
    %408 = vector.load %arg3[%c35, %c0_161] : memref<42x32xf32, #tpu.memory_space<vmem>>, vector<1x32xf32>
    %409 = vector.broadcast %408 : vector<1x32xf32> to vector<16x32xf32>
    %410 = arith.addf %407, %409 : vector<16x32xf32>
    %411 = arith.addf %363, %410 : vector<16x32xf32>
    %c36 = arith.constant 36 : index
    %c0_162 = arith.constant 0 : index
    %412 = vector.load %arg3[%c36, %c0_162] : memref<42x32xf32, #tpu.memory_space<vmem>>, vector<1x32xf32>
    %c37 = arith.constant 37 : index
    %c0_163 = arith.constant 0 : index
    %413 = vector.load %arg3[%c37, %c0_163] : memref<42x32xf32, #tpu.memory_space<vmem>>, vector<1x32xf32>
    %cst_164 = arith.constant dense<0.000000e+00> : vector<16xf32>
    %414 = vector.multi_reduction <add>, %411, %cst_164 [1] : vector<16x32xf32> to vector<16xf32>
    %415 = vector.shape_cast %414 : vector<16xf32> to vector<16x1xf32>
    %cst_165 = arith.constant 3.200000e+01 : f32
    %416 = vector.broadcast %cst_165 : f32 to vector<16x1xf32>
    %417 = arith.divf %415, %416 : vector<16x1xf32>
    %418 = vector.broadcast %417 : vector<16x1xf32> to vector<16x32xf32>
    %419 = arith.subf %411, %418 : vector<16x32xf32>
    %420 = arith.mulf %419, %419 : vector<16x32xf32>
    %cst_166 = arith.constant dense<0.000000e+00> : vector<16xf32>
    %421 = vector.multi_reduction <add>, %420, %cst_166 [1] : vector<16x32xf32> to vector<16xf32>
    %422 = vector.shape_cast %421 : vector<16xf32> to vector<16x1xf32>
    %cst_167 = arith.constant 3.200000e+01 : f32
    %423 = vector.broadcast %cst_167 : f32 to vector<16x1xf32>
    %424 = arith.divf %422, %423 : vector<16x1xf32>
    %cst_168 = arith.constant 9.99999974E-6 : f32
    %425 = vector.broadcast %cst_168 : f32 to vector<16x1xf32>
    %426 = arith.addf %424, %425 : vector<16x1xf32>
    %427 = math.rsqrt %426 : vector<16x1xf32>
    %428 = vector.broadcast %427 : vector<16x1xf32> to vector<16x32xf32>
    %429 = arith.mulf %419, %428 : vector<16x32xf32>
    %430 = vector.broadcast %412 : vector<1x32xf32> to vector<16x32xf32>
    %431 = arith.mulf %429, %430 : vector<16x32xf32>
    %432 = vector.broadcast %413 : vector<1x32xf32> to vector<16x32xf32>
    %433 = arith.addf %431, %432 : vector<16x32xf32>
    %434 = arith.truncf %433 : vector<16x32xf32> to vector<16x32xbf16>
    %cst_169 = arith.constant dense<0.000000e+00> : vector<16x32xf32>
    %435 = tpu.matmul %434, %367, %cst_169 {dimension_numbers = #tpu.dot_dimension_numbers<[1], [0], [0], [1], [0, 0, 1, 1], [], []>} : vector<16x32xbf16>, vector<32x32xbf16>, vector<16x32xf32> -> vector<16x32xf32>
    %c38 = arith.constant 38 : index
    %c0_170 = arith.constant 0 : index
    %436 = vector.load %arg3[%c38, %c0_170] : memref<42x32xf32, #tpu.memory_space<vmem>>, vector<1x32xf32>
    %437 = vector.broadcast %436 : vector<1x32xf32> to vector<16x32xf32>
    %438 = arith.addf %435, %437 : vector<16x32xf32>
    %cst_171 = arith.constant 0.000000e+00 : f32
    %439 = vector.broadcast %cst_171 : f32 to vector<16x32xf32>
    %440 = arith.maximumf %438, %439 : vector<16x32xf32>
    %441 = arith.truncf %440 : vector<16x32xf32> to vector<16x32xbf16>
    %cst_172 = arith.constant dense<0.000000e+00> : vector<16x32xf32>
    %442 = tpu.matmul %441, %369, %cst_172 {dimension_numbers = #tpu.dot_dimension_numbers<[1], [0], [0], [1], [0, 0, 1, 1], [], []>} : vector<16x32xbf16>, vector<32x32xbf16>, vector<16x32xf32> -> vector<16x32xf32>
    %c39 = arith.constant 39 : index
    %c0_173 = arith.constant 0 : index
    %443 = vector.load %arg3[%c39, %c0_173] : memref<42x32xf32, #tpu.memory_space<vmem>>, vector<1x32xf32>
    %444 = vector.broadcast %443 : vector<1x32xf32> to vector<16x32xf32>
    %445 = arith.addf %442, %444 : vector<16x32xf32>
    %446 = arith.addf %433, %445 : vector<16x32xf32>
    %c40 = arith.constant 40 : index
    %c0_174 = arith.constant 0 : index
    %447 = vector.load %arg3[%c40, %c0_174] : memref<42x32xf32, #tpu.memory_space<vmem>>, vector<1x32xf32>
    %c41 = arith.constant 41 : index
    %c0_175 = arith.constant 0 : index
    %448 = vector.load %arg3[%c41, %c0_175] : memref<42x32xf32, #tpu.memory_space<vmem>>, vector<1x32xf32>
    %cst_176 = arith.constant dense<0.000000e+00> : vector<16xf32>
    %449 = vector.multi_reduction <add>, %446, %cst_176 [1] : vector<16x32xf32> to vector<16xf32>
    %450 = vector.shape_cast %449 : vector<16xf32> to vector<16x1xf32>
    %cst_177 = arith.constant 3.200000e+01 : f32
    %451 = vector.broadcast %cst_177 : f32 to vector<16x1xf32>
    %452 = arith.divf %450, %451 : vector<16x1xf32>
    %453 = vector.broadcast %452 : vector<16x1xf32> to vector<16x32xf32>
    %454 = arith.subf %446, %453 : vector<16x32xf32>
    %455 = arith.mulf %454, %454 : vector<16x32xf32>
    %cst_178 = arith.constant dense<0.000000e+00> : vector<16xf32>
    %456 = vector.multi_reduction <add>, %455, %cst_178 [1] : vector<16x32xf32> to vector<16xf32>
    %457 = vector.shape_cast %456 : vector<16xf32> to vector<16x1xf32>
    %cst_179 = arith.constant 3.200000e+01 : f32
    %458 = vector.broadcast %cst_179 : f32 to vector<16x1xf32>
    %459 = arith.divf %457, %458 : vector<16x1xf32>
    %cst_180 = arith.constant 9.99999974E-6 : f32
    %460 = vector.broadcast %cst_180 : f32 to vector<16x1xf32>
    %461 = arith.addf %459, %460 : vector<16x1xf32>
    %462 = math.rsqrt %461 : vector<16x1xf32>
    %463 = vector.broadcast %462 : vector<16x1xf32> to vector<16x32xf32>
    %464 = arith.mulf %454, %463 : vector<16x32xf32>
    %465 = vector.broadcast %447 : vector<1x32xf32> to vector<16x32xf32>
    %466 = arith.mulf %464, %465 : vector<16x32xf32>
    %467 = vector.broadcast %448 : vector<1x32xf32> to vector<16x32xf32>
    %468 = arith.addf %466, %467 : vector<16x32xf32>
    %469 = arith.truncf %468 : vector<16x32xf32> to vector<16x32xbf16>
    %cst_181 = arith.constant dense<0.000000e+00> : vector<2x32xf32>
    %470 = tpu.matmul %41, %469, %cst_181 {dimension_numbers = #tpu.dot_dimension_numbers<[1], [0], [0], [1], [0, 0, 1, 1], [], []>} : vector<2x16xbf16>, vector<16x32xbf16>, vector<2x32xf32> -> vector<2x32xf32>
    %471 = arith.truncf %470 : vector<2x32xf32> to vector<2x32xbf16>
    %c13_182 = arith.constant 13 : index
    %c0_183 = arith.constant 0 : index
    %c0_184 = arith.constant 0 : index
    %472 = vector.load %arg2[%c13_182, %c0_183, %c0_184] : memref<14x32x32xbf16, #tpu.memory_space<vmem>>, vector<1x32x32xbf16>
    %473 = vector.shape_cast %472 : vector<1x32x32xbf16> to vector<32x32xbf16>
    %cst_185 = arith.constant dense<0.000000e+00> : vector<2x32xf32>
    %474 = tpu.matmul %471, %473, %cst_185 {dimension_numbers = #tpu.dot_dimension_numbers<[1], [0], [0], [1], [0, 0, 1, 1], [], []>} : vector<2x32xbf16>, vector<32x32xbf16>, vector<2x32xf32> -> vector<2x32xf32>
    %c1_186 = arith.constant 1 : index
    %c0_187 = arith.constant 0 : index
    %475 = vector.load %arg3[%c1_186, %c0_187] : memref<42x32xf32, #tpu.memory_space<vmem>>, vector<1x32xf32>
    %476 = vector.broadcast %475 : vector<1x32xf32> to vector<2x32xf32>
    %477 = arith.addf %474, %476 : vector<2x32xf32>
    %c0_188 = arith.constant 0 : index
    %c0_189 = arith.constant 0 : index
    %478 = vector.load %arg4[%c0_188, %c0_189] : memref<2x32xf32, #tpu.memory_space<vmem>>, vector<2x32xf32>
    tpu.vector_store %arg4[%c0_188, %c0_189], %477 {strides = array<i32>} : memref<2x32xf32, #tpu.memory_space<vmem>>, vector<2x32xf32>,
    return
  }
}

</mosaic_0001>

<bundles_post_ra>
// kernel: transformer_forward.1
= control target key start
LH: loop header
LB: loop body
LE: loop exit
PB: predicated region body
PF: predicated region fallthrough
CT: control target
= control target key end

     0   :  { %9 = vsyncpa [#allocation3], 0  ;;  %s5658_s0 = inlined_call_operand.vmem [shape: bf16[16,32], index: 0, kind: input, shape index: {}]   ;;  %s5659_s1 = inlined_call_operand.vmem [shape: bf16[4,32,96], index: 1, kind: input, shape index: {}]   ;;  %s5660_s2 = inlined_call_operand.hbm [shape: bf16[14,32,32], index: 2, kind: input, shape index: {}]   ;;  %s5661_s3 = inlined_call_operand.vmem [shape: f32[42,32], index: 3, kind: input, shape index: {}]   ;;  %s5662_s4 = inlined_call_operand.hbm [shape: f32[2,32], index: 4, kind: output, shape index: {}]  }
   0x1   :  { %10 = vsyncpa [#allocation4], 0  ;;  %s4219_s15 = smov [#allocation2]   ;;  %s4171_s19 = scalar_lea.hbm %s5660_s2, 3584 }
   0x2   :  { %s20_s16 = sshll.u32 %s4219_s15, 4  ;;  %p4172_p0 = scmp.ne.s32.totalorder %s5660_s2, %s4171_s19  ;;  %s21_s16 = int_to_ptr.vmem [resolvable:$true] %s20_s16 }
   0x3   :  { %p4175_p1 = scmp.lt.u32.totalorder %s4171_s19, %s5660_s2 }
   0x5   :  { %p4177_p2 = pnand %p4175_p1, %p4172_p0 }
   0x7   :  { %4180 = shalt.err (!%p4177_p2)
}
   0x8   :  { %s4181_s24 = scalar_lea.vmem %s21_s16, 3584  ;;  %p4186_p4 = scmp.lt.s32.totalorder %s21_s16, %s21_s16 }
   0x9   :  { %p4182_p3 = scmp.ne.s32.totalorder %s21_s16, %s4181_s24  ;;  %p4187_p5 = scmp.lt.s32.totalorder %s4181_s24, %s4181_s24 }
   0xb   :  { %p4188_p6 = por %p4187_p5, %p4186_p4 }
   0xd   :  { %p4189_p7 = pnand %p4188_p6, %p4182_p3 }
   0xf   :  { %4192 = shalt.err (!%p4189_p7)
}
  0x10   :  { %s4220_s25 = smov 64   ;;  %s4221_s26 = smov 4  }
  0x11   :  { %26 = dma.hbm_to_vmem [thread:$0]  %s5660_s2, 3584, %s21_s16, [#allocation3], %s4220_s25, %s4220_s25, %s4221_s26  }
  0x12   :  { %4215 = dma.done.wait [#allocation3], 3584  }
  0x13   :  { %4216 = vsyncadd [#allocation3], 4294963712  ;;  %v5679_v0 = vmov 0.0   ;;  %vm5663_vm0 = vmmov 0   ;;  %v4070_v1 = vld [vmem:[#allocation2 + $0xc0] sm:$0xff]   ;;  %v4071_v2 = vld [vmem:[#allocation2 + $0xc8] sm:$0xff]   ;;  %v33_v28 = vlaneseq }
  0x14   :  { %3674 = vmatprep.subr.bf16.mxu0 %v5679_v0  ;;  %3678 = vmatprep.mubr.msk.bf16.mxu0 %vm5663_vm0, %v5679_v0  ;;  %v4072_v3 = vld [vmem:[%s5658_s0] sm:$0xff]   ;;  %vm5665_vm1 = vcmask 261120   ;;  %v4074_v5 = vld [vmem:[%s5659_s1 + $0x8] sm:$0xff]   ;;  %s4224_s9 = smov 32   ;;  %s4225_s14 = smov 96   ;;  %v5701_v39 = vmov 0 }
  0x15   :  { %3682 = vmatprep.subr.bf16.mxu1 %v5679_v0  ;;  %3686 = vmatprep.mubr.msk.bf16.mxu1 %vm5663_vm0, %v5679_v0  ;;  %v4073_v4 = vld [vmem:[%s5659_s1] sm:$0xff]   ;;  %v4329_v29 = vshrl.u32 %v33_v28, 7  ;;  %v4334_v31 = vand.u32 127, %v33_v28  ;;  %v5707_v46 = vmov 0  ;;  %v5713_v53 = vmov 0  ;;  %s4226_s15 = smov 16  }
  0x16   :  { %3675 = vmatpush3.bf16.msra.mxu0 %v4070_v1  ;;  %3683 = vmatpush3.bf16.msra.mxu1 %v4073_v4  ;;  %v3365_v6 = vld [vmem:[%s5661_s3 + $0x3] ss:$0 sm:$0xff]  ;;  %v3356_v7 = vld [vmem:[%s5661_s3] ss:$0 sm:$0xff]  ;;  %v3364_v17 = vld [vmem:[%s5661_s3 + $0x2] ss:$0 sm:$0xff] }
  0x17   :  { %3676 = vmatprep.subr.bf16.mxu0 %v5679_v0  ;;  %3684 = vmatprep.subr.bf16.mxu1 %v5679_v0  ;;  %5695 = vst [vmem:[#allocation8_spill] sm:$0xff] %v4329_v29  ;;  %v4332_v30 = vadd.s32 8, %v4329_v29  ;;  %5696 = vst [vmem:[#allocation9_spill] sm:$0xff] %v4334_v31  ;;  %v65_v32 = vshra.s32 %v4329_v29, 4  ;;  %v81_v34 = vshra.s32 %v4334_v31, 2  ;;  %v53_v37 = vadd.s32 32, %v4329_v29 }
  0x18   :  { %296 = vrot.lane.b32.xlu0 %v3365_v6, %s4224_s9  ;;  %v54_v38 = vadd.s32 40, %v4329_v29  ;;  %v57_v44 = vadd.s32 64, %v4329_v29  ;;  %v58_v45 = vadd.s32 72, %v4329_v29  ;;  %v61_v51 = vadd.s32 96, %v4329_v29  ;;  %s4227_s16 = smov 80   ;;  %s4228_s17 = smov 48  }
  0x19   :  { %v66_v33 = vshra.s32 %v4332_v30, 4  ;;  %vm4339_vm2 = vcmp.eq.s32.totalorder %v65_v32, %v81_v34  ;;  %v69_v40 = vshra.s32 %v53_v37, 4  ;;  %v62_v52 = vadd.s32 104, %v4329_v29  ;;  %s4229_s18 = smov 112   ;;  %v3366_v50 = vld [vmem:[%s5661_s3 + $0x4] ss:$0 sm:$0xff] }
  0x1a   :  { %3677 = vmatpush3.bf16.msra.mxu0 %v4071_v2  ;;  %3685 = vmatpush3.bf16.msra.mxu1 %v4074_v5  ;;  %v70_v41 = vshra.s32 %v54_v38, 4  ;;  %v73_v47 = vshra.s32 %v57_v44, 4  ;;  %v74_v48 = vshra.s32 %v58_v45, 4  ;;  %v77_v54 = vshra.s32 %v61_v51, 4  ;;  %s4232_s12 = smov [#allocation5]  }
  0x1b   :  { %3690 = vmatprep.subr.bf16.mxu0 %v5679_v0  ;;  %3698 = vmatprep.subr.bf16.mxu1 %v5679_v0  ;;  %vm4343_vm3 = vcmp.eq.s32.totalorder %v66_v33, %v81_v34  ;;  %vm4357_vm5 = vcmp.eq.s32.totalorder %v69_v40, %v81_v34  ;;  %v78_v55 = vshra.s32 %v62_v52, 4  ;;  %v4402_v58 = vadd.s32 16, %v4329_v29  ;;  %s3347_s13 = sshll.u32 %s4232_s12, 4  ;;  %s3348_s13 = int_to_ptr.vmem [resolvable:$true] %s3347_s13 }
  0x1c   :  { %vm4353_vm4 = vmpackc.low %vm4343_vm3, %vm4339_vm2  ;;  %vm4361_vm6 = vcmp.eq.s32.totalorder %v70_v41, %v81_v34  ;;  %vm4375_vm8 = vcmp.eq.s32.totalorder %v73_v47, %v81_v34  ;;  %vm4379_vm9 = vcmp.eq.s32.totalorder %v74_v48, %v81_v34  ;;  %vm4393_vm11 = vcmp.eq.s32.totalorder %v77_v54, %v81_v34  ;;  %s4193_s19 = scalar_lea.vmem %s3348_s13, 32  ;;  %p4198_p9 = scmp.lt.s32.totalorder %s3348_s13, %s3348_s13 }
  0x1d   :  { %3679 = vmatmul.mubr.msk.bf16.vlgmr.msra.gmra.mrb[0].mxu0 %vm5665_vm1, %v4072_v3  ;;  %v5702_v39 = vsel %vm4353_vm4, 4294967295, %v5701_v39  ;;  %vm4371_vm7 = vmpackc.low %vm4361_vm6, %vm4357_vm5  ;;  %vm4397_vm12 = vcmp.eq.s32.totalorder %v78_v55, %v81_v34  ;;  %v4405_v59 = vadd.s32 24, %v4329_v29  ;;  %v5719_v60 = vmov 0  ;;  %p4194_p8 = scmp.ne.s32.totalorder %s3348_s13, %s4193_s19  ;;  %p4199_p10 = scmp.lt.s32.totalorder %s4193_s19, %s4193_s19 }
  0x1e   :  { %3694 = vmatprep.mubr.msk.bf16.mxu0 %vm5663_vm0, %v5679_v0  ;;  %v5708_v46 = vsel %vm4371_vm7, 4294967295, %v5707_v46  ;;  %vm4389_vm10 = vmpackc.low %vm4379_vm9, %vm4375_vm8  ;;  %v67_v61 = vshra.s32 %v4402_v58, 4  ;;  %v5725_v2 = vmov 0  ;;  %v55_v3 = vadd.s32 48, %v4329_v29 }
  0x1f   :  { %v5714_v53 = vsel %vm4389_vm10, 4294967295, %v5713_v53  ;;  %vm4411_vm13 = vmpackc.low %vm4397_vm12, %vm4393_vm11  ;;  %v68_v62 = vshra.s32 %v4405_v59, 4  ;;  %v56_v4 = vadd.s32 56, %v4329_v29  ;;  %v5743_v33 = vmov 0  ;;  %p4200_p11 = por %p4199_p10, %p4198_p9 }
  0x20   :  { %v5720_v60 = vsel %vm4411_vm13, 4294967295, %v5719_v60  ;;  %vm4417_vm14 = vcmp.eq.s32.totalorder %v67_v61, %v81_v34  ;;  %v71_v5 = vshra.s32 %v55_v3, 4  ;;  %v98_v41 = vsel %vm4339_vm2, 1.0, %v5679_v0 }
  0x21   :  { %vm4421_vm15 = vcmp.eq.s32.totalorder %v68_v62, %v81_v34  ;;  %v72_v6 = vshra.s32 %v56_v4, 4  ;;  %v99_v44 = vsel %vm4343_vm3, 1.0, %v5679_v0  ;;  %v102_v47 = vsel %vm4357_vm5, 1.0, %v5679_v0  ;;  %p4201_p12 = pnand %p4200_p11, %p4194_p8 }
  0x22   :  { %v4030_v45 = vpack.i.bf16 %v99_v44, %v98_v41  ;;  %v103_v35 = vsel %vm4361_vm6, 1.0, %v5679_v0  ;;  %v106_v48 = vsel %vm4375_vm8, 1.0, %v5679_v0  ;;  %v107_v51 = vsel %vm4379_vm9, 1.0, %v5679_v0 }
  0x23   :  { %vm4441_vm13 = vcmp.eq.s32.totalorder %v72_v6, %v81_v34  ;;  %v4040_v36 = vpack.i.bf16 %v103_v35, %v102_v47  ;;  %v4050_v42 = vpack.i.bf16 %v107_v51, %v106_v48  ;;  %v110_v43 = vsel %vm4393_vm11, 1.0, %v5679_v0 }
  0x24   :  { %v111_v52 = vsel %vm4397_vm12, 1.0, %v5679_v0  ;;  %v100_v54 = vsel %vm4417_vm14, 1.0, %v5679_v0  ;;  %v101_v55 = vsel %vm4421_vm15, 1.0, %v5679_v0  ;;  %vm449_vm5 = vcmask 392192  }
  0x25   :  { %v4060_v49 = vpack.i.bf16 %v111_v52, %v110_v43  ;;  %v4035_v56 = vpack.i.bf16 %v101_v55, %v100_v54  ;;  %v41_v32 = vshra.s32 %v4332_v30, 2  ;;  %vm454_vm6 = vcmask 523264  }
  0x26   :  { %vm5676_vm8 = vcmask 654336   ;;  %vm5674_vm11 = vcmask 916480  }
  0x8a   :  { %v297_v15 = vpop.permute.xlu0 %296 }
  0xf0   :  { %v201_v8 = vpop.f32.mrb[0].mxu0 }
  0xf1   :  { %v3680_v9 = vpop.f32.mrb[1].mxu0  ;;  %v4301_v11 = vadd.f32 %v3356_v7, %v201_v8  ;;  %v60_v8 = vadd.s32 88, %v4329_v29 }
  0xf2   :  { %v204_v10 = vpop.f32.mrb[2].mxu0 }
  0xf3   :  { %v4303_v12 = vadd.f32 %v3356_v7, %v204_v10  ;;  %v3681_v13 = vpop.f32.mrb[3].mxu0  ;;  %v59_v7 = vadd.s32 80, %v4329_v29  ;;  %v5729_v10 = vmov 0 }
  0xf4   :  { %v5730_v10 = vsel %vm4441_vm13, 4294967295, %v5729_v10 }
  0xf5   :  { %v222_v14 = vpack.c.bf16 %v4303_v12, %v4301_v11  ;;  %v75_v13 = vshra.s32 %v59_v7, 4  ;;  %vm5745_vm2 = vnez %v5730_v10 }
  0xf6   :  { %v105_v61 = vsel %vm5745_vm2, 1.0, %v5679_v0 }
  0xf7   :  { %3687 = vmatmul.mubr.msk.bf16.vlgmr.msra.gmra.mrb[0].mxu1 %vm5665_vm1, %v222_v14  ;;  %vm4437_vm1 = vcmp.eq.s32.totalorder %v71_v5, %v81_v34  ;;  %v76_v14 = vshra.s32 %v60_v8, 4  ;;  %vm4453_vm7 = vcmp.eq.s32.totalorder %v75_v13, %v81_v34 }
  0xf8   :  { %3714 = vmatprep.mubr.msk.bf16.mxu1 %vm5663_vm0, %v5679_v0  ;;  %vm4429_vm0 = vmpackc.low %vm4421_vm15, %vm4417_vm14  ;;  %v104_v57 = vsel %vm4437_vm1, 1.0, %v5679_v0  ;;  %v108_v63 = vsel %vm4453_vm7, 1.0, %v5679_v0 }
  0xf9   :  { %v5726_v2 = vsel %vm4429_vm0, 4294967295, %v5725_v2  ;;  %vm4449_vm10 = vmpackc.low %vm4441_vm13, %vm4437_vm1  ;;  %vm4457_vm0 = vcmp.eq.s32.totalorder %v76_v14, %v81_v34  ;;  %v4045_v62 = vpack.i.bf16 %v105_v61, %v104_v57  ;;  %vm5683_vm1 = vcmask 130048  }
  0xfa   :  { %vm4466_vm4 = vmpackc.low %vm4457_vm0, %vm4453_vm7  ;;  %vm5747_vm7 = vcmask 261120  }
  0xfb   :  { %vm5748_vm9 = vmmov %vm5747_vm7 }
  0xfc   :  { %vm5749_vm15 = vmmov %vm5747_vm7 }
  0xfd   :  { %vm5750_vm2 = vmmov %vm5747_vm7 }
 0x1ca   :  { %v4310_v16 = vpop.f32.mrb[0].mxu1 }
 0x1cb   :  { %v299_v18 = vadd.f32 %v297_v15, %v4310_v16  ;;  %v3688_v19 = vpop.f32.mrb[1].mxu1  ;;  %v4319_v21 = vadd.f32 %v3364_v17, %v4310_v16 }
 0x1cc   :  { %v4316_v20 = vpop.f32.mrb[2].mxu1  ;;  %v63_v19 = vadd.s32 112, %v4329_v29 }
 0x1cd   :  { %v4322_v22 = vadd.f32 %v3364_v17, %v4316_v20  ;;  %314 = vrot.lane.b32.xlu0 %v299_v18, %s4225_s14  ;;  %v3689_v23 = vpop.f32.mrb[3].mxu1  ;;  %v300_v24 = vadd.f32 %v297_v15, %v4316_v20  ;;  %v5731_v15 = vmov 0  ;;  %v5735_v18 = vmov 0 }
 0x1ce   :  { %v5732_v15 = vsel %vm4449_vm10, 4294967295, %v5731_v15  ;;  %v5736_v18 = vsel %vm4457_vm0, 4294967295, %v5735_v18 }
 0x1cf   :  { %v568_v25 = vpack.c.bf16 %v4322_v22, %v4319_v21  ;;  %316 = vrot.lane.b32.xlu1 %v300_v24, %s4225_s14  ;;  %v64_v24 = vadd.s32 120, %v4329_v29  ;;  %vm5746_vm3 = vnez %v5736_v18 }
 0x1d0   :  { %v109_v1 = vsel %vm5746_vm3, 1.0, %v5679_v0 }
 0x1d1   :  { %v4055_v3 = vpack.i.bf16 %v109_v1, %v108_v63 }
 0x23f   :  { %v315_v26 = vpop.permute.xlu0 %314 }
 0x240   :  { %320 = vxpose.xlu1.b32.start [1/2] (short) (narrow) %v315_v26, 32  ;;  %v79_v26 = vshra.s32 %v63_v19, 4 }
 0x241   :  { %v317_v27 = vpop.permute.xlu1 %316 }
 0x242   :  { %vm4471_vm10 = vcmp.eq.s32.totalorder %v79_v26, %v81_v34  ;;  %v44_v26 = vshra.s32 %v4334_v31, 4 }
 0x243   :  { %v112_v4 = vsel %vm4471_vm10, 1.0, %v5679_v0 }
 0x244   :  { %321 = vxpose.xlu1.b32.end [2/2] (short) (narrow) %v317_v27, 32  ;;  %v80_v27 = vshra.s32 %v64_v24, 4 }
 0x246   :  { %vm4475_vm13 = vcmp.eq.s32.totalorder %v80_v27, %v81_v34  ;;  %v40_v27 = vshra.s32 %v4329_v29, 2 }
 0x247   :  { %vm4483_vm0 = vmpackc.low %vm4475_vm13, %vm4471_vm10  ;;  %v113_v5 = vsel %vm4475_vm13, 1.0, %v5679_v0  ;;  %vm5675_vm10 = vcmask 785408   ;;  %vm46_vm13 = vcmp.eq.s32.totalorder %v41_v32, %v44_v26 }
 0x248   :  { %v5744_v33 = vsel %vm4483_vm0, 4294967295, %v5743_v33  ;;  %v4065_v6 = vpack.i.bf16 %v113_v5, %v112_v4  ;;  %vm45_vm12 = vcmp.eq.s32.totalorder %v40_v27, %v44_v26  ;;  %v4632_v54 = vsel %vm46_vm13, 0.5, %v5679_v0 }
 0x249   :  { %v4627_v52 = vsel %vm45_vm12, 0.5, %v5679_v0  ;;  %vm5759_vm12 = vnez %v5702_v39  ;;  %vm5760_vm13 = vnez %v5726_v2 }
 0x2c0   :  { %v4487_v37 = vpop.trf.xlu1 }
 0x2c1   :  { %356 = vrot.lane.b32.xlu0 %v4487_v37, %s4226_s15 }
 0x2c4   :  { %v4491_v38 = vpop.trf.xlu1 }
 0x2c5   :  { %368 = vrot.lane.b32.xlu0 %v4487_v37, %s4224_s9  ;;  %406 = vrot.lane.b32.xlu1 %v4491_v38, %s4227_s16 }
 0x2c8   :  { %v4497_v34 = vpop.trf.xlu1 }
 0x2c9   :  { %380 = vrot.lane.b32.xlu0 %v4487_v37, %s4228_s17 }
 0x2cc   :  { %v4501_v40 = vpop.trf.xlu1 }
 0x2cd   :  { %392 = vrot.lane.b32.xlu0 %v4487_v37, %s4220_s25  ;;  %398 = vrot.lane.b32.xlu1 %v4501_v40, %s4220_s25 }
 0x2d1   :  { %404 = vrot.lane.b32.xlu0 %v4487_v37, %s4227_s16  ;;  %410 = vrot.lane.b32.xlu1 %v4501_v40, %s4227_s16 }
 0x2d5   :  { %416 = vrot.lane.b32.xlu0 %v4487_v37, %s4225_s14  ;;  %422 = vrot.lane.b32.xlu1 %v4501_v40, %s4225_s14 }
 0x2d9   :  { %428 = vrot.lane.b32.xlu0 %v4487_v37, %s4229_s18  ;;  %434 = vrot.lane.b32.xlu1 %v4501_v40, %s4229_s18 }
 0x2dd   :  { %358 = vrot.lane.b32.xlu0 %v4491_v38, %s4226_s15  ;;  %4031 = vrot.lane.b32.xlu1 %v4030_v45, %s4220_s25 }
 0x2e1   :  { %370 = vrot.lane.b32.xlu0 %v4491_v38, %s4224_s9  ;;  %4041 = vrot.lane.b32.xlu1 %v4040_v36, %s4220_s25 }
 0x2e5   :  { %382 = vrot.lane.b32.xlu0 %v4491_v38, %s4228_s17  ;;  %4051 = vrot.lane.b32.xlu1 %v4050_v42, %s4220_s25 }
 0x2e9   :  { %394 = vrot.lane.b32.xlu0 %v4491_v38, %s4220_s25  ;;  %4061 = vrot.lane.b32.xlu1 %v4060_v49, %s4220_s25 }
 0x2ed   :  { %418 = vrot.lane.b32.xlu0 %v4491_v38, %s4225_s14 }
 0x2f1   :  { %430 = vrot.lane.b32.xlu0 %v4491_v38, %s4229_s18 }
 0x2f5   :  { %360 = vrot.lane.b32.xlu0 %v4497_v34, %s4226_s15 }
 0x2f9   :  { %372 = vrot.lane.b32.xlu0 %v4497_v34, %s4224_s9 }
 0x2fd   :  { %384 = vrot.lane.b32.xlu0 %v4497_v34, %s4228_s17 }
 0x301   :  { %396 = vrot.lane.b32.xlu0 %v4497_v34, %s4220_s25 }
 0x305   :  { %408 = vrot.lane.b32.xlu0 %v4497_v34, %s4227_s16 }
 0x309   :  { %420 = vrot.lane.b32.xlu0 %v4497_v34, %s4225_s14 }
 0x30d   :  { %362 = vrot.lane.b32.xlu0 %v4501_v40, %s4226_s15 }
 0x311   :  { %374 = vrot.lane.b32.xlu0 %v4501_v40, %s4224_s9 }
 0x315   :  { %386 = vrot.lane.b32.xlu0 %v4501_v40, %s4228_s17 }
 0x319   :  { %432 = vrot.lane.b32.xlu0 %v4497_v34, %s4229_s18 }
 0x31d   :  { %307 = vrot.lane.b32.xlu0 %v3366_v50, %s4220_s25 }
 0x321   :  { %4036 = vrot.lane.b32.xlu0 %v4035_v56, %s4220_s25 }
 0x325   :  { %4046 = vrot.lane.b32.xlu0 %v4045_v62, %s4220_s25 }
 0x329   :  { %4056 = vrot.lane.b32.xlu0 %v4055_v3, %s4220_s25 }
 0x32d   :  { %4066 = vrot.lane.b32.xlu0 %v4065_v6, %s4220_s25 }
 0x333   :  { %v357_v7 = vpop.permute.xlu0 %356 }
 0x334   :  { %v441_v41 = vsel %vm5683_vm1, %v4487_v37, %v357_v7 }
 0x337   :  { %v369_v8 = vpop.permute.xlu0 %368  ;;  %v407_v36 = vpop.permute.xlu1 %406 }
 0x338   :  { %v445_v45 = vsel %vm5747_vm7, %v441_v41, %v369_v8  ;;  %vm5755_vm7 = vmmov %vm5750_vm2 }
 0x33b   :  { %v381_v9 = vpop.permute.xlu0 %380 }
 0x33c   :  { %v450_v35 = vsel %vm449_vm5, %v445_v45, %v381_v9 }
 0x33f   :  { %v393_v10 = vpop.permute.xlu0 %392  ;;  %v399_v55 = vpop.permute.xlu1 %398 }
 0x340   :  { %v455_v51 = vsel %vm454_vm6, %v450_v35, %v393_v10 }
 0x343   :  { %v405_v13 = vpop.permute.xlu0 %404  ;;  %v411_v4 = vpop.permute.xlu1 %410 }
 0x347   :  { %v417_v14 = vpop.permute.xlu0 %416  ;;  %v423_v6 = vpop.permute.xlu1 %422 }
 0x34b   :  { %v429_v17 = vpop.permute.xlu0 %428  ;;  %v435_v9 = vpop.permute.xlu1 %434 }
 0x34f   :  { %v359_v18 = vpop.permute.xlu0 %358 }
 0x350   :  { %v442_v44 = vsel %vm5683_vm1, %v4491_v38, %v359_v18  ;;  %v460_v38 = vsel %vm5676_vm8, %v455_v51, %v405_v13  ;;  %v4032_v13 = vpop.permute.xlu1 %4031 }
 0x351   :  { %v465_v43 = vsel %vm5675_vm10, %v460_v38, %v417_v14 }
 0x352   :  { %v470_v49 = vsel %vm5674_vm11, %v465_v43, %v429_v17 }
 0x353   :  { %v371_v19 = vpop.permute.xlu0 %370  ;;  %v474_v62 = vmul.f32 %v470_v49, %v4627_v52 }
 0x354   :  { %v446_v47 = vsel %vm5748_vm9, %v442_v44, %v371_v19  ;;  %v4042_v18 = vpop.permute.xlu1 %4041  ;;  %v43_v19 = vshra.s32 %v4405_v59, 2  ;;  %vm5756_vm9 = vmmov 0  }
 0x356   :  { %vm48_vm14 = vcmp.eq.s32.totalorder %v43_v19, %v44_v26 }
 0x357   :  { %v383_v24 = vpop.permute.xlu0 %382  ;;  %v4657_v51 = vsel %vm48_vm14, 0.5, %v5679_v0  ;;  %vm5761_vm14 = vnez %v5708_v46 }
 0x358   :  { %v451_v48 = vsel %vm449_vm5, %v446_v47, %v383_v24  ;;  %v42_v24 = vshra.s32 %v4402_v58, 2  ;;  %v4052_v41 = vpop.permute.xlu1 %4051 }
 0x35a   :  { %vm47_vm3 = vcmp.eq.s32.totalorder %v42_v24, %v44_v26 }
 0x35b   :  { %v395_v28 = vpop.permute.xlu0 %394 }
 0x35c   :  { %v456_v37 = vsel %vm454_vm6, %v451_v48, %v395_v28  ;;  %v4654_v48 = vsel %vm47_vm3, 0.5, %v5679_v0  ;;  %v4062_v49 = vpop.permute.xlu1 %4061  ;;  %vm5764_vm3 = vnez %v5720_v60 }
 0x35d   :  { %v461_v50 = vsel %vm5676_vm8, %v456_v37, %v407_v36 }
 0x35f   :  { %v419_v42 = vpop.permute.xlu0 %418 }
 0x360   :  { %v466_v56 = vsel %vm5675_vm10, %v461_v50, %v419_v42  ;;  %v4663_v50 = vunpack.i.h.bf16 %v4032_v13 }
 0x363   :  { %v431_v57 = vpop.permute.xlu0 %430 }
 0x364   :  { %v471_v61 = vsel %vm5674_vm11, %v466_v56, %v431_v57  ;;  %v4667_v57 = vunpack.i.l.bf16 %v4032_v13 }
 0x365   :  { %v475_v63 = vmul.f32 %v471_v61, %v4632_v54  ;;  %v4669_v61 = vunpack.i.h.bf16 %v4042_v18 }
 0x366   :  { %5751 = vst [vmem:[#allocation10_spill] sm:$0xff] %v4667_v57 }
 0x367   :  { %v478_v1 = vpack.c.bf16 %v475_v63, %v474_v62  ;;  %v361_v3 = vpop.permute.xlu0 %360  ;;  %5752 = vst [vmem:[#allocation11_spill] sm:$0xff] %v4669_v61  ;;  %v4671_v62 = vunpack.i.l.bf16 %v4042_v18  ;;  %v4673_v63 = vunpack.i.h.bf16 %v4052_v41 }
 0x368   :  { %v443_v28 = vsel %vm5683_vm1, %v4497_v34, %v361_v3  ;;  %v4675_v3 = vunpack.i.l.bf16 %v4052_v41 }
 0x369   :  { %3691 = vmatpush3.bf16.msra.mxu0 %v478_v1 }
 0x36a   :  { %3692 = vmatprep.subr.bf16.mxu0 %v5679_v0 }
 0x36b   :  { %v373_v5 = vpop.permute.xlu0 %372 }
 0x36c   :  { %v447_v44 = vsel %vm5749_vm15, %v443_v28, %v373_v5  ;;  %v4677_v5 = vunpack.i.h.bf16 %v4062_v49  ;;  %vm5762_vm15 = vnez %v5732_v15 }
 0x36f   :  { %v385_v7 = vpop.permute.xlu0 %384 }
 0x370   :  { %v452_v35 = vsel %vm449_vm5, %v447_v44, %v385_v7 }
 0x373   :  { %v397_v8 = vpop.permute.xlu0 %396 }
 0x374   :  { %v457_v58 = vsel %vm454_vm6, %v452_v35, %v397_v8 }
 0x377   :  { %v409_v10 = vpop.permute.xlu0 %408 }
 0x378   :  { %v462_v34 = vsel %vm5676_vm8, %v457_v58, %v409_v10 }
 0x37b   :  { %v421_v14 = vpop.permute.xlu0 %420 }
 0x37c   :  { %v467_v26 = vsel %vm5675_vm10, %v462_v34, %v421_v14 }
 0x37f   :  { %v363_v17 = vpop.permute.xlu0 %362 }
 0x380   :  { %v444_v32 = vsel %vm5683_vm1, %v4501_v40, %v363_v17 }
 0x383   :  { %v375_v27 = vpop.permute.xlu0 %374 }
 0x384   :  { %v448_v45 = vsel %vm5750_vm2, %v444_v32, %v375_v27  ;;  %vm5763_vm2 = vnez %v5714_v53 }
 0x387   :  { %v387_v47 = vpop.permute.xlu0 %386 }
 0x388   :  { %v453_v59 = vsel %vm449_vm5, %v448_v45, %v387_v47 }
 0x389   :  { %v458_v36 = vsel %vm454_vm6, %v453_v59, %v399_v55 }
 0x38a   :  { %v463_v40 = vsel %vm5676_vm8, %v458_v36, %v411_v4 }
 0x38b   :  { %v468_v37 = vsel %vm5675_vm10, %v463_v40, %v423_v6  ;;  %v433_v42 = vpop.permute.xlu0 %432  ;;  %v4679_v6 = vunpack.i.l.bf16 %v4062_v49 }
 0x38c   :  { %v472_v38 = vsel %vm5674_vm11, %v467_v26, %v433_v42  ;;  %v473_v43 = vsel %vm5674_vm11, %v468_v37, %v435_v9 }
 0x38d   :  { %v476_v55 = vmul.f32 %v472_v38, %v4654_v48  ;;  %v477_v56 = vmul.f32 %v473_v43, %v4657_v51 }
 0x38f   :  { %v479_v1 = vpack.c.bf16 %v477_v56, %v476_v55  ;;  %v308_v4 = vpop.permute.xlu0 %307 }
 0x390   :  { %v310_v7 = vadd.f32 %v308_v4, %v4310_v16  ;;  %v311_v8 = vadd.f32 %v308_v4, %v4316_v20 }
 0x391   :  { %3693 = vmatpush3.bf16.msra.mxu0 %v479_v1 }
 0x392   :  { %v544_v9 = vmul.f32 %v4667_v57, %v310_v7  ;;  %v545_v10 = vmul.f32 %v4663_v50, %v311_v8  ;;  %v548_v13 = vmul.f32 %v4671_v62, %v310_v7  ;;  %v549_v14 = vmul.f32 %v4669_v61, %v311_v8  ;;  %3718 = vmatprep.subr.bf16.mxu0 %v5679_v0 }
 0x393   :  { %v4037_v17 = vpop.permute.xlu0 %4036  ;;  %v552_v18 = vmul.f32 %v4675_v3, %v310_v7  ;;  %v553_v19 = vmul.f32 %v4673_v63, %v311_v8  ;;  %v4691_v16 = vmul.f32 %v4679_v6, %v310_v7  ;;  %v4694_v20 = vmul.f32 %v4677_v5, %v311_v8 }
 0x394   :  { %v4696_v24 = vunpack.i.h.bf16 %v4037_v17  ;;  %v4698_v27 = vunpack.i.l.bf16 %v4037_v17  ;;  %3695 = vmatmul.mubr.msk.bf16.vlgmr.msra.gmra.mrb[4].mxu0 %vm5755_vm7, %v568_v25  ;;  %v560_v28 = vpack.c.bf16 %v545_v10, %v544_v9  ;;  %v562_v32 = vpack.c.bf16 %v549_v14, %v548_v13 }
 0x395   :  { %v564_v41 = vpack.c.bf16 %v553_v19, %v552_v18  ;;  %v566_v44 = vpack.c.bf16 %v4694_v20, %v4691_v16  ;;  %3734 = vmatprep.mubr.msk.bf16.mxu0 %vm5756_vm9, %v5679_v0  ;;  %v5677_v9 = vmov 1.0|1.0   ;;  %v124_v17 = vand.u32 15, %v4334_v31 }
 0x396   :  { %5753 = vst [vmem:[#allocation12_spill] sm:$0xff] %v4696_v24  ;;  %5754 = vst [vmem:[#allocation13_spill] sm:$0xff] %v4698_v27  ;;  %632 = vrot.lane.b32.xlu0 %v560_v28, %s4220_s25  ;;  %v546_v45 = vmul.f32 %v4698_v27, %v310_v7  ;;  %v547_v47 = vmul.f32 %v4696_v24, %v311_v8  ;;  %3719 = vmatpush3.bf16.msk.msra.mxu0 %vm5759_vm12, %v5677_v9  ;;  %v122_v18 = vshra.s32 %v4329_v29, 3 }
 0x397   :  { %v4047_v35 = vpop.permute.xlu0 %4046  ;;  %3720 = vmatprep.subr.bf16.mxu0 %v5679_v0  ;;  %v125_v19 = vshra.s32 %v124_v17, 3  ;;  %v123_v28 = vshra.s32 %v4332_v30, 3 }
 0x398   :  { %v4711_v59 = vunpack.i.h.bf16 %v4047_v35  ;;  %v4713_v21 = vunpack.i.l.bf16 %v4047_v35  ;;  %v561_v22 = vpack.c.bf16 %v547_v47, %v546_v45 }
 0x399   :  { %vm126_vm7 = vcmp.eq.s32.totalorder %v122_v18, %v125_v19  ;;  %vm127_vm11 = vcmp.eq.s32.totalorder %v123_v28, %v125_v19 }
 0x39a   :  { %5757 = vst [vmem:[#allocation14_spill] sm:$0xff] %v4711_v59  ;;  %634 = vrot.lane.b32.xlu1 %v561_v22, %s4220_s25  ;;  %v550_v25 = vmul.f32 %v4713_v21, %v310_v7  ;;  %v551_v58 = vmul.f32 %v4711_v59, %v311_v8  ;;  %3721 = vmatpush3.bf16.msk.msra.mxu0 %vm5760_vm13, %v5677_v9 }
 0x39b   :  { %v4057_v36 = vpop.permute.xlu0 %4056  ;;  %3722 = vmatprep.subr.bf16.mxu0 %v5679_v0 }
 0x39c   :  { %v4718_v34 = vunpack.i.h.bf16 %v4057_v36  ;;  %v4720_v40 = vunpack.i.l.bf16 %v4057_v36  ;;  %v563_v26 = vpack.c.bf16 %v551_v58, %v550_v25 }
 0x39e   :  { %636 = vrot.lane.b32.xlu1 %v562_v32, %s4220_s25  ;;  %638 = vrot.lane.b32.xlu0 %v563_v26, %s4220_s25  ;;  %v554_v37 = vmul.f32 %v4720_v40, %v310_v7  ;;  %v555_v42 = vmul.f32 %v4718_v34, %v311_v8  ;;  %v4231_v32 = vmov -1e+09  }
 0x39f   :  { %v4067_v38 = vpop.permute.xlu0 %4066  ;;  %3723 = vmatpush3.bf16.msk.msra.mxu0 %vm5761_vm14, %v5677_v9  ;;  %v4775_v47 = vsel %vm127_vm11, 0.0, %v4231_v32  ;;  %vm5765_vm11 = vcmask 261120  }
 0x3a0   :  { %v4726_v43 = vunpack.i.h.bf16 %v4067_v38  ;;  %v4728_v49 = vunpack.i.l.bf16 %v4067_v38  ;;  %v565_v55 = vpack.c.bf16 %v555_v42, %v554_v37  ;;  %3724 = vmatprep.subr.bf16.mxu0 %v5679_v0 }
 0x3a2   :  { %5758 = vst [vmem:[#allocation15_spill] sm:$0xff] %v4726_v43  ;;  %640 = vrot.lane.b32.xlu1 %v564_v41, %s4220_s25  ;;  %v558_v56 = vmul.f32 %v4728_v49, %v310_v7  ;;  %v559_v1 = vmul.f32 %v4726_v43, %v311_v8  ;;  %v4773_v41 = vsel %vm126_vm7, 0.0, %v4231_v32  ;;  %vm5766_vm7 = vmmov %vm5765_vm11 }
 0x3a3   :  { %3725 = vmatpush3.bf16.msk.msra.mxu0 %vm5762_vm15, %v5677_v9  ;;  %vm5768_vm10 = vmmov %vm5766_vm7 }
 0x3a4   :  { %v567_v4 = vpack.c.bf16 %v559_v1, %v558_v56  ;;  %3726 = vmatprep.subr.bf16.mxu0 %v5679_v0  ;;  %vm5769_vm8 = vmmov %vm5766_vm7 }
 0x3a7   :  { %3727 = vmatpush3.bf16.msk.msra.mxu0 %vm5763_vm2, %v5677_v9 }
 0x3a8   :  { %3728 = vmatprep.subr.bf16.mxu0 %v5679_v0 }
 0x3ab   :  { %3729 = vmatpush3.bf16.msk.msra.mxu0 %vm4466_vm4, %v5677_v9 }
 0x3ac   :  { %3730 = vmatprep.subr.bf16.mxu0 %v5679_v0 }
 0x3af   :  { %3731 = vmatpush3.bf16.msk.msra.mxu0 %vm5764_vm3, %v5677_v9 }
 0x3b0   :  { %3732 = vmatprep.subr.bf16.mxu0 %v5679_v0 }
 0x3b3   :  { %3733 = vmatpush3.bf16.msk.msra.mxu0 %vm4483_vm0, %v5677_v9  ;;  %vm5779_vm0 = vcmask 916480  }
 0x3b4   :  { %3746 = vmatprep.subr.bf16.mxu0 %v5679_v0 }
 0x408   :  { %v633_v10 = vpop.permute.xlu0 %632 }
 0x409   :  { %3699 = vmatpush3.bf16.msra.mxu1 %v633_v10 }
 0x40a   :  { %3700 = vmatprep.subr.bf16.mxu1 %v5679_v0 }
 0x40c   :  { %v635_v13 = vpop.permute.xlu1 %634 }
 0x40d   :  { %3701 = vmatpush3.bf16.msra.mxu1 %v635_v13  ;;  %v4076_v13 = vld [vmem:[#allocation2 + $0x8] sm:$0xff]  }
 0x40e   :  { %3702 = vmatprep.subr.bf16.mxu1 %v5679_v0 }
 0x410   :  { %v637_v7 = vpop.permute.xlu1 %636  ;;  %v639_v8 = vpop.permute.xlu0 %638 }
 0x411   :  { %3703 = vmatpush3.bf16.msra.mxu1 %v637_v7 }
 0x412   :  { %3704 = vmatprep.subr.bf16.mxu1 %v5679_v0 }
 0x414   :  { %v641_v14 = vpop.permute.xlu1 %640 }
 0x415   :  { %3705 = vmatpush3.bf16.msra.mxu1 %v639_v8 }
 0x416   :  { %3706 = vmatprep.subr.bf16.mxu1 %v5679_v0 }
 0x419   :  { %3707 = vmatpush3.bf16.msra.mxu1 %v641_v14 }
 0x41a   :  { %3708 = vmatprep.subr.bf16.mxu1 %v5679_v0 }
 0x467   :  { %v606_v45 = vpop.f32.mrb[4].mxu0 }
 0x468   :  { %v607_v35 = vadd.f32 %v606_v45, %v4773_v41  ;;  %v3696_v22 = vpop.f32.mrb[5].mxu0 }
 0x469   :  { %v609_v25 = vpop.f32.mrb[6].mxu0 }
 0x46a   :  { %v610_v58 = vadd.f32 %v609_v25, %v4775_v47  ;;  %613 = vmax.xlane.f32.xlu1 %v607_v35  ;;  %v3697_v36 = vpop.f32.mrb[7].mxu0 }
 0x46b   :  { %v3384_v36 = vld [vmem:[%s5661_s3 + $0x5] ss:$0 sm:$0xff] }
 0x46c   :  { %615 = vmax.xlane.f32.xlu0 %v610_v58 }
 0x47b   :  { %644 = vrot.lane.b32.xlu1 %v566_v44, %s4220_s25 }
 0x482   :  { %642 = vrot.lane.b32.xlu0 %v565_v55, %s4220_s25 }
 0x486   :  { %646 = vrot.lane.b32.xlu0 %v567_v4, %s4220_s25  ;;  %v4075_v4 = vld [vmem:[#allocation2] sm:$0xff]  }
 0x4f7   :  { %v614_v30 = vpop.xlane.xlu1 %613 }
 0x4f8   :  { %v617_v26 = vsub.f32 %v607_v35, %v614_v30 }
 0x4f9   :  { %v616_v37 = vpop.xlane.xlu0 %615 }
 0x4fa   :  { %v619_v42 = vmul.f32 1.442695, %v617_v26  ;;  %v618_v38 = vsub.f32 %v610_v58, %v616_v37 }
 0x4fb   :  { %v645_v10 = vpop.permute.xlu1 %644 }
 0x4fc   :  { %v621_v56 = vmul.f32 1.442695, %v618_v38  ;;  %4107 = vpow2.f32 %v619_v42 }
 0x4fd   :  { %v643_v1 = vpop.permute.xlu0 %642 }
 0x4fe   :  { %4109 = vpow2.f32 %v621_v56  ;;  %3709 = vmatpush3.bf16.msra.mxu1 %v643_v1 }
 0x4ff   :  { %3710 = vmatprep.subr.bf16.mxu1 %v5679_v0 }
 0x501   :  { %v647_v16 = vpop.permute.xlu0 %646 }
 0x502   :  { %3711 = vmatpush3.bf16.msra.mxu1 %v645_v10 }
 0x503   :  { %3712 = vmatprep.subr.bf16.mxu1 %v5679_v0 }
 0x506   :  { %3713 = vmatpush3.bf16.msra.mxu1 %v647_v16  ;;  %v4108_v20 = vpop.eup %4107 }
 0x507   :  { %3738 = vmatprep.subr.bf16.mxu1 %v5679_v0 }
 0x508   :  { %v4110_v44 = vpop.eup %4109 }
 0x509   :  { %v623_v55 = vpack.c.bf16 %v4110_v44, %v4108_v20 }
 0x50b   :  { %3715 = vmatmul.mubr.bf16.vlgmr.msra.gmra.mrb[4].mxu1 %v623_v55  ;;  %3735 = vmatmul.mubr.bf16.vlgmr.msra.gmra.mrb[8].mxu0 %v623_v55 }
 0x50c   :  { %3742 = vmatprep.mubr.msk.bf16.mxu1 %vm5756_vm9, %v5679_v0  ;;  %3750 = vmatprep.mubr.msk.bf16.mxu0 %vm5756_vm9, %v5679_v0 }
 0x50d   :  { %3739 = vmatpush3.bf16.msra.mxu1 %v4075_v4 }
 0x50e   :  { %3740 = vmatprep.subr.bf16.mxu1 %v5679_v0 }
 0x511   :  { %3741 = vmatpush3.bf16.msra.mxu1 %v4076_v13 }
 0x512   :  { %3754 = vmatprep.subr.bf16.mxu1 %v5679_v0 }
 0x5de   :  { %v690_v7 = vpop.f32.mrb[4].mxu1  ;;  %v731_v8 = vpop.f32.mrb[8].mxu0 }
 0x5df   :  { %4111 = vrcp.f32 %v731_v8  ;;  %v3716_v14 = vpop.f32.mrb[5].mxu1  ;;  %v3736_v17 = vpop.f32.mrb[9].mxu0 }
 0x5e0   :  { %v693_v18 = vpop.f32.mrb[6].mxu1  ;;  %v734_v19 = vpop.f32.mrb[10].mxu0 }
 0x5e1   :  { %4113 = vrcp.f32 %v734_v19  ;;  %v3717_v28 = vpop.f32.mrb[7].mxu1  ;;  %v3737_v32 = vpop.f32.mrb[11].mxu0  ;;  %v4077_v19 = vld [vmem:[#allocation2 + $0x10] sm:$0xff]  }
 0x5e2   :  { %3747 = vmatpush3.bf16.msra.mxu0 %v4077_v19 }
 0x5e3   :  { %3748 = vmatprep.subr.bf16.mxu0 %v5679_v0 }
 0x5e9   :  { %v4112_v45 = vpop.eup %4111 }
 0x5ea   :  { %v740_v35 = vmul.f32 %v4112_v45, %v690_v7 }
 0x5eb   :  { %v4114_v22 = vpop.eup %4113 }
 0x5ec   :  { %v741_v25 = vmul.f32 %v4114_v22, %v693_v18 }
 0x5ee   :  { %v742_v58 = vpack.c.bf16 %v741_v25, %v740_v35 }
 0x5f0   :  { %3743 = vmatmul.mubr.msk.bf16.vlgmr.msra.gmra.mrb[8].mxu1 %vm5765_vm11, %v742_v58  ;;  %vm5767_vm11 = vmmov %vm5766_vm7 }
 0x5f1   :  { %3758 = vmatprep.mubr.msk.bf16.mxu1 %vm5756_vm9, %v5679_v0 }
 0x6c3   :  { %v797_v30 = vpop.f32.mrb[8].mxu1 }
 0x6c4   :  { %v798_v26 = vadd.f32 %v3384_v36, %v797_v30  ;;  %v3744_v37 = vpop.f32.mrb[9].mxu1  ;;  %v3388_v30 = vld [vmem:[%s5661_s3 + $0x6] ss:$0 sm:$0xff] }
 0x6c5   :  { %v800_v42 = vpop.f32.mrb[10].mxu1 }
 0x6c6   :  { %v801_v38 = vadd.f32 %v3384_v36, %v800_v42  ;;  %v3745_v56 = vpop.f32.mrb[11].mxu1  ;;  %v804_v1 = vadd.f32 %v798_v26, %v4301_v11 }
 0x6c8   :  { %v808_v10 = vsel %vm5766_vm7, %v804_v1, 0.0  ;;  %v805_v16 = vadd.f32 %v801_v38, %v4303_v12  ;;  %v4078_v12 = vld [vmem:[#allocation2 + $0x18] sm:$0xff]   ;;  %v3389_v38 = vld [vmem:[%s5661_s3 + $0x7] ss:$0 sm:$0xff] }
 0x6c9   :  { %809 = vadd.xlane.f32.xlu1 %v808_v10  ;;  %3749 = vmatpush3.bf16.msra.mxu0 %v4078_v12  ;;  %v3394_v12 = vld [vmem:[%s5661_s3 + $0x9] ss:$0 sm:$0xff] }
 0x6ca   :  { %v811_v20 = vsel %vm5767_vm11, %v805_v16, 0.0  ;;  %3762 = vmatprep.subr.bf16.mxu0 %v5679_v0  ;;  %vm5772_vm11 = vmmov %vm5766_vm7 }
 0x6cb   :  { %812 = vadd.xlane.f32.xlu0 %v811_v20  ;;  %v4079_v20 = vld [vmem:[#allocation2 + $0x20] sm:$0xff]  }
 0x6cc   :  { %3755 = vmatpush3.bf16.msra.mxu1 %v4079_v20 }
 0x6cd   :  { %3756 = vmatprep.subr.bf16.mxu1 %v5679_v0 }
 0x756   :  { %v810_v44 = vpop.xlane.xlu1 %809 }
 0x757   :  { %v815_v55 = vmul.f32 0.03125, %v810_v44  ;;  %v4080_v44 = vld [vmem:[#allocation2 + $0x28] sm:$0xff]  }
 0x758   :  { %v813_v4 = vpop.xlane.xlu0 %812  ;;  %3757 = vmatpush3.bf16.msra.mxu1 %v4080_v44 }
 0x759   :  { %v817_v13 = vsub.f32 %v804_v1, %v815_v55  ;;  %v816_v7 = vmul.f32 0.03125, %v813_v4  ;;  %3770 = vmatprep.subr.bf16.mxu1 %v5679_v0  ;;  %v3390_v55 = vld [vmem:[%s5661_s3 + $0x8] ss:$0 sm:$0xff] }
 0x75b   :  { %v818_v8 = vsub.f32 %v805_v16, %v816_v7  ;;  %v819_v14 = vmul.f32 %v817_v13, %v817_v13 }
 0x75d   :  { %v821_v17 = vsel %vm5768_vm10, %v819_v14, 0.0  ;;  %v820_v18 = vmul.f32 %v818_v8, %v818_v8  ;;  %vm5771_vm10 = vmmov %vm5766_vm7 }
 0x75e   :  { %822 = vadd.xlane.f32.xlu0 %v821_v17 }
 0x75f   :  { %v824_v11 = vsel %vm5769_vm8, %v820_v18, 0.0  ;;  %vm5770_vm8 = vmmov %vm5766_vm7 }
 0x762   :  { %825 = vadd.xlane.f32.xlu0 %v824_v11 }
 0x7eb   :  { %v823_v28 = vpop.xlane.xlu0 %822 }
 0x7ec   :  { %v827_v32 = vmul.f32 0.03125, %v823_v28 }
 0x7ee   :  { %v829_v45 = vadd.f32 1e-05, %v827_v32 }
 0x7ef   :  { %v826_v35 = vpop.xlane.xlu0 %825 }
 0x7f0   :  { %4115 = vrsqrt.f32 %v829_v45  ;;  %v828_v22 = vmul.f32 0.03125, %v826_v35 }
 0x7f2   :  { %v830_v25 = vadd.f32 1e-05, %v828_v22 }
 0x7f4   :  { %4117 = vrsqrt.f32 %v830_v25 }
 0x7fa   :  { %v4116_v58 = vpop.eup %4115 }
 0x7fb   :  { %v833_v36 = vmul.f32 %v4116_v58, %v817_v13 }
 0x7fd   :  { %v839_v37 = vmul.f32 %v3388_v30, %v833_v36 }
 0x7fe   :  { %v4118_v26 = vpop.eup %4117 }
 0x7ff   :  { %v834_v42 = vmul.f32 %v4118_v26, %v818_v8  ;;  %v845_v1 = vadd.f32 %v3389_v38, %v839_v37 }
 0x801   :  { %v840_v56 = vmul.f32 %v3388_v30, %v834_v42 }
 0x803   :  { %v846_v10 = vadd.f32 %v3389_v38, %v840_v56 }
 0x805   :  { %v847_v16 = vpack.c.bf16 %v846_v10, %v845_v1 }
 0x807   :  { %3751 = vmatmul.mubr.msk.bf16.vlgmr.msra.gmra.mrb[12].mxu0 %vm5770_vm8, %v847_v16  ;;  %vm5773_vm8 = vmmov %vm5766_vm7 }
 0x808   :  { %3766 = vmatprep.mubr.msk.bf16.mxu0 %vm5756_vm9, %v5679_v0 }
 0x8da   :  { %v902_v4 = vpop.f32.mrb[12].mxu0 }
 0x8db   :  { %v903_v13 = vadd.f32 %v3390_v55, %v902_v4  ;;  %v3752_v7 = vpop.f32.mrb[13].mxu0 }
 0x8dc   :  { %v905_v8 = vpop.f32.mrb[14].mxu0  ;;  %v3408_v7 = vld [vmem:[%s5661_s3 + $0xd] ss:$0 sm:$0xff] }
 0x8dd   :  { %v906_v14 = vadd.f32 %v3390_v55, %v905_v8  ;;  %v3753_v17 = vpop.f32.mrb[15].mxu0  ;;  %v909_v18 = vmax.f32 %v903_v13, 0.0  ;;  %v4082_v13 = vld [vmem:[%s5659_s1 + $0x18] sm:$0xff]  }
 0x8df   :  { %v910_v11 = vmax.f32 %v906_v14, 0.0 }
 0x8e1   :  { %v911_v19 = vpack.c.bf16 %v910_v11, %v909_v18 }
 0x8e3   :  { %3759 = vmatmul.mubr.msk.bf16.vlgmr.msra.gmra.mrb[12].mxu1 %vm5771_vm10, %v911_v19  ;;  %vm5774_vm10 = vmmov %vm5766_vm7 }
 0x8e4   :  { %3774 = vmatprep.mubr.msk.bf16.mxu1 %vm5756_vm9, %v5679_v0 }
 0x9b6   :  { %v966_v28 = vpop.f32.mrb[12].mxu1 }
 0x9b7   :  { %v967_v32 = vadd.f32 %v3394_v12, %v966_v28  ;;  %v3760_v45 = vpop.f32.mrb[13].mxu1  ;;  %v3398_v28 = vld [vmem:[%s5661_s3 + $0xa] ss:$0 sm:$0xff] }
 0x9b8   :  { %v969_v35 = vpop.f32.mrb[14].mxu1 }
 0x9b9   :  { %v970_v22 = vadd.f32 %v3394_v12, %v969_v35  ;;  %v3761_v25 = vpop.f32.mrb[15].mxu1  ;;  %v973_v58 = vadd.f32 %v967_v32, %v845_v1 }
 0x9ba   :  { %v3399_v25 = vld [vmem:[%s5661_s3 + $0xb] ss:$0 sm:$0xff] }
 0x9bb   :  { %v977_v36 = vsel %vm5766_vm7, %v973_v58, 0.0  ;;  %v974_v30 = vadd.f32 %v970_v22, %v846_v10  ;;  %v4081_v10 = vld [vmem:[%s5659_s1 + $0x10] sm:$0xff]  }
 0x9bc   :  { %978 = vadd.xlane.f32.xlu1 %v977_v36  ;;  %3763 = vmatpush3.bf16.msra.mxu0 %v4081_v10 }
 0x9bd   :  { %v980_v26 = vsel %vm5772_vm11, %v974_v30, 0.0  ;;  %3764 = vmatprep.subr.bf16.mxu0 %v5679_v0  ;;  %vm5775_vm11 = vmmov %vm5766_vm7 }
 0x9be   :  { %981 = vadd.xlane.f32.xlu0 %v980_v26 }
 0x9c0   :  { %3765 = vmatpush3.bf16.msra.mxu0 %v4082_v13 }
 0x9c1   :  { %3778 = vmatprep.subr.bf16.mxu0 %v5679_v0 }
 0xa49   :  { %v979_v37 = vpop.xlane.xlu1 %978 }
 0xa4a   :  { %v983_v42 = vmul.f32 0.03125, %v979_v37 }
 0xa4b   :  { %v982_v38 = vpop.xlane.xlu0 %981 }
 0xa4c   :  { %v985_v56 = vsub.f32 %v973_v58, %v983_v42  ;;  %v984_v16 = vmul.f32 0.03125, %v982_v38  ;;  %v3407_v38 = vld [vmem:[%s5661_s3 + $0xc] ss:$0 sm:$0xff] }
 0xa4e   :  { %v986_v20 = vsub.f32 %v974_v30, %v984_v16  ;;  %v987_v44 = vmul.f32 %v985_v56, %v985_v56 }
 0xa50   :  { %v989_v55 = vsel %vm5773_vm8, %v987_v44, 0.0  ;;  %v988_v4 = vmul.f32 %v986_v20, %v986_v20  ;;  %vm5776_vm8 = vmmov %vm5766_vm7 }
 0xa51   :  { %990 = vadd.xlane.f32.xlu1 %v989_v55 }
 0xa52   :  { %v992_v1 = vsel %vm5774_vm10, %v988_v4, 0.0  ;;  %vm5777_vm10 = vcmask 654336  }
 0xa53   :  { %993 = vadd.xlane.f32.xlu0 %v992_v1 }
 0xa62   :  { %1105 = vrot.lane.b32.xlu1 %v3408_v7, %s4224_s9 }
 0xade   :  { %v991_v8 = vpop.xlane.xlu1 %990 }
 0xadf   :  { %v995_v14 = vmul.f32 0.03125, %v991_v8 }
 0xae0   :  { %v994_v17 = vpop.xlane.xlu0 %993 }
 0xae1   :  { %v997_v18 = vadd.f32 1e-05, %v995_v14  ;;  %v996_v11 = vmul.f32 0.03125, %v994_v17 }
 0xae2   :  { %v1106_v37 = vpop.permute.xlu1 %1105 }
 0xae3   :  { %4119 = vrsqrt.f32 %v997_v18  ;;  %v998_v19 = vadd.f32 1e-05, %v996_v11  ;;  %v3409_v11 = vld [vmem:[%s5661_s3 + $0xe] ss:$0 sm:$0xff] }
 0xae5   :  { %4121 = vrsqrt.f32 %v998_v19 }
 0xaed   :  { %v4120_v12 = vpop.eup %4119 }
 0xaee   :  { %v1001_v32 = vmul.f32 %v4120_v12, %v985_v56 }
 0xaef   :  { %v4122_v45 = vpop.eup %4121 }
 0xaf0   :  { %v1007_v35 = vmul.f32 %v3398_v28, %v1001_v32  ;;  %v1002_v22 = vmul.f32 %v4122_v45, %v986_v20 }
 0xaf2   :  { %v1008_v58 = vmul.f32 %v3398_v28, %v1002_v22  ;;  %v4850_v36 = vadd.f32 %v3399_v25, %v1007_v35 }
 0xaf4   :  { %v4852_v30 = vadd.f32 %v3399_v25, %v1008_v58 }
 0xaf6   :  { %v1030_v26 = vpack.c.bf16 %v4852_v30, %v4850_v36 }
 0xaf8   :  { %3767 = vmatmul.mubr.msk.bf16.vlgmr.msra.gmra.mrb[16].mxu0 %vm5766_vm7, %v1030_v26  ;;  %vm5778_vm7 = vcmask 785408  }
 0xaf9   :  { %3794 = vmatprep.mubr.msk.bf16.mxu0 %vm5756_vm9, %v5679_v0 }
 0xbcb   :  { %v4859_v42 = vpop.f32.mrb[16].mxu0 }
 0xbcc   :  { %v1108_v56 = vadd.f32 %v1106_v37, %v4859_v42  ;;  %v3768_v16 = vpop.f32.mrb[17].mxu0  ;;  %v4868_v44 = vadd.f32 %v3407_v38, %v4859_v42 }
 0xbcd   :  { %v4865_v20 = vpop.f32.mrb[18].mxu0 }
 0xbce   :  { %v4871_v55 = vadd.f32 %v3407_v38, %v4865_v20  ;;  %v1109_v4 = vadd.f32 %v1106_v37, %v4865_v20  ;;  %1123 = vrot.lane.b32.xlu0 %v1108_v56, %s4225_s14  ;;  %v3769_v1 = vpop.f32.mrb[19].mxu0 }
 0xbd0   :  { %1125 = vrot.lane.b32.xlu1 %v1109_v4, %s4225_s14 }
 0xc40   :  { %v1124_v13 = vpop.permute.xlu0 %1123 }
 0xc41   :  { %1129 = vxpose.xlu1.b32.start [1/2] (short) (narrow) %v1124_v13, 32 }
 0xc42   :  { %v1126_v7 = vpop.permute.xlu1 %1125 }
 0xc45   :  { %1130 = vxpose.xlu1.b32.end [2/2] (short) (narrow) %v1126_v7, 32 }
 0xcc1   :  { %v1145_v8 = vpop.trf.xlu1 }
 0xcc2   :  { %1165 = vrot.lane.b32.xlu0 %v1145_v8, %s4226_s15 }
 0xcc5   :  { %v1146_v14 = vpop.trf.xlu1 }
 0xcc6   :  { %1177 = vrot.lane.b32.xlu0 %v1145_v8, %s4224_s9  ;;  %1215 = vrot.lane.b32.xlu1 %v1146_v14, %s4227_s16 }
 0xcc9   :  { %v4881_v17 = vpop.trf.xlu1 }
 0xcca   :  { %1189 = vrot.lane.b32.xlu0 %v1145_v8, %s4228_s17 }
 0xccd   :  { %v4884_v18 = vpop.trf.xlu1 }
 0xcce   :  { %1201 = vrot.lane.b32.xlu0 %v1145_v8, %s4220_s25  ;;  %1207 = vrot.lane.b32.xlu1 %v4884_v18, %s4220_s25 }
 0xcd2   :  { %1213 = vrot.lane.b32.xlu0 %v1145_v8, %s4227_s16  ;;  %1219 = vrot.lane.b32.xlu1 %v4884_v18, %s4227_s16 }
 0xcd6   :  { %1225 = vrot.lane.b32.xlu0 %v1145_v8, %s4225_s14  ;;  %1231 = vrot.lane.b32.xlu1 %v4884_v18, %s4225_s14 }
 0xcda   :  { %1237 = vrot.lane.b32.xlu0 %v1145_v8, %s4229_s18  ;;  %1243 = vrot.lane.b32.xlu1 %v4884_v18, %s4229_s18 }
 0xcde   :  { %1167 = vrot.lane.b32.xlu0 %v1146_v14, %s4226_s15 }
 0xce2   :  { %1179 = vrot.lane.b32.xlu0 %v1146_v14, %s4224_s9 }
 0xce6   :  { %1191 = vrot.lane.b32.xlu0 %v1146_v14, %s4228_s17 }
 0xcea   :  { %1203 = vrot.lane.b32.xlu0 %v1146_v14, %s4220_s25 }
 0xcee   :  { %1227 = vrot.lane.b32.xlu0 %v1146_v14, %s4225_s14 }
 0xcf2   :  { %1239 = vrot.lane.b32.xlu0 %v1146_v14, %s4229_s18 }
 0xcf6   :  { %1169 = vrot.lane.b32.xlu0 %v4881_v17, %s4226_s15 }
 0xcfa   :  { %1181 = vrot.lane.b32.xlu0 %v4881_v17, %s4224_s9 }
 0xcfe   :  { %1193 = vrot.lane.b32.xlu0 %v4881_v17, %s4228_s17 }
 0xd02   :  { %1205 = vrot.lane.b32.xlu0 %v4881_v17, %s4220_s25 }
 0xd06   :  { %1217 = vrot.lane.b32.xlu0 %v4881_v17, %s4227_s16 }
 0xd0a   :  { %1229 = vrot.lane.b32.xlu0 %v4881_v17, %s4225_s14 }
 0xd0e   :  { %1171 = vrot.lane.b32.xlu0 %v4884_v18, %s4226_s15 }
 0xd12   :  { %1183 = vrot.lane.b32.xlu0 %v4884_v18, %s4224_s9 }
 0xd16   :  { %1195 = vrot.lane.b32.xlu0 %v4884_v18, %s4228_s17 }
 0xd1a   :  { %1241 = vrot.lane.b32.xlu0 %v4881_v17, %s4229_s18 }
 0xd1e   :  { %1116 = vrot.lane.b32.xlu0 %v3409_v11, %s4220_s25 }
 0xd34   :  { %v1166_v19 = vpop.permute.xlu0 %1165 }
 0xd35   :  { %v1249_v38 = vsel %vm5683_vm1, %v1145_v8, %v1166_v19 }
 0xd38   :  { %v1178_v12 = vpop.permute.xlu0 %1177  ;;  %v1216_v8 = vpop.permute.xlu1 %1215 }
 0xd39   :  { %v1253_v16 = vsel %vm5775_vm11, %v1249_v38, %v1178_v12  ;;  %vm5781_vm11 = vmmov %vm5778_vm7 }
 0xd3c   :  { %v1190_v28 = vpop.permute.xlu0 %1189 }
 0xd3d   :  { %v1257_v1 = vsel %vm449_vm5, %v1253_v16, %v1190_v28 }
 0xd40   :  { %v1202_v32 = vpop.permute.xlu0 %1201 }
 0xd41   :  { %v1261_v7 = vsel %vm454_vm6, %v1257_v1, %v1202_v32 }
 0xd44   :  { %v1214_v45 = vpop.permute.xlu0 %1213 }
 0xd45   :  { %v1265_v10 = vsel %vm5777_vm10, %v1261_v7, %v1214_v45  ;;  %v5783_v45 = vmov 0.0  }
 0xd48   :  { %v1226_v35 = vpop.permute.xlu0 %1225 }
 0xd49   :  { %v1269_v0 = vsel %vm5778_vm7, %v1265_v10, %v1226_v35 }
 0xd4c   :  { %v1238_v22 = vpop.permute.xlu0 %1237 }
 0xd50   :  { %v1168_v25 = vpop.permute.xlu0 %1167 }
 0xd51   :  { %v1250_v56 = vsel %vm5683_vm1, %v1146_v14, %v1168_v25  ;;  %v1273_v14 = vsel %vm5779_vm0, %v1269_v0, %v1238_v22  ;;  %vm5780_vm1 = vmmov %vm5777_vm10  ;;  %v1208_v22 = vpop.permute.xlu1 %1207  ;;  %vm5786_vm10 = vcmask 261120  }
 0xd52   :  { %vm5787_vm7 = vmmov %vm5786_vm10 }
 0xd54   :  { %v1180_v58 = vpop.permute.xlu0 %1179 }
 0xd55   :  { %v1254_v4 = vsel %vm5776_vm8, %v1250_v56, %v1180_v58  ;;  %vm5782_vm8 = vmmov %vm5779_vm0  ;;  %v1277_v58 = vmul.f32 %v1273_v14, %v4627_v52  ;;  %v1220_v16 = vpop.permute.xlu1 %1219  ;;  %vm5784_vm0 = vcmask 130048  }
 0xd58   :  { %v1192_v26 = vpop.permute.xlu0 %1191 }
 0xd59   :  { %v1258_v13 = vsel %vm449_vm5, %v1254_v4, %v1192_v26  ;;  %v1232_v1 = vpop.permute.xlu1 %1231 }
 0xd5c   :  { %v1204_v37 = vpop.permute.xlu0 %1203 }
 0xd5d   :  { %v1262_v11 = vsel %vm454_vm6, %v1258_v13, %v1204_v37 }
 0xd5e   :  { %v1266_v19 = vsel %vm5780_vm1, %v1262_v11, %v1216_v8  ;;  %vm5785_vm1 = vmmov %vm5784_vm0 }
 0xd60   :  { %v1228_v9 = vpop.permute.xlu0 %1227 }
 0xd61   :  { %v1270_v12 = vsel %vm5781_vm11, %v1266_v19, %v1228_v9  ;;  %vm5788_vm11 = vcmask 654336  }
 0xd64   :  { %v1240_v25 = vpop.permute.xlu0 %1239 }
 0xd65   :  { %v1274_v28 = vsel %vm5782_vm8, %v1270_v12, %v1240_v25  ;;  %vm5789_vm8 = vmmov %vm5788_vm11 }
 0xd66   :  { %v1278_v32 = vmul.f32 %v1274_v28, %v4632_v54 }
 0xd68   :  { %v1281_v26 = vpack.c.bf16 %v1278_v32, %v1277_v58  ;;  %v1170_v37 = vpop.permute.xlu0 %1169 }
 0xd69   :  { %v1251_v13 = vsel %vm5784_vm0, %v4881_v17, %v1170_v37  ;;  %vm5790_vm0 = vcmask 785408  }
 0xd6a   :  { %3771 = vmatpush3.bf16.msra.mxu1 %v1281_v26 }
 0xd6b   :  { %3772 = vmatprep.subr.bf16.mxu1 %v5783_v45 }
 0xd6c   :  { %v1182_v10 = vpop.permute.xlu0 %1181 }
 0xd6d   :  { %v1255_v11 = vsel %vm5786_vm10, %v1251_v13, %v1182_v10  ;;  %vm5792_vm10 = vcmask 916480  }
 0xd70   :  { %v1194_v35 = vpop.permute.xlu0 %1193 }
 0xd71   :  { %v1259_v19 = vsel %vm449_vm5, %v1255_v11, %v1194_v35 }
 0xd74   :  { %v1206_v38 = vpop.permute.xlu0 %1205 }
 0xd75   :  { %v1263_v25 = vsel %vm454_vm6, %v1259_v19, %v1206_v38 }
 0xd78   :  { %v1218_v0 = vpop.permute.xlu0 %1217 }
 0xd79   :  { %v1267_v58 = vsel %vm5788_vm11, %v1263_v25, %v1218_v0  ;;  %vm5795_vm11 = vcmask 261120  }
 0xd7c   :  { %v1230_v56 = vpop.permute.xlu0 %1229 }
 0xd7d   :  { %v1271_v32 = vsel %vm5790_vm0, %v1267_v58, %v1230_v56 }
 0xd80   :  { %v1172_v9 = vpop.permute.xlu0 %1171 }
 0xd81   :  { %v1252_v7 = vsel %vm5785_vm1, %v4884_v18, %v1172_v9  ;;  %v1244_v18 = vpop.permute.xlu1 %1243  ;;  %vm5791_vm1 = vmmov %vm5790_vm0 }
 0xd82   :  { %vm5798_vm0 = vmmov %vm5795_vm11 }
 0xd84   :  { %v1184_v4 = vpop.permute.xlu0 %1183 }
 0xd85   :  { %v1256_v8 = vsel %vm5787_vm7, %v1252_v7, %v1184_v4  ;;  %vm5793_vm7 = vmmov %vm5792_vm10 }
 0xd88   :  { %v1196_v14 = vpop.permute.xlu0 %1195 }
 0xd89   :  { %v1260_v12 = vsel %vm449_vm5, %v1256_v8, %v1196_v14 }
 0xd8a   :  { %v1264_v28 = vsel %vm454_vm6, %v1260_v12, %v1208_v22 }
 0xd8b   :  { %v1268_v17 = vsel %vm5789_vm8, %v1264_v28, %v1220_v16  ;;  %vm5797_vm8 = vnez %v5744_v33 }
 0xd8c   :  { %v1272_v26 = vsel %vm5791_vm1, %v1268_v17, %v1232_v1  ;;  %v1242_v37 = vpop.permute.xlu0 %1241  ;;  %vm5799_vm1 = vmmov %vm5798_vm0 }
 0xd8d   :  { %v1275_v10 = vsel %vm5792_vm10, %v1271_v32, %v1242_v37  ;;  %v1276_v35 = vsel %vm5793_vm7, %v1272_v26, %v1244_v18  ;;  %v5796_v26 = vmov 1.0|1.0   ;;  %vm5800_vm10 = vmmov %vm5798_vm0 }
 0xd8e   :  { %v1279_v9 = vmul.f32 %v1275_v10, %v4654_v48  ;;  %v1280_v38 = vmul.f32 %v1276_v35, %v4657_v51  ;;  %vm5801_vm7 = vmmov %vm5798_vm0 }
 0xd90   :  { %v1282_v4 = vpack.c.bf16 %v1280_v38, %v1279_v9  ;;  %v1117_v22 = vpop.permute.xlu0 %1116 }
 0xd91   :  { %v1119_v0 = vadd.f32 %v1117_v22, %v4859_v42  ;;  %v1120_v16 = vadd.f32 %v1117_v22, %v4865_v20  ;;  %v5794_v20 = vpack.c.bf16 %v4871_v55, %v4868_v44 }
 0xd92   :  { %3773 = vmatpush3.bf16.msra.mxu1 %v1282_v4 }
 0xd93   :  { %v1285_v56 = vmul.f32 %v4698_v27, %v1119_v0  ;;  %v1286_v1 = vmul.f32 %v4696_v24, %v1120_v16  ;;  %v1283_v13 = vmul.f32 %v4667_v57, %v1119_v0  ;;  %v1284_v7 = vmul.f32 %v4663_v50, %v1120_v16  ;;  %3798 = vmatprep.subr.bf16.mxu1 %v5783_v45 }
 0xd94   :  { %v1287_v11 = vmul.f32 %v4671_v62, %v1119_v0  ;;  %v1288_v8 = vmul.f32 %v4669_v61, %v1120_v16  ;;  %v1289_v14 = vmul.f32 %v4713_v21, %v1119_v0  ;;  %v1290_v42 = vmul.f32 %v4711_v59, %v1120_v16 }
 0xd95   :  { %3775 = vmatmul.mubr.msk.bf16.vlgmr.msra.gmra.mrb[16].mxu1 %vm5795_vm11, %v5794_v20  ;;  %v1300_v19 = vpack.c.bf16 %v1286_v1, %v1285_v56  ;;  %v1299_v12 = vpack.c.bf16 %v1284_v7, %v1283_v13  ;;  %v1291_v25 = vmul.f32 %v4675_v3, %v1119_v0  ;;  %v1292_v28 = vmul.f32 %v4673_v63, %v1120_v16  ;;  %vm5802_vm11 = vmmov %vm5798_vm0 }
 0xd96   :  { %v1301_v58 = vpack.c.bf16 %v1288_v8, %v1287_v11  ;;  %v1302_v17 = vpack.c.bf16 %v1290_v42, %v1289_v14  ;;  %v1295_v32 = vmul.f32 %v4679_v6, %v1119_v0  ;;  %v1296_v18 = vmul.f32 %v4677_v5, %v1120_v16  ;;  %3799 = vmatpush3.bf16.msk.msra.mxu1 %vm5759_vm12, %v5796_v26 }
 0xd97   :  { %1373 = vrot.lane.b32.xlu1 %v1300_v19, %s4220_s25  ;;  %1371 = vrot.lane.b32.xlu0 %v1299_v12, %s4220_s25  ;;  %v1303_v44 = vpack.c.bf16 %v1292_v28, %v1291_v25  ;;  %v1293_v55 = vmul.f32 %v4720_v40, %v1119_v0  ;;  %v1294_v37 = vmul.f32 %v4718_v34, %v1120_v16 }
 0xd98   :  { %v1305_v10 = vpack.c.bf16 %v1296_v18, %v1295_v32  ;;  %v1297_v35 = vmul.f32 %v4728_v49, %v1119_v0  ;;  %v1298_v9 = vmul.f32 %v4726_v43, %v1120_v16  ;;  %3800 = vmatprep.subr.bf16.mxu1 %v5783_v45  ;;  %3814 = vmatprep.mubr.msk.bf16.mxu1 %vm5756_vm9, %v5783_v45 }
 0xd99   :  { %v1304_v38 = vpack.c.bf16 %v1294_v37, %v1293_v55 }
 0xd9a   :  { %v1306_v4 = vpack.c.bf16 %v1298_v9, %v1297_v35  ;;  %3801 = vmatpush3.bf16.msk.msra.mxu1 %vm5760_vm13, %v5796_v26  ;;  %v4084_v35 = vld [vmem:[#allocation2 + $0x38] sm:$0xff]  }
 0xd9b   :  { %1375 = vrot.lane.b32.xlu1 %v1301_v58, %s4220_s25  ;;  %1377 = vrot.lane.b32.xlu0 %v1302_v17, %s4220_s25 }
 0xd9c   :  { %3802 = vmatprep.subr.bf16.mxu1 %v5783_v45 }
 0xd9e   :  { %3803 = vmatpush3.bf16.msk.msra.mxu1 %vm5761_vm14, %v5796_v26 }
 0xd9f   :  { %1379 = vrot.lane.b32.xlu1 %v1303_v44, %s4220_s25  ;;  %3804 = vmatprep.subr.bf16.mxu1 %v5783_v45 }
 0xda2   :  { %3805 = vmatpush3.bf16.msk.msra.mxu1 %vm5762_vm15, %v5796_v26 }
 0xda3   :  { %3806 = vmatprep.subr.bf16.mxu1 %v5783_v45 }
 0xda6   :  { %3807 = vmatpush3.bf16.msk.msra.mxu1 %vm5763_vm2, %v5796_v26 }
 0xda7   :  { %3808 = vmatprep.subr.bf16.mxu1 %v5783_v45 }
 0xdaa   :  { %3809 = vmatpush3.bf16.msk.msra.mxu1 %vm4466_vm4, %v5796_v26 }
 0xdab   :  { %3810 = vmatprep.subr.bf16.mxu1 %v5783_v45 }
 0xdae   :  { %3811 = vmatpush3.bf16.msk.msra.mxu1 %vm5764_vm3, %v5796_v26 }
 0xdaf   :  { %3812 = vmatprep.subr.bf16.mxu1 %v5783_v45 }
 0xdb2   :  { %3813 = vmatpush3.bf16.msk.msra.mxu1 %vm5797_vm8, %v5796_v26  ;;  %vm5814_vm8 = vcmask 785408  }
 0xdb3   :  { %3826 = vmatprep.subr.bf16.mxu1 %v5783_v45  ;;  %vm5817_vm3 = vmmov %vm5814_vm8 }
 0xe09   :  { %v1372_v22 = vpop.permute.xlu0 %1371  ;;  %v1374_v0 = vpop.permute.xlu1 %1373 }
 0xe0a   :  { %3779 = vmatpush3.bf16.msra.mxu0 %v1372_v22 }
 0xe0b   :  { %3780 = vmatprep.subr.bf16.mxu0 %v5783_v45 }
 0xe0d   :  { %v1376_v16 = vpop.permute.xlu1 %1375  ;;  %v1378_v56 = vpop.permute.xlu0 %1377 }
 0xe0e   :  { %3781 = vmatpush3.bf16.msra.mxu0 %v1374_v0 }
 0xe0f   :  { %3782 = vmatprep.subr.bf16.mxu0 %v5783_v45 }
 0xe11   :  { %v1380_v1 = vpop.permute.xlu1 %1379 }
 0xe12   :  { %3783 = vmatpush3.bf16.msra.mxu0 %v1376_v16 }
 0xe13   :  { %3784 = vmatprep.subr.bf16.mxu0 %v5783_v45 }
 0xe16   :  { %3785 = vmatpush3.bf16.msra.mxu0 %v1378_v56 }
 0xe17   :  { %3786 = vmatprep.subr.bf16.mxu0 %v5783_v45 }
 0xe1a   :  { %3787 = vmatpush3.bf16.msra.mxu0 %v1380_v1 }
 0xe1b   :  { %3788 = vmatprep.subr.bf16.mxu0 %v5783_v45 }
 0xe68   :  { %v1345_v13 = vpop.f32.mrb[16].mxu1 }
 0xe69   :  { %v1346_v7 = vadd.f32 %v1345_v13, %v4773_v41  ;;  %v3776_v11 = vpop.f32.mrb[17].mxu1 }
 0xe6a   :  { %v1348_v8 = vpop.f32.mrb[18].mxu1 }
 0xe6b   :  { %v1349_v14 = vadd.f32 %v1348_v8, %v4775_v47  ;;  %1352 = vmax.xlane.f32.xlu1 %v1346_v7  ;;  %v3777_v42 = vpop.f32.mrb[19].mxu1 }
 0xe6c   :  { %v3427_v42 = vld [vmem:[%s5661_s3 + $0xf] ss:$0 sm:$0xff] }
 0xe6d   :  { %1354 = vmax.xlane.f32.xlu0 %v1349_v14 }
 0xe7c   :  { %1383 = vrot.lane.b32.xlu1 %v1305_v10, %s4220_s25  ;;  %v4083_v10 = vld [vmem:[#allocation2 + $0x30] sm:$0xff]  }
 0xe83   :  { %1381 = vrot.lane.b32.xlu0 %v1304_v38, %s4220_s25 }
 0xe87   :  { %1385 = vrot.lane.b32.xlu0 %v1306_v4, %s4220_s25 }
 0xef8   :  { %v1353_v20 = vpop.xlane.xlu1 %1352 }
 0xef9   :  { %v1356_v19 = vsub.f32 %v1346_v7, %v1353_v20 }
 0xefa   :  { %v1355_v12 = vpop.xlane.xlu0 %1354 }
 0xefb   :  { %v1358_v25 = vmul.f32 1.442695, %v1356_v19  ;;  %v1357_v28 = vsub.f32 %v1349_v14, %v1355_v12 }
 0xefc   :  { %v1384_v32 = vpop.permute.xlu1 %1383 }
 0xefd   :  { %v1360_v58 = vmul.f32 1.442695, %v1357_v28  ;;  %4123 = vpow2.f32 %v1358_v25 }
 0xefe   :  { %v1382_v17 = vpop.permute.xlu0 %1381 }
 0xeff   :  { %4125 = vpow2.f32 %v1360_v58  ;;  %3789 = vmatpush3.bf16.msra.mxu0 %v1382_v17 }
 0xf00   :  { %3790 = vmatprep.subr.bf16.mxu0 %v5783_v45 }
 0xf02   :  { %v1386_v18 = vpop.permute.xlu0 %1385 }
 0xf03   :  { %3791 = vmatpush3.bf16.msra.mxu0 %v1384_v32 }
 0xf04   :  { %3792 = vmatprep.subr.bf16.mxu0 %v5783_v45 }
 0xf07   :  { %3793 = vmatpush3.bf16.msra.mxu0 %v1386_v18  ;;  %v4124_v44 = vpop.eup %4123 }
 0xf08   :  { %3818 = vmatprep.subr.bf16.mxu0 %v5783_v45 }
 0xf09   :  { %v4126_v55 = vpop.eup %4125 }
 0xf0a   :  { %v1362_v37 = vpack.c.bf16 %v4126_v55, %v4124_v44 }
 0xf0c   :  { %3795 = vmatmul.mubr.bf16.vlgmr.msra.gmra.mrb[20].mxu0 %v1362_v37  ;;  %3815 = vmatmul.mubr.bf16.vlgmr.msra.gmra.mrb[20].mxu1 %v1362_v37 }
 0xf0d   :  { %3822 = vmatprep.mubr.msk.bf16.mxu0 %vm5756_vm9, %v5783_v45  ;;  %3830 = vmatprep.mubr.msk.bf16.mxu1 %vm5756_vm9, %v5783_v45 }
 0xf0e   :  { %3819 = vmatpush3.bf16.msra.mxu0 %v4083_v10 }
 0xf0f   :  { %3820 = vmatprep.subr.bf16.mxu0 %v5783_v45 }
 0xf12   :  { %3821 = vmatpush3.bf16.msra.mxu0 %v4084_v35 }
 0xf13   :  { %3834 = vmatprep.subr.bf16.mxu0 %v5783_v45 }
 0xfdf   :  { %v1429_v9 = vpop.f32.mrb[20].mxu0  ;;  %v1470_v38 = vpop.f32.mrb[20].mxu1 }
 0xfe0   :  { %4127 = vrcp.f32 %v1470_v38  ;;  %v3796_v4 = vpop.f32.mrb[21].mxu0  ;;  %v3816_v22 = vpop.f32.mrb[21].mxu1 }
 0xfe1   :  { %v1432_v0 = vpop.f32.mrb[22].mxu0  ;;  %v1473_v16 = vpop.f32.mrb[22].mxu1 }
 0xfe2   :  { %4129 = vrcp.f32 %v1473_v16  ;;  %v3797_v56 = vpop.f32.mrb[23].mxu0  ;;  %v3817_v1 = vpop.f32.mrb[23].mxu1  ;;  %v4086_v16 = vld [vmem:[#allocation2 + $0x48] sm:$0xff]  }
 0xfea   :  { %v4128_v13 = vpop.eup %4127 }
 0xfeb   :  { %v1479_v7 = vmul.f32 %v4128_v13, %v1429_v9 }
 0xfec   :  { %v4130_v11 = vpop.eup %4129 }
 0xfed   :  { %v1480_v8 = vmul.f32 %v4130_v11, %v1432_v0 }
 0xfef   :  { %v1481_v14 = vpack.c.bf16 %v1480_v8, %v1479_v7 }
 0xff1   :  { %3823 = vmatmul.mubr.msk.bf16.vlgmr.msra.gmra.mrb[24].mxu0 %vm5798_vm0, %v1481_v14 }
 0xff2   :  { %3838 = vmatprep.mubr.msk.bf16.mxu0 %vm5756_vm9, %v5783_v45 }
0x10c4   :  { %v1536_v20 = vpop.f32.mrb[24].mxu0 }
0x10c5   :  { %v1537_v19 = vadd.f32 %v3427_v42, %v1536_v20  ;;  %v3824_v12 = vpop.f32.mrb[25].mxu0 }
0x10c6   :  { %v1539_v25 = vpop.f32.mrb[26].mxu0 }
0x10c7   :  { %v1540_v28 = vadd.f32 %v3427_v42, %v1539_v25  ;;  %v3825_v58 = vpop.f32.mrb[27].mxu0  ;;  %v1543_v17 = vadd.f32 %v1537_v19, %v4850_v36  ;;  %v3431_v42 = vld [vmem:[%s5661_s3 + $0x10] ss:$0 sm:$0xff] }
0x10c9   :  { %v1544_v32 = vadd.f32 %v1540_v28, %v4852_v30  ;;  %v1547_v18 = vsel %vm5799_vm1, %v1543_v17, 0.0  ;;  %v4085_v30 = vld [vmem:[#allocation2 + $0x40] sm:$0xff]   ;;  %v3432_v28 = vld [vmem:[%s5661_s3 + $0x11] ss:$0 sm:$0xff]  ;;  %vm5803_vm1 = vmmov %vm5798_vm0 }
0x10ca   :  { %1548 = vadd.xlane.f32.xlu1 %v1547_v18  ;;  %3827 = vmatpush3.bf16.msra.mxu1 %v4085_v30 }
0x10cb   :  { %v1550_v44 = vsel %vm5800_vm10, %v1544_v32, 0.0  ;;  %3828 = vmatprep.subr.bf16.mxu1 %v5783_v45  ;;  %vm5804_vm10 = vmmov %vm5798_vm0 }
0x10cc   :  { %1551 = vadd.xlane.f32.xlu0 %v1550_v44  ;;  %v4087_v44 = vld [vmem:[#allocation2 + $0x50] sm:$0xff]  }
0x10cd   :  { %3835 = vmatpush3.bf16.msra.mxu0 %v4087_v44 }
0x10ce   :  { %3829 = vmatpush3.bf16.msra.mxu1 %v4086_v16  ;;  %3836 = vmatprep.subr.bf16.mxu0 %v5783_v45  ;;  %v3437_v16 = vld [vmem:[%s5661_s3 + $0x13] ss:$0 sm:$0xff] }
0x10cf   :  { %3842 = vmatprep.subr.bf16.mxu1 %v5783_v45 }
0x1157   :  { %v1549_v55 = vpop.xlane.xlu1 %1548 }
0x1158   :  { %v1553_v37 = vmul.f32 0.03125, %v1549_v55  ;;  %v4088_v55 = vld [vmem:[#allocation2 + $0x58] sm:$0xff]  }
0x1159   :  { %v1552_v10 = vpop.xlane.xlu0 %1551  ;;  %3837 = vmatpush3.bf16.msra.mxu0 %v4088_v55 }
0x115a   :  { %v1555_v35 = vsub.f32 %v1543_v17, %v1553_v37  ;;  %v1554_v9 = vmul.f32 0.03125, %v1552_v10  ;;  %3850 = vmatprep.subr.bf16.mxu0 %v5783_v45  ;;  %v3433_v37 = vld [vmem:[%s5661_s3 + $0x12] ss:$0 sm:$0xff] }
0x115c   :  { %v1556_v38 = vsub.f32 %v1544_v32, %v1554_v9  ;;  %v1557_v4 = vmul.f32 %v1555_v35, %v1555_v35 }
0x115e   :  { %v1559_v22 = vsel %vm5801_vm7, %v1557_v4, 0.0  ;;  %v1558_v0 = vmul.f32 %v1556_v38, %v1556_v38  ;;  %vm5805_vm7 = vmmov %vm5798_vm0 }
0x115f   :  { %1560 = vadd.xlane.f32.xlu0 %v1559_v22 }
0x1160   :  { %v1562_v36 = vsel %vm5802_vm11, %v1558_v0, 0.0  ;;  %vm5806_vm11 = vmmov %vm5798_vm0 }
0x1161   :  { %1563 = vadd.xlane.f32.xlu1 %v1562_v36 }
0x11ec   :  { %v1561_v56 = vpop.xlane.xlu0 %1560 }
0x11ed   :  { %v1565_v1 = vmul.f32 0.03125, %v1561_v56 }
0x11ee   :  { %v1564_v13 = vpop.xlane.xlu1 %1563 }
0x11ef   :  { %v1567_v7 = vadd.f32 1e-05, %v1565_v1  ;;  %v1566_v11 = vmul.f32 0.03125, %v1564_v13 }
0x11f1   :  { %4131 = vrsqrt.f32 %v1567_v7  ;;  %v1568_v8 = vadd.f32 1e-05, %v1566_v11 }
0x11f3   :  { %4133 = vrsqrt.f32 %v1568_v8 }
0x11fb   :  { %v4132_v14 = vpop.eup %4131 }
0x11fc   :  { %v1571_v20 = vmul.f32 %v4132_v14, %v1555_v35 }
0x11fd   :  { %v4134_v19 = vpop.eup %4133 }
0x11fe   :  { %v1577_v12 = vmul.f32 %v3431_v42, %v1571_v20  ;;  %v1572_v25 = vmul.f32 %v4134_v19, %v1556_v38 }
0x1200   :  { %v1578_v58 = vmul.f32 %v3431_v42, %v1572_v25  ;;  %v1583_v17 = vadd.f32 %v3432_v28, %v1577_v12 }
0x1202   :  { %v1584_v32 = vadd.f32 %v3432_v28, %v1578_v58 }
0x1204   :  { %v1585_v18 = vpack.c.bf16 %v1584_v32, %v1583_v17 }
0x1206   :  { %3831 = vmatmul.mubr.msk.bf16.vlgmr.msra.gmra.mrb[24].mxu1 %vm5798_vm0, %v1585_v18 }
0x1207   :  { %3846 = vmatprep.mubr.msk.bf16.mxu1 %vm5756_vm9, %v5783_v45 }
0x12d9   :  { %v1640_v10 = vpop.f32.mrb[24].mxu1 }
0x12da   :  { %v1641_v35 = vadd.f32 %v3433_v37, %v1640_v10  ;;  %v3832_v9 = vpop.f32.mrb[25].mxu1 }
0x12db   :  { %v1643_v38 = vpop.f32.mrb[26].mxu1  ;;  %v3451_v9 = vld [vmem:[%s5661_s3 + $0x17] ss:$0 sm:$0xff] }
0x12dc   :  { %v1644_v4 = vadd.f32 %v3433_v37, %v1643_v38  ;;  %v3833_v22 = vpop.f32.mrb[27].mxu1  ;;  %v1647_v0 = vmax.f32 %v1641_v35, 0.0  ;;  %v4090_v35 = vld [vmem:[%s5659_s1 + $0x28] sm:$0xff]  }
0x12de   :  { %v1648_v36 = vmax.f32 %v1644_v4, 0.0 }
0x12e0   :  { %v1649_v30 = vpack.c.bf16 %v1648_v36, %v1647_v0 }
0x12e2   :  { %3839 = vmatmul.mubr.msk.bf16.vlgmr.msra.gmra.mrb[28].mxu0 %vm5803_vm1, %v1649_v30  ;;  %vm5809_vm1 = vmmov %vm5798_vm0 }
0x12e3   :  { %3854 = vmatprep.mubr.msk.bf16.mxu0 %vm5756_vm9, %v5783_v45 }
0x13b5   :  { %v1704_v56 = vpop.f32.mrb[28].mxu0 }
0x13b6   :  { %v1705_v1 = vadd.f32 %v3437_v16, %v1704_v56  ;;  %v3840_v13 = vpop.f32.mrb[29].mxu0  ;;  %v3441_v56 = vld [vmem:[%s5661_s3 + $0x14] ss:$0 sm:$0xff] }
0x13b7   :  { %v1707_v7 = vpop.f32.mrb[30].mxu0 }
0x13b8   :  { %v1711_v11 = vadd.f32 %v1705_v1, %v1583_v17  ;;  %v1708_v8 = vadd.f32 %v3437_v16, %v1707_v7  ;;  %v3841_v14 = vpop.f32.mrb[31].mxu0 }
0x13ba   :  { %v1715_v42 = vsel %vm5804_vm10, %v1711_v11, 0.0  ;;  %v1712_v20 = vadd.f32 %v1708_v8, %v1584_v32  ;;  %v4089_v32 = vld [vmem:[%s5659_s1 + $0x20] sm:$0xff]   ;;  %v3442_v8 = vld [vmem:[%s5661_s3 + $0x15] ss:$0 sm:$0xff]  ;;  %vm5810_vm10 = vcmask 130048  }
0x13bb   :  { %1716 = vadd.xlane.f32.xlu0 %v1715_v42  ;;  %3843 = vmatpush3.bf16.msra.mxu1 %v4089_v32 }
0x13bc   :  { %v1718_v19 = vsel %vm5805_vm7, %v1712_v20, 0.0  ;;  %3844 = vmatprep.subr.bf16.mxu1 %v5783_v45  ;;  %vm5811_vm7 = vmmov %vm5798_vm0 }
0x13bd   :  { %1719 = vadd.xlane.f32.xlu1 %v1718_v19 }
0x13bf   :  { %3845 = vmatpush3.bf16.msra.mxu1 %v4090_v35 }
0x13c0   :  { %3858 = vmatprep.subr.bf16.mxu1 %v5783_v45 }
0x1448   :  { %v1717_v12 = vpop.xlane.xlu0 %1716 }
0x1449   :  { %v1721_v25 = vmul.f32 0.03125, %v1717_v12 }
0x144a   :  { %v1720_v28 = vpop.xlane.xlu1 %1719 }
0x144b   :  { %v1723_v58 = vsub.f32 %v1711_v11, %v1721_v25  ;;  %v1722_v18 = vmul.f32 0.03125, %v1720_v28  ;;  %v3450_v28 = vld [vmem:[%s5661_s3 + $0x16] ss:$0 sm:$0xff] }
0x144d   :  { %v1724_v44 = vsub.f32 %v1712_v20, %v1722_v18  ;;  %v1725_v55 = vmul.f32 %v1723_v58, %v1723_v58 }
0x144f   :  { %v1727_v37 = vsel %vm5806_vm11, %v1725_v55, 0.0  ;;  %v1726_v10 = vmul.f32 %v1724_v44, %v1724_v44  ;;  %vm5812_vm11 = vmmov %vm5810_vm10 }
0x1450   :  { %1728 = vadd.xlane.f32.xlu0 %v1727_v37 }
0x1451   :  { %v1730_v17 = vsel %vm5798_vm0, %v1726_v10, 0.0 }
0x1452   :  { %1731 = vadd.xlane.f32.xlu1 %v1730_v17 }
0x1466   :  { %1843 = vrot.lane.b32.xlu0 %v3451_v9, %s4224_s9 }
0x14dd   :  { %v1729_v38 = vpop.xlane.xlu0 %1728 }
0x14de   :  { %v1733_v4 = vmul.f32 0.03125, %v1729_v38 }
0x14df   :  { %v1732_v22 = vpop.xlane.xlu1 %1731 }
0x14e0   :  { %v1735_v0 = vadd.f32 1e-05, %v1733_v4  ;;  %v1734_v36 = vmul.f32 0.03125, %v1732_v22 }
0x14e1   :  { %v1844_v12 = vpop.permute.xlu0 %1843 }
0x14e2   :  { %4135 = vrsqrt.f32 %v1735_v0  ;;  %v1736_v30 = vadd.f32 1e-05, %v1734_v36  ;;  %v3452_v0 = vld [vmem:[%s5661_s3 + $0x18] ss:$0 sm:$0xff] }
0x14e4   :  { %4137 = vrsqrt.f32 %v1736_v30 }
0x14ec   :  { %v4136_v16 = vpop.eup %4135 }
0x14ed   :  { %v1739_v1 = vmul.f32 %v4136_v16, %v1723_v58 }
0x14ee   :  { %v4138_v13 = vpop.eup %4137 }
0x14ef   :  { %v1745_v7 = vmul.f32 %v3441_v56, %v1739_v1  ;;  %v1740_v11 = vmul.f32 %v4138_v13, %v1724_v44 }
0x14f1   :  { %v1746_v14 = vmul.f32 %v3441_v56, %v1740_v11  ;;  %v5100_v42 = vadd.f32 %v3442_v8, %v1745_v7 }
0x14f3   :  { %5807 = vst [vmem:[#allocation16_spill] sm:$0xff] %v5100_v42  ;;  %v5102_v20 = vadd.f32 %v3442_v8, %v1746_v14 }
0x14f5   :  { %5808 = vst [vmem:[#allocation17_spill] sm:$0xff] %v5102_v20  ;;  %v1768_v19 = vpack.c.bf16 %v5102_v20, %v5100_v42 }
0x14f7   :  { %3847 = vmatmul.mubr.msk.bf16.vlgmr.msra.gmra.mrb[28].mxu1 %vm5809_vm1, %v1768_v19  ;;  %vm5813_vm1 = vcmask 654336  }
0x14f8   :  { %3874 = vmatprep.mubr.msk.bf16.mxu1 %vm5756_vm9, %v5783_v45 }
0x15ca   :  { %v1823_v25 = vpop.f32.mrb[28].mxu1 }
0x15cb   :  { %v1846_v58 = vadd.f32 %v1844_v12, %v1823_v25  ;;  %v3848_v18 = vpop.f32.mrb[29].mxu1  ;;  %v5112_v55 = vadd.f32 %v3450_v28, %v1823_v25 }
0x15cc   :  { %v1826_v44 = vpop.f32.mrb[30].mxu1 }
0x15cd   :  { %v5114_v37 = vadd.f32 %v3450_v28, %v1826_v44  ;;  %1861 = vrot.lane.b32.xlu1 %v1846_v58, %s4225_s14  ;;  %v3849_v10 = vpop.f32.mrb[31].mxu1  ;;  %v1847_v17 = vadd.f32 %v1844_v12, %v1826_v44 }
0x15d1   :  { %1863 = vrot.lane.b32.xlu1 %v1847_v17, %s4225_s14 }
0x163f   :  { %v1862_v35 = vpop.permute.xlu1 %1861 }
0x1640   :  { %1867 = vxpose.xlu0.b32.start [1/2] (short) (narrow) %v1862_v35, 32 }
0x1643   :  { %v1864_v9 = vpop.permute.xlu1 %1863 }
0x1644   :  { %1868 = vxpose.xlu0.b32.end [2/2] (short) (narrow) %v1864_v9, 32 }
0x16c0   :  { %v5120_v38 = vpop.trf.xlu0 }
0x16c1   :  { %1903 = vrot.lane.b32.xlu1 %v5120_v38, %s4226_s15 }
0x16c4   :  { %v5124_v4 = vpop.trf.xlu0 }
0x16c5   :  { %1915 = vrot.lane.b32.xlu1 %v5120_v38, %s4224_s9 }
0x16c8   :  { %v5128_v22 = vpop.trf.xlu0 }
0x16c9   :  { %1927 = vrot.lane.b32.xlu1 %v5120_v38, %s4228_s17  ;;  %1907 = vrot.lane.b32.xlu0 %v5128_v22, %s4226_s15 }
0x16cc   :  { %v5172_v36 = vpop.trf.xlu0 }
0x16cd   :  { %1939 = vrot.lane.b32.xlu1 %v5120_v38, %s4220_s25  ;;  %1955 = vrot.lane.b32.xlu0 %v5128_v22, %s4227_s16 }
0x16d1   :  { %1951 = vrot.lane.b32.xlu1 %v5120_v38, %s4227_s16  ;;  %1967 = vrot.lane.b32.xlu0 %v5128_v22, %s4225_s14 }
0x16d5   :  { %1963 = vrot.lane.b32.xlu1 %v5120_v38, %s4225_s14  ;;  %1979 = vrot.lane.b32.xlu0 %v5128_v22, %s4229_s18 }
0x16d9   :  { %1975 = vrot.lane.b32.xlu1 %v5120_v38, %s4229_s18  ;;  %1854 = vrot.lane.b32.xlu0 %v3452_v0, %s4220_s25 }
0x16dd   :  { %1905 = vrot.lane.b32.xlu1 %v5124_v4, %s4226_s15 }
0x16e1   :  { %1917 = vrot.lane.b32.xlu1 %v5124_v4, %s4224_s9 }
0x16e5   :  { %1929 = vrot.lane.b32.xlu1 %v5124_v4, %s4228_s17 }
0x16e9   :  { %1941 = vrot.lane.b32.xlu1 %v5124_v4, %s4220_s25 }
0x16ed   :  { %1953 = vrot.lane.b32.xlu1 %v5124_v4, %s4227_s16 }
0x16f1   :  { %1965 = vrot.lane.b32.xlu1 %v5124_v4, %s4225_s14 }
0x16f5   :  { %1977 = vrot.lane.b32.xlu1 %v5124_v4, %s4229_s18 }
0x16f9   :  { %1919 = vrot.lane.b32.xlu1 %v5128_v22, %s4224_s9 }
0x16fd   :  { %1931 = vrot.lane.b32.xlu1 %v5128_v22, %s4228_s17 }
0x1701   :  { %1943 = vrot.lane.b32.xlu1 %v5128_v22, %s4220_s25 }
0x1705   :  { %1909 = vrot.lane.b32.xlu1 %v5172_v36, %s4226_s15 }
0x1709   :  { %1921 = vrot.lane.b32.xlu1 %v5172_v36, %s4224_s9 }
0x170d   :  { %1933 = vrot.lane.b32.xlu1 %v5172_v36, %s4228_s17 }
0x1711   :  { %1945 = vrot.lane.b32.xlu1 %v5172_v36, %s4220_s25 }
0x1715   :  { %1957 = vrot.lane.b32.xlu1 %v5172_v36, %s4227_s16 }
0x1719   :  { %1969 = vrot.lane.b32.xlu1 %v5172_v36, %s4225_s14 }
0x171d   :  { %1981 = vrot.lane.b32.xlu1 %v5172_v36, %s4229_s18 }
0x1733   :  { %v1904_v30 = vpop.permute.xlu1 %1903 }
0x1737   :  { %v1916_v16 = vpop.permute.xlu1 %1915 }
0x173b   :  { %v1928_v56 = vpop.permute.xlu1 %1927  ;;  %v5188_v1 = vpop.permute.xlu0 %1907 }
0x173f   :  { %v1940_v13 = vpop.permute.xlu1 %1939  ;;  %v5190_v7 = vpop.permute.xlu0 %1955 }
0x1743   :  { %v1952_v11 = vpop.permute.xlu1 %1951  ;;  %v5192_v8 = vpop.permute.xlu0 %1967 }
0x1747   :  { %v1964_v14 = vpop.permute.xlu1 %1963  ;;  %v5194_v19 = vpop.permute.xlu0 %1979 }
0x174b   :  { %v1976_v12 = vpop.permute.xlu1 %1975  ;;  %v1855_v28 = vpop.permute.xlu0 %1854 }
0x174c   :  { %v1857_v58 = vadd.f32 %v1855_v28, %v1823_v25  ;;  %v1858_v18 = vadd.f32 %v1855_v28, %v1826_v44 }
0x174e   :  { %v2023_v10 = vmul.f32 %v4698_v27, %v1857_v58  ;;  %v2024_v17 = vmul.f32 %v4696_v24, %v1858_v18  ;;  %v2021_v35 = vmul.f32 %v4667_v57, %v1857_v58  ;;  %v2022_v9 = vmul.f32 %v4663_v50, %v1858_v18 }
0x174f   :  { %v1906_v0 = vpop.permute.xlu1 %1905  ;;  %v2025_v32 = vmul.f32 %v4671_v62, %v1857_v58  ;;  %v2026_v29 = vmul.f32 %v4669_v61, %v1858_v18  ;;  %v2027_v31 = vmul.f32 %v4713_v21, %v1857_v58  ;;  %v2028_v20 = vmul.f32 %v4711_v59, %v1858_v18 }
0x1750   :  { %v2038_v42 = vpack.c.bf16 %v2024_v17, %v2023_v10  ;;  %v2037_v25 = vpack.c.bf16 %v2022_v9, %v2021_v35  ;;  %v2029_v44 = vmul.f32 %v4675_v3, %v1857_v58  ;;  %v2030_v24 = vmul.f32 %v4673_v63, %v1858_v18 }
0x1751   :  { %v2039_v28 = vpack.c.bf16 %v2026_v29, %v2025_v32  ;;  %v2040_v27 = vpack.c.bf16 %v2028_v20, %v2027_v31  ;;  %v5207_v57 = vmul.f32 %v4679_v6, %v1857_v58  ;;  %v5212_v61 = vmul.f32 %v4677_v5, %v1858_v18 }
0x1752   :  { %2111 = vrot.lane.b32.xlu1 %v2038_v42, %s4220_s25  ;;  %2109 = vrot.lane.b32.xlu0 %v2037_v25, %s4220_s25  ;;  %v5215_v59 = vmul.f32 %v4720_v40, %v1857_v58  ;;  %v5218_v10 = vmul.f32 %v4718_v34, %v1858_v18  ;;  %v2041_v31 = vpack.c.bf16 %v2030_v24, %v2029_v44 }
0x1753   :  { %v1918_v29 = vpop.permute.xlu1 %1917  ;;  %v5221_v20 = vmul.f32 %v4728_v49, %v1857_v58  ;;  %v5224_v32 = vmul.f32 %v4726_v43, %v1858_v18  ;;  %v1987_v18 = vsel %vm5810_vm10, %v5120_v38, %v1904_v30  ;;  %v1988_v17 = vsel %vm5812_vm11, %v5124_v4, %v1906_v0 }
0x1754   :  { %v1991_v25 = vsel %vm5811_vm7, %v1987_v18, %v1916_v16  ;;  %vm5815_vm10 = vcmask 916480   ;;  %vm5816_vm7 = vmmov %vm5813_vm1 }
0x1755   :  { %v1995_v44 = vsel %vm449_vm5, %v1991_v25, %v1928_v56  ;;  %vm5818_vm11 = vmmov %vm5815_vm10 }
0x1756   :  { %2113 = vrot.lane.b32.xlu1 %v2039_v28, %s4220_s25  ;;  %2115 = vrot.lane.b32.xlu0 %v2040_v27, %s4220_s25  ;;  %v1999_v35 = vsel %vm454_vm6, %v1995_v44, %v1940_v13  ;;  %v1992_v28 = vsel %vm5798_vm0, %v1988_v17, %v1918_v29 }
0x1757   :  { %v1930_v24 = vpop.permute.xlu1 %1929  ;;  %v2003_v42 = vsel %vm5813_vm1, %v1999_v35, %v1952_v11 }
0x1758   :  { %v2007_v43 = vsel %vm5814_vm8, %v2003_v42, %v1964_v14  ;;  %vm5819_vm8 = vcmask 130048  }
0x1759   :  { %v2011_v30 = vsel %vm5815_vm10, %v2007_v43, %v1976_v12  ;;  %v1989_v43 = vsel %vm5819_vm8, %v5128_v22, %v5188_v1 }
0x175a   :  { %2117 = vrot.lane.b32.xlu1 %v2041_v31, %s4220_s25  ;;  %v1996_v31 = vsel %vm449_vm5, %v1992_v28, %v1930_v24  ;;  %v2015_v0 = vmul.f32 %v2011_v30, %v4627_v52 }
0x175b   :  { %v1942_v58 = vpop.permute.xlu1 %1941 }
0x175c   :  { %v2000_v38 = vsel %vm454_vm6, %v1996_v31, %v1942_v58 }
0x175f   :  { %v1954_v9 = vpop.permute.xlu1 %1953 }
0x1760   :  { %v2004_v16 = vsel %vm5816_vm7, %v2000_v38, %v1954_v9  ;;  %vm5822_vm7 = vmmov %vm5819_vm8 }
0x1763   :  { %v1966_v27 = vpop.permute.xlu1 %1965 }
0x1764   :  { %v2008_v56 = vsel %vm5817_vm3, %v2004_v16, %v1966_v27  ;;  %vm5820_vm3 = vmmov %vm5813_vm1  ;;  %vm5821_vm1 = vcmask 785408  }
0x1765   :  { %vm5824_vm8 = vmmov %vm5820_vm3 }
0x1767   :  { %v1978_v4 = vpop.permute.xlu1 %1977 }
0x1768   :  { %v2012_v13 = vsel %vm5818_vm11, %v2008_v56, %v1978_v4  ;;  %vm5823_vm11 = vmmov %vm5798_vm0 }
0x1769   :  { %v2016_v29 = vmul.f32 %v2012_v13, %v4632_v54 }
0x176b   :  { %v2019_v11 = vpack.c.bf16 %v2016_v29, %v2015_v0  ;;  %v1920_v17 = vpop.permute.xlu1 %1919 }
0x176c   :  { %v1993_v12 = vsel %vm5798_vm0, %v1989_v43, %v1920_v17  ;;  %vm5825_vm0 = vmmov %vm5821_vm1 }
0x176d   :  { %3851 = vmatpush3.bf16.msra.mxu0 %v2019_v11 }
0x176e   :  { %3852 = vmatprep.subr.bf16.mxu0 %v5783_v45 }
0x176f   :  { %v1932_v14 = vpop.permute.xlu1 %1931 }
0x1770   :  { %v1997_v42 = vsel %vm449_vm5, %v1993_v12, %v1932_v14 }
0x1773   :  { %v1944_v35 = vpop.permute.xlu1 %1943 }
0x1774   :  { %v2001_v24 = vsel %vm454_vm6, %v1997_v42, %v1944_v35 }
0x1775   :  { %v2005_v58 = vsel %vm5820_vm3, %v2001_v24, %v5190_v7  ;;  %vm5826_vm3 = vmmov %vm5815_vm10 }
0x1776   :  { %v2009_v9 = vsel %vm5821_vm1, %v2005_v58, %v5192_v8  ;;  %vm5828_vm1 = vmmov %vm5823_vm11  ;;  %v5831_v58 = vpack.c.bf16 %v5212_v61, %v5207_v57 }
0x1777   :  { %v1910_v18 = vpop.permute.xlu1 %1909  ;;  %v2013_v25 = vsel %vm5815_vm10, %v2009_v9, %v5194_v19  ;;  %vm5829_vm10 = vnez %v5720_v60  ;;  %v5832_v9 = vpack.c.bf16 %v5218_v10, %v5215_v59 }
0x1778   :  { %v1990_v27 = vsel %vm5822_vm7, %v5172_v36, %v1910_v18  ;;  %v2017_v4 = vmul.f32 %v2013_v25, %v4654_v48  ;;  %v5827_v36 = vpack.c.bf16 %v5114_v37, %v5112_v55  ;;  %vm5830_vm7 = vnez %v5744_v33 }
0x1779   :  { %v5833_v18 = vpack.c.bf16 %v5224_v32, %v5221_v20  ;;  %v4091_v32 = vld [vmem:[#allocation2 + $0x60] sm:$0xff]  }
0x177b   :  { %v1922_v44 = vpop.permute.xlu1 %1921 }
0x177c   :  { %v1994_v31 = vsel %vm5823_vm11, %v1990_v27, %v1922_v44  ;;  %vm5834_vm11 = vmmov %vm5828_vm1 }
0x177f   :  { %v1934_v28 = vpop.permute.xlu1 %1933 }
0x1780   :  { %v1998_v30 = vsel %vm449_vm5, %v1994_v31, %v1934_v28 }
0x1783   :  { %v1946_v22 = vpop.permute.xlu1 %1945 }
0x1784   :  { %v2002_v7 = vsel %vm454_vm6, %v1998_v30, %v1946_v22 }
0x1787   :  { %v1958_v1 = vpop.permute.xlu1 %1957 }
0x1788   :  { %v2006_v8 = vsel %vm5824_vm8, %v2002_v7, %v1958_v1  ;;  %vm5837_vm8 = vmmov %vm5828_vm1 }
0x178b   :  { %v1970_v38 = vpop.permute.xlu1 %1969 }
0x178c   :  { %v2010_v16 = vsel %vm5825_vm0, %v2006_v8, %v1970_v38  ;;  %v4092_v38 = vld [vmem:[#allocation2 + $0x68] sm:$0xff]   ;;  %vm5838_vm0 = vmmov %vm5828_vm1 }
0x178f   :  { %v1982_v56 = vpop.permute.xlu1 %1981 }
0x1790   :  { %v2014_v19 = vsel %vm5826_vm3, %v2010_v16, %v1982_v56  ;;  %vm5839_vm3 = vmmov %vm5838_vm0 }
0x1791   :  { %v2018_v13 = vmul.f32 %v2014_v19, %v4657_v51 }
0x1793   :  { %v2020_v0 = vpack.c.bf16 %v2018_v13, %v2017_v4 }
0x1795   :  { %3853 = vmatpush3.bf16.msra.mxu0 %v2020_v0 }
0x1796   :  { %3878 = vmatprep.subr.bf16.mxu0 %v5783_v45 }
0x1798   :  { %3855 = vmatmul.mubr.msk.bf16.vlgmr.msra.gmra.mrb[32].mxu0 %vm5828_vm1, %v5827_v36  ;;  %vm5840_vm1 = vmmov %vm5838_vm0 }
0x1799   :  { %3879 = vmatpush3.bf16.msk.msra.mxu0 %vm5759_vm12, %v5796_v26  ;;  %3894 = vmatprep.mubr.msk.bf16.mxu0 %vm5756_vm9, %v5783_v45 }
0x179a   :  { %3880 = vmatprep.subr.bf16.mxu0 %v5783_v45 }
0x179d   :  { %3881 = vmatpush3.bf16.msk.msra.mxu0 %vm5760_vm13, %v5796_v26 }
0x179e   :  { %3882 = vmatprep.subr.bf16.mxu0 %v5783_v45 }
0x17a1   :  { %3883 = vmatpush3.bf16.msk.msra.mxu0 %vm5761_vm14, %v5796_v26 }
0x17a2   :  { %3884 = vmatprep.subr.bf16.mxu0 %v5783_v45 }
0x17a5   :  { %3885 = vmatpush3.bf16.msk.msra.mxu0 %vm5762_vm15, %v5796_v26 }
0x17a6   :  { %3886 = vmatprep.subr.bf16.mxu0 %v5783_v45 }
0x17a9   :  { %3887 = vmatpush3.bf16.msk.msra.mxu0 %vm5763_vm2, %v5796_v26 }
0x17aa   :  { %3888 = vmatprep.subr.bf16.mxu0 %v5783_v45 }
0x17ad   :  { %3889 = vmatpush3.bf16.msk.msra.mxu0 %vm4466_vm4, %v5796_v26 }
0x17ae   :  { %3890 = vmatprep.subr.bf16.mxu0 %v5783_v45 }
0x17b1   :  { %3891 = vmatpush3.bf16.msk.msra.mxu0 %vm5829_vm10, %v5796_v26 }
0x17b2   :  { %3892 = vmatprep.subr.bf16.mxu0 %v5783_v45 }
0x17b5   :  { %3893 = vmatpush3.bf16.msk.msra.mxu0 %vm5830_vm7, %v5796_v26  ;;  %vm5851_vm7 = vcmask 785408  }
0x17b6   :  { %3906 = vmatprep.subr.bf16.mxu0 %v5783_v45 }
0x17c4   :  { %v2110_v55 = vpop.permute.xlu0 %2109  ;;  %v2112_v37 = vpop.permute.xlu1 %2111 }
0x17c5   :  { %3859 = vmatpush3.bf16.msra.mxu1 %v2110_v55 }
0x17c6   :  { %3860 = vmatprep.subr.bf16.mxu1 %v5783_v45 }
0x17c8   :  { %v2114_v29 = vpop.permute.xlu1 %2113  ;;  %v2116_v11 = vpop.permute.xlu0 %2115 }
0x17c9   :  { %3861 = vmatpush3.bf16.msra.mxu1 %v2112_v37 }
0x17ca   :  { %3862 = vmatprep.subr.bf16.mxu1 %v5783_v45 }
0x17cc   :  { %v2118_v17 = vpop.permute.xlu1 %2117 }
0x17cd   :  { %3863 = vmatpush3.bf16.msra.mxu1 %v2114_v29 }
0x17ce   :  { %3864 = vmatprep.subr.bf16.mxu1 %v5783_v45 }
0x17d1   :  { %3865 = vmatpush3.bf16.msra.mxu1 %v2116_v11  ;;  %v3470_v11 = vld [vmem:[%s5661_s3 + $0x19] ss:$0 sm:$0xff] }
0x17d2   :  { %3866 = vmatprep.subr.bf16.mxu1 %v5783_v45 }
0x17d5   :  { %3867 = vmatpush3.bf16.msra.mxu1 %v2118_v17 }
0x17d6   :  { %3868 = vmatprep.subr.bf16.mxu1 %v5783_v45 }
0x186b   :  { %v2083_v14 = vpop.f32.mrb[32].mxu0 }
0x186c   :  { %v2084_v43 = vadd.f32 %v2083_v14, %v4773_v41  ;;  %v3856_v12 = vpop.f32.mrb[33].mxu0 }
0x186d   :  { %v2086_v42 = vpop.f32.mrb[34].mxu0 }
0x186e   :  { %v2087_v35 = vadd.f32 %v2086_v42, %v4775_v47  ;;  %2090 = vmax.xlane.f32.xlu1 %v2084_v43  ;;  %v3857_v24 = vpop.f32.mrb[35].mxu0  ;;  %v5835_v42 = vld [vmem:[#allocation16_spill] sm:$0xff] }
0x1870   :  { %2092 = vmax.xlane.f32.xlu0 %v2087_v35 }
0x187f   :  { %2121 = vrot.lane.b32.xlu1 %v5831_v58, %s4220_s25 }
0x1886   :  { %2119 = vrot.lane.b32.xlu0 %v5832_v9, %s4220_s25  ;;  %v5836_v9 = vld [vmem:[#allocation17_spill] sm:$0xff] }
0x188a   :  { %2123 = vrot.lane.b32.xlu0 %v5833_v18, %s4220_s25 }
0x18fb   :  { %v2091_v25 = vpop.xlane.xlu1 %2090 }
0x18fc   :  { %v2094_v44 = vsub.f32 %v2084_v43, %v2091_v25 }
0x18fd   :  { %v2093_v28 = vpop.xlane.xlu0 %2092 }
0x18fe   :  { %v2096_v22 = vmul.f32 1.442695, %v2094_v44  ;;  %v2095_v1 = vsub.f32 %v2087_v35, %v2093_v28 }
0x18ff   :  { %v2122_v57 = vpop.permute.xlu1 %2121 }
0x1900   :  { %v2098_v27 = vmul.f32 1.442695, %v2095_v1  ;;  %4139 = vpow2.f32 %v2096_v22 }
0x1901   :  { %v2120_v31 = vpop.permute.xlu0 %2119 }
0x1902   :  { %4141 = vpow2.f32 %v2098_v27  ;;  %3869 = vmatpush3.bf16.msra.mxu1 %v2120_v31 }
0x1903   :  { %3870 = vmatprep.subr.bf16.mxu1 %v5783_v45 }
0x1905   :  { %v2124_v61 = vpop.permute.xlu0 %2123 }
0x1906   :  { %3871 = vmatpush3.bf16.msra.mxu1 %v2122_v57 }
0x1907   :  { %3872 = vmatprep.subr.bf16.mxu1 %v5783_v45 }
0x190a   :  { %3873 = vmatpush3.bf16.msra.mxu1 %v2124_v61  ;;  %v4140_v59 = vpop.eup %4139 }
0x190b   :  { %3898 = vmatprep.subr.bf16.mxu1 %v5783_v45 }
0x190c   :  { %v4142_v10 = vpop.eup %4141 }
0x190d   :  { %v2100_v20 = vpack.c.bf16 %v4142_v10, %v4140_v59 }
0x190f   :  { %3875 = vmatmul.mubr.bf16.vlgmr.msra.gmra.mrb[32].mxu1 %v2100_v20  ;;  %3895 = vmatmul.mubr.bf16.vlgmr.msra.gmra.mrb[36].mxu0 %v2100_v20 }
0x1910   :  { %3902 = vmatprep.mubr.msk.bf16.mxu1 %vm5756_vm9, %v5783_v45  ;;  %3910 = vmatprep.mubr.msk.bf16.mxu0 %vm5756_vm9, %v5783_v45 }
0x1911   :  { %3899 = vmatpush3.bf16.msra.mxu1 %v4091_v32  ;;  %v4093_v32 = vld [vmem:[#allocation2 + $0x70] sm:$0xff]  }
0x1912   :  { %3900 = vmatprep.subr.bf16.mxu1 %v5783_v45  ;;  %3907 = vmatpush3.bf16.msra.mxu0 %v4093_v32 }
0x1913   :  { %3908 = vmatprep.subr.bf16.mxu0 %v5783_v45 }
0x1915   :  { %3901 = vmatpush3.bf16.msra.mxu1 %v4092_v38  ;;  %v4094_v38 = vld [vmem:[#allocation2 + $0x78] sm:$0xff]  }
0x1916   :  { %3914 = vmatprep.subr.bf16.mxu1 %v5783_v45  ;;  %3909 = vmatpush3.bf16.msra.mxu0 %v4094_v38 }
0x1917   :  { %3922 = vmatprep.subr.bf16.mxu0 %v5783_v45 }
0x19e2   :  { %v2167_v30 = vpop.f32.mrb[32].mxu1  ;;  %v2208_v7 = vpop.f32.mrb[36].mxu0 }
0x19e3   :  { %4143 = vrcp.f32 %v2208_v7  ;;  %v3876_v8 = vpop.f32.mrb[33].mxu1  ;;  %v3896_v16 = vpop.f32.mrb[37].mxu0 }
0x19e4   :  { %v2170_v56 = vpop.f32.mrb[34].mxu1  ;;  %v2211_v19 = vpop.f32.mrb[38].mxu0 }
0x19e5   :  { %4145 = vrcp.f32 %v2211_v19  ;;  %v3877_v4 = vpop.f32.mrb[35].mxu1  ;;  %v3897_v13 = vpop.f32.mrb[39].mxu0 }
0x19ed   :  { %v4144_v0 = vpop.eup %4143 }
0x19ee   :  { %v2217_v36 = vmul.f32 %v4144_v0, %v2167_v30  ;;  %v3474_v0 = vld [vmem:[%s5661_s3 + $0x1a] ss:$0 sm:$0xff] }
0x19ef   :  { %v4146_v55 = vpop.eup %4145 }
0x19f0   :  { %v2218_v37 = vmul.f32 %v4146_v55, %v2170_v56 }
0x19f2   :  { %v2219_v29 = vpack.c.bf16 %v2218_v37, %v2217_v36 }
0x19f4   :  { %3903 = vmatmul.mubr.msk.bf16.vlgmr.msra.gmra.mrb[36].mxu1 %vm5834_vm11, %v2219_v29  ;;  %v3475_v29 = vld [vmem:[%s5661_s3 + $0x1b] ss:$0 sm:$0xff]  ;;  %vm5841_vm11 = vmmov %vm5838_vm0 }
0x19f5   :  { %3918 = vmatprep.mubr.msk.bf16.mxu1 %vm5756_vm9, %v5783_v45 }
0x1ac7   :  { %v2274_v17 = vpop.f32.mrb[36].mxu1 }
0x1ac8   :  { %v2275_v14 = vadd.f32 %v3470_v11, %v2274_v17  ;;  %v3904_v43 = vpop.f32.mrb[37].mxu1 }
0x1ac9   :  { %v2277_v12 = vpop.f32.mrb[38].mxu1 }
0x1aca   :  { %v2281_v35 = vadd.f32 %v2275_v14, %v5835_v42  ;;  %v2278_v24 = vadd.f32 %v3470_v11, %v2277_v12  ;;  %v3905_v58 = vpop.f32.mrb[39].mxu1  ;;  %v4095_v12 = vld [vmem:[#allocation2 + $0x80] sm:$0xff]   ;;  %v4096_v42 = vld [vmem:[#allocation2 + $0x88] sm:$0xff]  }
0x1acb   :  { %3915 = vmatpush3.bf16.msra.mxu1 %v4095_v12 }
0x1acc   :  { %v2282_v18 = vadd.f32 %v2278_v24, %v5836_v9  ;;  %v2285_v25 = vsel %vm5837_vm8, %v2281_v35, 0.0  ;;  %3916 = vmatprep.subr.bf16.mxu1 %v5783_v45  ;;  %vm5842_vm8 = vmmov %vm5838_vm0 }
0x1acd   :  { %2286 = vadd.xlane.f32.xlu1 %v2285_v25 }
0x1ace   :  { %v2288_v44 = vsel %vm5838_vm0, %v2282_v18, 0.0 }
0x1acf   :  { %2289 = vadd.xlane.f32.xlu0 %v2288_v44  ;;  %3917 = vmatpush3.bf16.msra.mxu1 %v4096_v42 }
0x1ad0   :  { %3930 = vmatprep.subr.bf16.mxu1 %v5783_v45 }
0x1b5a   :  { %v2287_v28 = vpop.xlane.xlu1 %2286 }
0x1b5b   :  { %v2291_v22 = vmul.f32 0.03125, %v2287_v28 }
0x1b5c   :  { %v2290_v1 = vpop.xlane.xlu0 %2289 }
0x1b5d   :  { %v2293_v27 = vsub.f32 %v2281_v35, %v2291_v22  ;;  %v2292_v31 = vmul.f32 0.03125, %v2290_v1  ;;  %v3476_v35 = vld [vmem:[%s5661_s3 + $0x1c] ss:$0 sm:$0xff] }
0x1b5f   :  { %v2294_v57 = vsub.f32 %v2282_v18, %v2292_v31  ;;  %v2295_v61 = vmul.f32 %v2293_v27, %v2293_v27 }
0x1b61   :  { %v2297_v59 = vsel %vm5839_vm3, %v2295_v61, 0.0  ;;  %v2296_v10 = vmul.f32 %v2294_v57, %v2294_v57  ;;  %vm5843_vm3 = vmmov %vm5838_vm0 }
0x1b62   :  { %2298 = vadd.xlane.f32.xlu0 %v2297_v59 }
0x1b63   :  { %v2300_v20 = vsel %vm5840_vm1, %v2296_v10, 0.0  ;;  %vm5844_vm1 = vmmov %vm5838_vm0 }
0x1b66   :  { %2301 = vadd.xlane.f32.xlu0 %v2300_v20 }
0x1bef   :  { %v2299_v30 = vpop.xlane.xlu0 %2298 }
0x1bf0   :  { %v2303_v7 = vmul.f32 0.03125, %v2299_v30 }
0x1bf2   :  { %v2305_v8 = vadd.f32 1e-05, %v2303_v7 }
0x1bf3   :  { %v2302_v16 = vpop.xlane.xlu0 %2301 }
0x1bf4   :  { %4147 = vrsqrt.f32 %v2305_v8  ;;  %v2304_v56 = vmul.f32 0.03125, %v2302_v16 }
0x1bf6   :  { %v2306_v19 = vadd.f32 1e-05, %v2304_v56 }
0x1bf8   :  { %4149 = vrsqrt.f32 %v2306_v19 }
0x1bfe   :  { %v4148_v4 = vpop.eup %4147 }
0x1bff   :  { %v2309_v13 = vmul.f32 %v4148_v4, %v2293_v27  ;;  %v3480_v27 = vld [vmem:[%s5661_s3 + $0x1d] ss:$0 sm:$0xff] }
0x1c01   :  { %v2315_v55 = vmul.f32 %v3474_v0, %v2309_v13 }
0x1c02   :  { %v4150_v36 = vpop.eup %4149 }
0x1c03   :  { %v2310_v37 = vmul.f32 %v4150_v36, %v2294_v57  ;;  %v2321_v17 = vadd.f32 %v3475_v29, %v2315_v55 }
0x1c05   :  { %v2316_v11 = vmul.f32 %v3474_v0, %v2310_v37 }
0x1c07   :  { %v2322_v14 = vadd.f32 %v3475_v29, %v2316_v11  ;;  %v4097_v29 = vld [vmem:[%s5659_s1 + $0x30] sm:$0xff]   ;;  %v4098_v11 = vld [vmem:[%s5659_s1 + $0x38] sm:$0xff]  }
0x1c09   :  { %v2323_v43 = vpack.c.bf16 %v2322_v14, %v2321_v17 }
0x1c0b   :  { %3911 = vmatmul.mubr.msk.bf16.vlgmr.msra.gmra.mrb[40].mxu0 %vm5841_vm11, %v2323_v43  ;;  %vm5845_vm11 = vmmov %vm5838_vm0 }
0x1c0c   :  { %3926 = vmatprep.mubr.msk.bf16.mxu0 %vm5756_vm9, %v5783_v45  ;;  %3923 = vmatpush3.bf16.msra.mxu0 %v4097_v29 }
0x1c0d   :  { %3924 = vmatprep.subr.bf16.mxu0 %v5783_v45 }
0x1c10   :  { %3925 = vmatpush3.bf16.msra.mxu0 %v4098_v11 }
0x1c11   :  { %3938 = vmatprep.subr.bf16.mxu0 %v5783_v45 }
0x1cde   :  { %v2378_v24 = vpop.f32.mrb[40].mxu0 }
0x1cdf   :  { %v2379_v58 = vadd.f32 %v3476_v35, %v2378_v24  ;;  %v3912_v9 = vpop.f32.mrb[41].mxu0 }
0x1ce0   :  { %v2381_v18 = vpop.f32.mrb[42].mxu0  ;;  %v3484_v9 = vld [vmem:[%s5661_s3 + $0x1e] ss:$0 sm:$0xff] }
0x1ce1   :  { %v2382_v25 = vadd.f32 %v3476_v35, %v2381_v18  ;;  %v3913_v44 = vpop.f32.mrb[43].mxu0  ;;  %v2385_v28 = vmax.f32 %v2379_v58, 0.0 }
0x1ce3   :  { %v2386_v22 = vmax.f32 %v2382_v25, 0.0 }
0x1ce5   :  { %v2387_v1 = vpack.c.bf16 %v2386_v22, %v2385_v28  ;;  %v3485_v22 = vld [vmem:[%s5661_s3 + $0x1f] ss:$0 sm:$0xff] }
0x1ce7   :  { %3919 = vmatmul.mubr.msk.bf16.vlgmr.msra.gmra.mrb[40].mxu1 %vm5842_vm8, %v2387_v1  ;;  %vm5846_vm8 = vmmov %vm5838_vm0 }
0x1ce8   :  { %3934 = vmatprep.mubr.msk.bf16.mxu1 %vm5756_vm9, %v5783_v45 }
0x1dba   :  { %v2442_v31 = vpop.f32.mrb[40].mxu1 }
0x1dbb   :  { %v2443_v57 = vadd.f32 %v3480_v27, %v2442_v31  ;;  %v3920_v61 = vpop.f32.mrb[41].mxu1 }
0x1dbc   :  { %v2445_v59 = vpop.f32.mrb[42].mxu1 }
0x1dbd   :  { %v2449_v10 = vadd.f32 %v2443_v57, %v2321_v17  ;;  %v2446_v20 = vadd.f32 %v3480_v27, %v2445_v59  ;;  %v3921_v32 = vpop.f32.mrb[43].mxu1  ;;  %v3494_v17 = vld [vmem:[%s5661_s3 + $0x21] ss:$0 sm:$0xff] }
0x1dbf   :  { %v2450_v38 = vadd.f32 %v2446_v20, %v2322_v14  ;;  %v2453_v30 = vsel %vm5838_vm0, %v2449_v10, 0.0  ;;  %vm5847_vm0 = vcmask 130048  }
0x1dc0   :  { %2454 = vadd.xlane.f32.xlu1 %v2453_v30 }
0x1dc1   :  { %v2456_v7 = vsel %vm5843_vm3, %v2450_v38, 0.0  ;;  %vm5848_vm3 = vmmov %vm5847_vm0 }
0x1dc2   :  { %2457 = vadd.xlane.f32.xlu0 %v2456_v7 }
0x1e4d   :  { %v2455_v8 = vpop.xlane.xlu1 %2454 }
0x1e4e   :  { %v2459_v16 = vmul.f32 0.03125, %v2455_v8 }
0x1e4f   :  { %v2458_v56 = vpop.xlane.xlu0 %2457 }
0x1e50   :  { %v2461_v19 = vsub.f32 %v2449_v10, %v2459_v16  ;;  %v2460_v4 = vmul.f32 0.03125, %v2458_v56  ;;  %v3493_v10 = vld [vmem:[%s5661_s3 + $0x20] ss:$0 sm:$0xff] }
0x1e52   :  { %v2462_v13 = vsub.f32 %v2450_v38, %v2460_v4  ;;  %v2463_v0 = vmul.f32 %v2461_v19, %v2461_v19 }
0x1e54   :  { %v2465_v36 = vsel %vm5844_vm1, %v2463_v0, 0.0  ;;  %v2464_v55 = vmul.f32 %v2462_v13, %v2462_v13 }
0x1e55   :  { %2466 = vadd.xlane.f32.xlu1 %v2465_v36 }
0x1e56   :  { %v2468_v37 = vsel %vm5845_vm11, %v2464_v55, 0.0  ;;  %vm5849_vm11 = vmmov %vm5844_vm1 }
0x1e57   :  { %2469 = vadd.xlane.f32.xlu0 %v2468_v37  ;;  %v3495_v37 = vld [vmem:[%s5661_s3 + $0x22] ss:$0 sm:$0xff] }
0x1e66   :  { %2581 = vrot.lane.b32.xlu1 %v3494_v17, %s4224_s9 }
0x1ee2   :  { %v2467_v14 = vpop.xlane.xlu1 %2466 }
0x1ee3   :  { %v2471_v43 = vmul.f32 0.03125, %v2467_v14 }
0x1ee4   :  { %v2470_v12 = vpop.xlane.xlu0 %2469 }
0x1ee5   :  { %v2473_v42 = vadd.f32 1e-05, %v2471_v43  ;;  %v2472_v35 = vmul.f32 0.03125, %v2470_v12 }
0x1ee6   :  { %v2582_v61 = vpop.permute.xlu1 %2581 }
0x1ee7   :  { %4151 = vrsqrt.f32 %v2473_v42  ;;  %v2474_v24 = vadd.f32 1e-05, %v2472_v35 }
0x1ee9   :  { %4153 = vrsqrt.f32 %v2474_v24 }
0x1ef1   :  { %v4152_v58 = vpop.eup %4151 }
0x1ef2   :  { %v2477_v18 = vmul.f32 %v4152_v58, %v2461_v19 }
0x1ef3   :  { %v4154_v25 = vpop.eup %4153 }
0x1ef4   :  { %v2483_v44 = vmul.f32 %v3484_v9, %v2477_v18  ;;  %v2478_v28 = vmul.f32 %v4154_v25, %v2462_v13 }
0x1ef6   :  { %v2484_v1 = vmul.f32 %v3484_v9, %v2478_v28  ;;  %v5399_v27 = vadd.f32 %v3485_v22, %v2483_v44 }
0x1ef8   :  { %v5401_v31 = vadd.f32 %v3485_v22, %v2484_v1 }
0x1efa   :  { %v2506_v57 = vpack.c.bf16 %v5401_v31, %v5399_v27 }
0x1efc   :  { %3927 = vmatmul.mubr.msk.bf16.vlgmr.msra.gmra.mrb[44].mxu0 %vm5846_vm8, %v2506_v57  ;;  %vm5850_vm8 = vcmask 654336  }
0x1efd   :  { %3954 = vmatprep.mubr.msk.bf16.mxu0 %vm5756_vm9, %v5783_v45 }
0x1fcf   :  { %v5408_v59 = vpop.f32.mrb[44].mxu0 }
0x1fd0   :  { %v2584_v20 = vadd.f32 %v2582_v61, %v5408_v59  ;;  %v3928_v32 = vpop.f32.mrb[45].mxu0  ;;  %v5417_v30 = vadd.f32 %v3493_v10, %v5408_v59 }
0x1fd1   :  { %v5414_v38 = vpop.f32.mrb[46].mxu0 }
0x1fd2   :  { %v5420_v7 = vadd.f32 %v3493_v10, %v5414_v38  ;;  %v2585_v8 = vadd.f32 %v2582_v61, %v5414_v38  ;;  %2599 = vrot.lane.b32.xlu0 %v2584_v20, %s4225_s14  ;;  %v3929_v16 = vpop.f32.mrb[47].mxu0 }
0x1fd4   :  { %v2783_v56 = vpack.c.bf16 %v5420_v7, %v5417_v30  ;;  %2601 = vrot.lane.b32.xlu1 %v2585_v8, %s4225_s14 }
0x2044   :  { %v2600_v19 = vpop.permute.xlu0 %2599 }
0x2045   :  { %2605 = vxpose.xlu1.b32.start [1/2] (short) (narrow) %v2600_v19, 32 }
0x2046   :  { %v2602_v4 = vpop.permute.xlu1 %2601 }
0x2049   :  { %2606 = vxpose.xlu1.b32.end [2/2] (short) (narrow) %v2602_v4, 32 }
0x20c5   :  { %v2621_v13 = vpop.trf.xlu1 }
0x20c6   :  { %2641 = vrot.lane.b32.xlu0 %v2621_v13, %s4226_s15 }
0x20c9   :  { %v2622_v0 = vpop.trf.xlu1 }
0x20ca   :  { %2653 = vrot.lane.b32.xlu0 %v2621_v13, %s4224_s9  ;;  %2691 = vrot.lane.b32.xlu1 %v2622_v0, %s4227_s16 }
0x20cd   :  { %v5430_v36 = vpop.trf.xlu1 }
0x20ce   :  { %2665 = vrot.lane.b32.xlu0 %v2621_v13, %s4228_s17 }
0x20d1   :  { %v5433_v55 = vpop.trf.xlu1 }
0x20d2   :  { %2677 = vrot.lane.b32.xlu0 %v2621_v13, %s4220_s25  ;;  %2683 = vrot.lane.b32.xlu1 %v5433_v55, %s4220_s25 }
0x20d6   :  { %2689 = vrot.lane.b32.xlu0 %v2621_v13, %s4227_s16  ;;  %2695 = vrot.lane.b32.xlu1 %v5433_v55, %s4227_s16 }
0x20da   :  { %2701 = vrot.lane.b32.xlu0 %v2621_v13, %s4225_s14  ;;  %2707 = vrot.lane.b32.xlu1 %v5433_v55, %s4225_s14 }
0x20de   :  { %2713 = vrot.lane.b32.xlu0 %v2621_v13, %s4229_s18  ;;  %2719 = vrot.lane.b32.xlu1 %v5433_v55, %s4229_s18 }
0x20e2   :  { %2643 = vrot.lane.b32.xlu0 %v2622_v0, %s4226_s15 }
0x20e6   :  { %2655 = vrot.lane.b32.xlu0 %v2622_v0, %s4224_s9 }
0x20ea   :  { %2667 = vrot.lane.b32.xlu0 %v2622_v0, %s4228_s17 }
0x20ee   :  { %2679 = vrot.lane.b32.xlu0 %v2622_v0, %s4220_s25 }
0x20f2   :  { %2703 = vrot.lane.b32.xlu0 %v2622_v0, %s4225_s14 }
0x20f6   :  { %2715 = vrot.lane.b32.xlu0 %v2622_v0, %s4229_s18 }
0x20fa   :  { %2645 = vrot.lane.b32.xlu0 %v5430_v36, %s4226_s15 }
0x20fe   :  { %2657 = vrot.lane.b32.xlu0 %v5430_v36, %s4224_s9 }
0x2102   :  { %2669 = vrot.lane.b32.xlu0 %v5430_v36, %s4228_s17 }
0x2106   :  { %2681 = vrot.lane.b32.xlu0 %v5430_v36, %s4220_s25 }
0x210a   :  { %2693 = vrot.lane.b32.xlu0 %v5430_v36, %s4227_s16 }
0x210e   :  { %2705 = vrot.lane.b32.xlu0 %v5430_v36, %s4225_s14 }
0x2112   :  { %2647 = vrot.lane.b32.xlu0 %v5433_v55, %s4226_s15 }
0x2116   :  { %2659 = vrot.lane.b32.xlu0 %v5433_v55, %s4224_s9 }
0x211a   :  { %2671 = vrot.lane.b32.xlu0 %v5433_v55, %s4228_s17 }
0x211e   :  { %2717 = vrot.lane.b32.xlu0 %v5430_v36, %s4229_s18 }
0x2122   :  { %2592 = vrot.lane.b32.xlu0 %v3495_v37, %s4220_s25 }
0x2138   :  { %v2642_v29 = vpop.permute.xlu0 %2641 }
0x2139   :  { %v2725_v18 = vsel %vm5847_vm0, %v2621_v13, %v2642_v29  ;;  %vm5852_vm0 = vcmask 916480  }
0x213c   :  { %v2654_v11 = vpop.permute.xlu0 %2653  ;;  %v2692_v8 = vpop.permute.xlu1 %2691 }
0x213d   :  { %v2729_v44 = vsel %vm5844_vm1, %v2725_v18, %v2654_v11  ;;  %vm5854_vm1 = vmmov %vm5851_vm7 }
0x2140   :  { %v2666_v17 = vpop.permute.xlu0 %2665 }
0x2141   :  { %v2733_v22 = vsel %vm449_vm5, %v2729_v44, %v2666_v17 }
0x2144   :  { %v2678_v14 = vpop.permute.xlu0 %2677 }
0x2145   :  { %v2737_v57 = vsel %vm454_vm6, %v2733_v22, %v2678_v14 }
0x2148   :  { %v2690_v43 = vpop.permute.xlu0 %2689 }
0x2149   :  { %v2741_v20 = vsel %vm5850_vm8, %v2737_v57, %v2690_v43 }
0x214c   :  { %v2702_v12 = vpop.permute.xlu0 %2701 }
0x214d   :  { %v2745_v32 = vsel %vm5851_vm7, %v2741_v20, %v2702_v12  ;;  %vm5856_vm7 = vcmask 130048  }
0x2150   :  { %v2714_v42 = vpop.permute.xlu0 %2713 }
0x2151   :  { %v2749_v16 = vsel %vm5852_vm0, %v2745_v32, %v2714_v42 }
0x2152   :  { %v2753_v37 = vmul.f32 %v2749_v16, %v4627_v52 }
0x2154   :  { %v2644_v35 = vpop.permute.xlu0 %2643 }
0x2155   :  { %v2726_v25 = vsel %vm5848_vm3, %v2622_v0, %v2644_v35  ;;  %vm5853_vm3 = vmmov %vm5850_vm8  ;;  %v2684_v35 = vpop.permute.xlu1 %2683 }
0x2156   :  { %vm5857_vm8 = vmmov %vm5856_vm7 }
0x2158   :  { %v2656_v24 = vpop.permute.xlu0 %2655 }
0x2159   :  { %v2730_v28 = vsel %vm5849_vm11, %v2726_v25, %v2656_v24  ;;  %vm5855_vm11 = vmmov %vm5852_vm0  ;;  %vm5858_vm0 = vcmask 261120  }
0x215c   :  { %v2668_v58 = vpop.permute.xlu0 %2667 }
0x215d   :  { %v2734_v1 = vsel %vm449_vm5, %v2730_v28, %v2668_v58  ;;  %v2696_v58 = vpop.permute.xlu1 %2695 }
0x2160   :  { %v2680_v9 = vpop.permute.xlu0 %2679 }
0x2161   :  { %v2738_v61 = vsel %vm454_vm6, %v2734_v1, %v2680_v9  ;;  %v2708_v25 = vpop.permute.xlu1 %2707 }
0x2162   :  { %v2742_v19 = vsel %vm5853_vm3, %v2738_v61, %v2692_v8  ;;  %vm5859_vm3 = vmmov %vm5858_vm0 }
0x2164   :  { %v2704_v10 = vpop.permute.xlu0 %2703 }
0x2165   :  { %v2746_v4 = vsel %vm5854_vm1, %v2742_v19, %v2704_v10  ;;  %vm5860_vm1 = vcmask 654336  }
0x2168   :  { %v2716_v13 = vpop.permute.xlu0 %2715 }
0x2169   :  { %v2750_v0 = vsel %vm5855_vm11, %v2746_v4, %v2716_v13  ;;  %vm5861_vm11 = vmmov %vm5860_vm1 }
0x216a   :  { %v2754_v29 = vmul.f32 %v2750_v0, %v4632_v54 }
0x216c   :  { %v2757_v11 = vpack.c.bf16 %v2754_v29, %v2753_v37  ;;  %v2646_v17 = vpop.permute.xlu0 %2645 }
0x216d   :  { %v2727_v52 = vsel %vm5856_vm7, %v5430_v36, %v2646_v17  ;;  %vm5862_vm7 = vcmask 785408  }
0x216e   :  { %3931 = vmatpush3.bf16.msra.mxu1 %v2757_v11 }
0x216f   :  { %3932 = vmatprep.subr.bf16.mxu1 %v5783_v45 }
0x2170   :  { %v2658_v14 = vpop.permute.xlu0 %2657 }
0x2171   :  { %v2731_v44 = vsel %vm5858_vm0, %v2727_v52, %v2658_v14  ;;  %vm5864_vm0 = vcmask 916480   ;;  %v5866_v14 = vld [vmem:[#allocation13_spill] sm:$0xff] }
0x2174   :  { %v2670_v43 = vpop.permute.xlu0 %2669 }
0x2175   :  { %v2735_v1 = vsel %vm449_vm5, %v2731_v44, %v2670_v43 }
0x2178   :  { %v2682_v12 = vpop.permute.xlu0 %2681 }
0x2179   :  { %v2739_v61 = vsel %vm454_vm6, %v2735_v1, %v2682_v12  ;;  %v5867_v12 = vld [vmem:[#allocation12_spill] sm:$0xff] }
0x217c   :  { %v2694_v42 = vpop.permute.xlu0 %2693 }
0x217d   :  { %v2743_v20 = vsel %vm5860_vm1, %v2739_v61, %v2694_v42 }
0x2180   :  { %v2706_v24 = vpop.permute.xlu0 %2705 }
0x2181   :  { %v2747_v32 = vsel %vm5862_vm7, %v2743_v20, %v2706_v24 }
0x2184   :  { %v2648_v9 = vpop.permute.xlu0 %2647 }
0x2185   :  { %v2728_v54 = vsel %vm5857_vm8, %v5433_v55, %v2648_v9  ;;  %v2720_v55 = vpop.permute.xlu1 %2719  ;;  %vm5863_vm8 = vmmov %vm5862_vm7 }
0x2188   :  { %v2660_v18 = vpop.permute.xlu0 %2659 }
0x2189   :  { %v2732_v28 = vsel %vm5859_vm3, %v2728_v54, %v2660_v18  ;;  %vm5865_vm3 = vmmov %vm5864_vm0 }
0x218c   :  { %v2672_v22 = vpop.permute.xlu0 %2671 }
0x218d   :  { %v2736_v57 = vsel %vm449_vm5, %v2732_v28, %v2672_v22  ;;  %vm5871_vm5 = vcmask 261120  }
0x218e   :  { %v2740_v10 = vsel %vm454_vm6, %v2736_v57, %v2684_v35  ;;  %v5868_v35 = vld [vmem:[#allocation10_spill] sm:$0xff]  ;;  %vm5873_vm6 = vnez %v5744_v33 }
0x218f   :  { %v2744_v36 = vsel %vm5861_vm11, %v2740_v10, %v2696_v58 }
0x2190   :  { %v2748_v8 = vsel %vm5863_vm8, %v2744_v36, %v2708_v25  ;;  %v2718_v16 = vpop.permute.xlu0 %2717 }
0x2191   :  { %v2751_v19 = vsel %vm5864_vm0, %v2747_v32, %v2718_v16  ;;  %v2752_v4 = vsel %vm5865_vm3, %v2748_v8, %v2720_v55  ;;  %vm5887_vm0 = vcmask 130048  }
0x2192   :  { %v2755_v13 = vmul.f32 %v2751_v19, %v4654_v48  ;;  %v2756_v0 = vmul.f32 %v2752_v4, %v4657_v51  ;;  %v5869_v51 = vld [vmem:[#allocation11_spill] sm:$0xff]  ;;  %v4099_v19 = vld [vmem:[#allocation2 + $0x90] sm:$0xff]  }
0x2193   :  { %v4100_v4 = vld [vmem:[#allocation2 + $0x98] sm:$0xff]  }
0x2194   :  { %v2758_v37 = vpack.c.bf16 %v2756_v0, %v2755_v13  ;;  %v2593_v29 = vpop.permute.xlu0 %2592 }
0x2195   :  { %v2595_v11 = vadd.f32 %v2593_v29, %v5408_v59  ;;  %v2596_v17 = vadd.f32 %v2593_v29, %v5414_v38  ;;  %v5870_v59 = vld [vmem:[#allocation14_spill] sm:$0xff] }
0x2196   :  { %3933 = vmatpush3.bf16.msra.mxu1 %v2758_v37 }
0x2197   :  { %v2761_v43 = vmul.f32 %v5866_v14, %v2595_v11  ;;  %v2762_v42 = vmul.f32 %v5867_v12, %v2596_v17  ;;  %v2759_v24 = vmul.f32 %v5868_v35, %v2595_v11  ;;  %v2760_v58 = vmul.f32 %v4663_v50, %v2596_v17  ;;  %3958 = vmatprep.subr.bf16.mxu1 %v5783_v45 }
0x2198   :  { %v2763_v48 = vmul.f32 %v4671_v62, %v2595_v11  ;;  %v2764_v9 = vmul.f32 %v5869_v51, %v2596_v17  ;;  %v2765_v18 = vmul.f32 %v4713_v21, %v2595_v11  ;;  %v2766_v25 = vmul.f32 %v5870_v59, %v2596_v17 }
0x2199   :  { %3935 = vmatmul.mubr.msk.bf16.vlgmr.msra.gmra.mrb[44].mxu1 %vm5871_vm5, %v2783_v56  ;;  %v2776_v38 = vpack.c.bf16 %v2762_v42, %v2761_v43  ;;  %v2775_v52 = vpack.c.bf16 %v2760_v58, %v2759_v24  ;;  %v2767_v54 = vmul.f32 %v4675_v3, %v2595_v11  ;;  %v2768_v50 = vmul.f32 %v4673_v63, %v2596_v17  ;;  %v5872_v56 = vld [vmem:[#allocation15_spill] sm:$0xff] }
0x219a   :  { %v2777_v44 = vpack.c.bf16 %v2764_v9, %v2763_v48  ;;  %v2778_v28 = vpack.c.bf16 %v2766_v25, %v2765_v18  ;;  %v2771_v62 = vmul.f32 %v4679_v6, %v2595_v11  ;;  %v2772_v22 = vmul.f32 %v4677_v5, %v2596_v17  ;;  %3959 = vmatpush3.bf16.msk.msra.mxu1 %vm5759_vm12, %v5796_v26  ;;  %v3513_v48 = vld [vmem:[%s5661_s3 + $0x23] ss:$0 sm:$0xff] }
0x219b   :  { %2849 = vrot.lane.b32.xlu1 %v2776_v38, %s4220_s25  ;;  %2847 = vrot.lane.b32.xlu0 %v2775_v52, %s4220_s25  ;;  %v2779_v21 = vpack.c.bf16 %v2768_v50, %v2767_v54  ;;  %v2769_v30 = vmul.f32 %v4720_v40, %v2595_v11  ;;  %v2770_v3 = vmul.f32 %v4718_v34, %v2596_v17 }
0x219c   :  { %v2781_v63 = vpack.c.bf16 %v2772_v22, %v2771_v62  ;;  %v2773_v7 = vmul.f32 %v4728_v49, %v2595_v11  ;;  %v2774_v6 = vmul.f32 %v5872_v56, %v2596_v17  ;;  %3960 = vmatprep.subr.bf16.mxu1 %v5783_v45  ;;  %3974 = vmatprep.mubr.msk.bf16.mxu1 %vm5756_vm9, %v5783_v45 }
0x219d   :  { %v2780_v39 = vpack.c.bf16 %v2770_v3, %v2769_v30 }
0x219e   :  { %v2782_v5 = vpack.c.bf16 %v2774_v6, %v2773_v7  ;;  %3961 = vmatpush3.bf16.msk.msra.mxu1 %vm5760_vm13, %v5796_v26  ;;  %v4102_v6 = vld [vmem:[#allocation2 + $0xa8] sm:$0xff]  }
0x219f   :  { %2851 = vrot.lane.b32.xlu1 %v2777_v44, %s4220_s25  ;;  %2853 = vrot.lane.b32.xlu0 %v2778_v28, %s4220_s25 }
0x21a0   :  { %3962 = vmatprep.subr.bf16.mxu1 %v5783_v45 }
0x21a2   :  { %3963 = vmatpush3.bf16.msk.msra.mxu1 %vm5761_vm14, %v5796_v26 }
0x21a3   :  { %2855 = vrot.lane.b32.xlu1 %v2779_v21, %s4220_s25  ;;  %3964 = vmatprep.subr.bf16.mxu1 %v5783_v45 }
0x21a6   :  { %3965 = vmatpush3.bf16.msk.msra.mxu1 %vm5762_vm15, %v5796_v26 }
0x21a7   :  { %3966 = vmatprep.subr.bf16.mxu1 %v5783_v45 }
0x21aa   :  { %3967 = vmatpush3.bf16.msk.msra.mxu1 %vm5763_vm2, %v5796_v26 }
0x21ab   :  { %3968 = vmatprep.subr.bf16.mxu1 %v5783_v45 }
0x21ae   :  { %3969 = vmatpush3.bf16.msk.msra.mxu1 %vm4466_vm4, %v5796_v26  ;;  %vm5874_vm4 = vmmov %vm5871_vm5  ;;  %vm3339_vm5 = vcmask 254976  }
0x21af   :  { %3970 = vmatprep.subr.bf16.mxu1 %v5783_v45  ;;  %vm5875_vm12 = vmmov %vm5874_vm4 }
0x21b0   :  { %vm5876_vm13 = vmmov %vm5874_vm4 }
0x21b1   :  { %vm5877_vm14 = vmmov %vm5874_vm4 }
0x21b2   :  { %3971 = vmatpush3.bf16.msk.msra.mxu1 %vm5829_vm10, %v5796_v26  ;;  %vm5878_vm15 = vmmov %vm5874_vm4 }
0x21b3   :  { %3972 = vmatprep.subr.bf16.mxu1 %v5783_v45  ;;  %vm5879_vm2 = vmmov %vm5874_vm4 }
0x21b4   :  { %vm5880_vm10 = vmmov %vm5879_vm2 }
0x21b5   :  { %vm5881_vm1 = vmmov %vm5879_vm2 }
0x21b6   :  { %3973 = vmatpush3.bf16.msk.msra.mxu1 %vm5873_vm6, %v5796_v26  ;;  %vm5882_vm11 = vmmov %vm5881_vm1 }
0x21b7   :  { %3986 = vmatprep.subr.bf16.mxu1 %v5783_v45  ;;  %vm5884_vm7 = vmmov %vm5881_vm1 }
0x21b8   :  { %vm5888_vm3 = vmmov %vm5881_vm1 }
0x220d   :  { %v2848_v46 = vpop.permute.xlu0 %2847  ;;  %v2850_v53 = vpop.permute.xlu1 %2849 }
0x220e   :  { %3939 = vmatpush3.bf16.msra.mxu0 %v2848_v46 }
0x220f   :  { %3940 = vmatprep.subr.bf16.mxu0 %v5783_v45 }
0x2211   :  { %v2852_v2 = vpop.permute.xlu1 %2851  ;;  %v2854_v60 = vpop.permute.xlu0 %2853 }
0x2212   :  { %3941 = vmatpush3.bf16.msra.mxu0 %v2850_v53 }
0x2213   :  { %3942 = vmatprep.subr.bf16.mxu0 %v5783_v45 }
0x2215   :  { %v2856_v15 = vpop.permute.xlu1 %2855 }
0x2216   :  { %3943 = vmatpush3.bf16.msra.mxu0 %v2852_v2 }
0x2217   :  { %3944 = vmatprep.subr.bf16.mxu0 %v5783_v45 }
0x221a   :  { %3945 = vmatpush3.bf16.msra.mxu0 %v2854_v60 }
0x221b   :  { %3946 = vmatprep.subr.bf16.mxu0 %v5783_v45 }
0x221e   :  { %3947 = vmatpush3.bf16.msra.mxu0 %v2856_v15 }
0x221f   :  { %3948 = vmatprep.subr.bf16.mxu0 %v5783_v45 }
0x226c   :  { %v2821_v23 = vpop.f32.mrb[44].mxu1 }
0x226d   :  { %v2822_v33 = vadd.f32 %v2821_v23, %v4773_v41  ;;  %v3936_v34 = vpop.f32.mrb[45].mxu1  ;;  %v3517_v23 = vld [vmem:[%s5661_s3 + $0x24] ss:$0 sm:$0xff] }
0x226e   :  { %v2824_v40 = vpop.f32.mrb[46].mxu1 }
0x226f   :  { %v2825_v49 = vadd.f32 %v2824_v40, %v4775_v47  ;;  %2828 = vmax.xlane.f32.xlu1 %v2822_v33  ;;  %v3937_v26 = vpop.f32.mrb[47].mxu1 }
0x2270   :  { %v3518_v26 = vld [vmem:[%s5661_s3 + $0x25] ss:$0 sm:$0xff] }
0x2271   :  { %2830 = vmax.xlane.f32.xlu0 %v2825_v49 }
0x2280   :  { %2859 = vrot.lane.b32.xlu1 %v2781_v63, %s4220_s25 }
0x2287   :  { %2857 = vrot.lane.b32.xlu0 %v2780_v39, %s4220_s25 }
0x228b   :  { %2861 = vrot.lane.b32.xlu0 %v2782_v5, %s4220_s25 }
0x22fc   :  { %v2829_v1 = vpop.xlane.xlu1 %2828 }
0x22fd   :  { %v2832_v57 = vsub.f32 %v2822_v33, %v2829_v1 }
0x22fe   :  { %v2831_v61 = vpop.xlane.xlu0 %2830 }
0x22ff   :  { %v2834_v10 = vmul.f32 1.442695, %v2832_v57  ;;  %v2833_v20 = vsub.f32 %v2825_v49, %v2831_v61 }
0x2300   :  { %v2860_v47 = vpop.permute.xlu1 %2859 }
0x2301   :  { %v2836_v36 = vmul.f32 1.442695, %v2833_v20  ;;  %4155 = vpow2.f32 %v2834_v10  ;;  %v4103_v20 = vld [vmem:[#allocation2 + $0xb0] sm:$0xff]  }
0x2302   :  { %v2858_v41 = vpop.permute.xlu0 %2857 }
0x2303   :  { %4157 = vpow2.f32 %v2836_v36  ;;  %3949 = vmatpush3.bf16.msra.mxu0 %v2858_v41  ;;  %v4104_v36 = vld [vmem:[#allocation2 + $0xb8] sm:$0xff]   ;;  %v3519_v41 = vld [vmem:[%s5661_s3 + $0x26] ss:$0 sm:$0xff] }
0x2304   :  { %3950 = vmatprep.subr.bf16.mxu0 %v5783_v45 }
0x2306   :  { %v2862_v32 = vpop.permute.xlu0 %2861 }
0x2307   :  { %3951 = vmatpush3.bf16.msra.mxu0 %v2860_v47 }
0x2308   :  { %3952 = vmatprep.subr.bf16.mxu0 %v5783_v45 }
0x230b   :  { %3953 = vmatpush3.bf16.msra.mxu0 %v2862_v32  ;;  %v4156_v55 = vpop.eup %4155 }
0x230c   :  { %3978 = vmatprep.subr.bf16.mxu0 %v5783_v45 }
0x230d   :  { %v4158_v8 = vpop.eup %4157 }
0x230e   :  { %v2838_v16 = vpack.c.bf16 %v4158_v8, %v4156_v55 }
0x2310   :  { %3955 = vmatmul.mubr.bf16.vlgmr.msra.gmra.mrb[48].mxu0 %v2838_v16  ;;  %3975 = vmatmul.mubr.bf16.vlgmr.msra.gmra.mrb[48].mxu1 %v2838_v16 }
0x2311   :  { %3982 = vmatprep.mubr.msk.bf16.mxu0 %vm5756_vm9, %v5783_v45  ;;  %3990 = vmatprep.mubr.msk.bf16.mxu1 %vm5756_vm9, %v5783_v45 }
0x2312   :  { %3979 = vmatpush3.bf16.msra.mxu0 %v4099_v19 }
0x2313   :  { %3980 = vmatprep.subr.bf16.mxu0 %v5783_v45 }
0x2316   :  { %3981 = vmatpush3.bf16.msra.mxu0 %v4100_v4 }
0x2317   :  { %3994 = vmatprep.subr.bf16.mxu0 %v5783_v45 }
0x23e3   :  { %v2905_v13 = vpop.f32.mrb[48].mxu0  ;;  %v2946_v0 = vpop.f32.mrb[48].mxu1 }
0x23e4   :  { %4159 = vrcp.f32 %v2946_v0  ;;  %v3956_v37 = vpop.f32.mrb[49].mxu0  ;;  %v3976_v29 = vpop.f32.mrb[49].mxu1 }
0x23e5   :  { %v2908_v11 = vpop.f32.mrb[50].mxu0  ;;  %v2949_v17 = vpop.f32.mrb[50].mxu1  ;;  %v3523_v37 = vld [vmem:[%s5661_s3 + $0x27] ss:$0 sm:$0xff] }
0x23e6   :  { %4161 = vrcp.f32 %v2949_v17  ;;  %v3957_v14 = vpop.f32.mrb[51].mxu0  ;;  %v3977_v43 = vpop.f32.mrb[51].mxu1 }
0x23ee   :  { %v4160_v12 = vpop.eup %4159 }
0x23ef   :  { %v2955_v42 = vmul.f32 %v4160_v12, %v2905_v13 }
0x23f0   :  { %v4162_v35 = vpop.eup %4161 }
0x23f1   :  { %v2956_v24 = vmul.f32 %v4162_v35, %v2908_v11 }
0x23f3   :  { %v2957_v58 = vpack.c.bf16 %v2956_v24, %v2955_v42 }
0x23f5   :  { %3983 = vmatmul.mubr.msk.bf16.vlgmr.msra.gmra.mrb[52].mxu0 %vm5874_vm4, %v2957_v58 }
0x23f6   :  { %3998 = vmatprep.mubr.msk.bf16.mxu0 %vm5756_vm9, %v5783_v45  ;;  %3995 = vmatpush3.bf16.msra.mxu0 %v4103_v20 }
0x23f7   :  { %3996 = vmatprep.subr.bf16.mxu0 %v5783_v45 }
0x23fa   :  { %3997 = vmatpush3.bf16.msra.mxu0 %v4104_v36 }
0x23fb   :  { %4008 = vmatprep.subr.bf16.mxu0 %v5783_v45 }
0x24c8   :  { %v3012_v51 = vpop.f32.mrb[52].mxu0 }
0x24c9   :  { %v3013_v9 = vadd.f32 %v3513_v48, %v3012_v51  ;;  %v3984_v18 = vpop.f32.mrb[53].mxu0 }
0x24ca   :  { %v3015_v59 = vpop.f32.mrb[54].mxu0 }
0x24cb   :  { %v3019_v25 = vadd.f32 %v3013_v9, %v5399_v27  ;;  %v3016_v38 = vadd.f32 %v3513_v48, %v3015_v59  ;;  %v3985_v52 = vpop.f32.mrb[55].mxu0 }
0x24cd   :  { %v3020_v54 = vadd.f32 %v3016_v38, %v5401_v31  ;;  %v3023_v50 = vsel %vm5875_vm12, %v3019_v25, 0.0  ;;  %v4101_v31 = vld [vmem:[#allocation2 + $0xa0] sm:$0xff]  }
0x24ce   :  { %3024 = vadd.xlane.f32.xlu1 %v3023_v50  ;;  %3987 = vmatpush3.bf16.msra.mxu1 %v4101_v31 }
0x24cf   :  { %v3026_v44 = vsel %vm5876_vm13, %v3020_v54, 0.0  ;;  %3988 = vmatprep.subr.bf16.mxu1 %v5783_v45 }
0x24d0   :  { %3027 = vadd.xlane.f32.xlu0 %v3026_v44  ;;  %v4105_v44 = vld [vmem:[#allocation2 + $0xd0] sm:$0xff]  }
0x24d2   :  { %3989 = vmatpush3.bf16.msra.mxu1 %v4102_v6 }
0x24d3   :  { %4002 = vmatprep.subr.bf16.mxu1 %v5783_v45 }
0x255b   :  { %v3025_v28 = vpop.xlane.xlu1 %3024 }
0x255c   :  { %v3029_v62 = vmul.f32 0.03125, %v3025_v28 }
0x255d   :  { %v3028_v22 = vpop.xlane.xlu0 %3027 }
0x255e   :  { %v3031_v21 = vsub.f32 %v3019_v25, %v3029_v62  ;;  %v3030_v30 = vmul.f32 0.03125, %v3028_v22 }
0x2560   :  { %v3032_v3 = vsub.f32 %v3020_v54, %v3030_v30  ;;  %v3033_v63 = vmul.f32 %v3031_v21, %v3031_v21 }
0x2562   :  { %v3035_v7 = vsel %vm5877_vm14, %v3033_v63, 0.0  ;;  %v3034_v27 = vmul.f32 %v3032_v3, %v3032_v3 }
0x2563   :  { %3036 = vadd.xlane.f32.xlu0 %v3035_v7  ;;  %v3527_v7 = vld [vmem:[%s5661_s3 + $0x28] ss:$0 sm:$0xff] }
0x2564   :  { %v3038_v56 = vsel %vm5878_vm15, %v3034_v27, 0.0  ;;  %v5885_v27 = vld [vmem:[#allocation9_spill] sm:$0xff] }
0x2565   :  { %3039 = vadd.xlane.f32.xlu1 %v3038_v56  ;;  %v130_v56 = vshra.s32 %v5885_v27, 3 }
0x25f0   :  { %v3037_v39 = vpop.xlane.xlu0 %3036 }
0x25f1   :  { %v3041_v5 = vmul.f32 0.03125, %v3037_v39 }
0x25f2   :  { %v3040_v46 = vpop.xlane.xlu1 %3039 }
0x25f3   :  { %v3043_v53 = vadd.f32 1e-05, %v3041_v5  ;;  %v3042_v2 = vmul.f32 0.03125, %v3040_v46  ;;  %v3528_v46 = vld [vmem:[%s5661_s3 + $0x29] ss:$0 sm:$0xff] }
0x25f5   :  { %4163 = vrsqrt.f32 %v3043_v53  ;;  %v3044_v60 = vadd.f32 1e-05, %v3042_v2  ;;  %v5886_v53 = vld [vmem:[#allocation8_spill] sm:$0xff] }
0x25f6   :  { %vm131_vm8 = vcmp.eq.s32.totalorder %v5886_v53, %v130_v56 }
0x25f7   :  { %4165 = vrsqrt.f32 %v3044_v60 }
0x25ff   :  { %v4164_v15 = vpop.eup %4163 }
0x2600   :  { %v3047_v33 = vmul.f32 %v4164_v15, %v3031_v21 }
0x2601   :  { %v4166_v34 = vpop.eup %4165 }
0x2602   :  { %v3053_v40 = vmul.f32 %v3517_v23, %v3047_v33  ;;  %v3048_v49 = vmul.f32 %v4166_v34, %v3032_v3 }
0x2604   :  { %v3054_v1 = vmul.f32 %v3517_v23, %v3048_v49  ;;  %v3059_v57 = vadd.f32 %v3518_v26, %v3053_v40  ;;  %v132_v23 = vsel %vm131_vm8, 0.125, %v5783_v45  ;;  %v4106_v40 = vld [vmem:[#allocation2 + $0xd8] sm:$0xff]  }
0x2605   :  { %v133_v34 = vpack.c.bf16 %v132_v23, %v132_v23 }
0x2606   :  { %v3060_v61 = vadd.f32 %v3518_v26, %v3054_v1 }
0x2608   :  { %v3061_v10 = vpack.c.bf16 %v3060_v61, %v3059_v57 }
0x260a   :  { %3991 = vmatmul.mubr.msk.bf16.vlgmr.msra.gmra.mrb[52].mxu1 %vm5879_vm2, %v3061_v10  ;;  %v3530_v10 = vld [vmem:[%s5661_s3 + $0x1] ss:$0 sm:$0xff] }
0x260b   :  { %4004 = vmatprep.mubr.msk.bf16.mxu1 %vm5756_vm9, %v5783_v45 }
0x26dd   :  { %v3116_v47 = vpop.f32.mrb[52].mxu1 }
0x26de   :  { %v3117_v32 = vadd.f32 %v3519_v41, %v3116_v47  ;;  %v3992_v55 = vpop.f32.mrb[53].mxu1 }
0x26df   :  { %v3119_v8 = vpop.f32.mrb[54].mxu1 }
0x26e0   :  { %v3120_v16 = vadd.f32 %v3519_v41, %v3119_v8  ;;  %v3993_v19 = vpop.f32.mrb[55].mxu1  ;;  %v3123_v4 = vmax.f32 %v3117_v32, 0.0 }
0x26e2   :  { %v3124_v13 = vmax.f32 %v3120_v16, 0.0 }
0x26e4   :  { %v3125_v0 = vpack.c.bf16 %v3124_v13, %v3123_v4 }
0x26e6   :  { %3999 = vmatmul.mubr.msk.bf16.vlgmr.msra.gmra.mrb[56].mxu0 %vm5880_vm10, %v3125_v0 }
0x26e7   :  { %4012 = vmatprep.mubr.msk.bf16.mxu0 %vm5756_vm9, %v5783_v45  ;;  %vm5883_vm9 = vmmov %vm5881_vm1  ;;  %4009 = vmatpush3.bf16.msra.mxu0 %v4105_v44 }
0x26e8   :  { %4010 = vmatprep.subr.bf16.mxu0 %v5783_v45 }
0x26eb   :  { %4011 = vmatpush3.bf16.msra.mxu0 %v4106_v40 }
0x27b9   :  { %v3180_v29 = vpop.f32.mrb[56].mxu0 }
0x27ba   :  { %v3181_v11 = vadd.f32 %v3523_v37, %v3180_v29  ;;  %v4000_v17 = vpop.f32.mrb[57].mxu0 }
0x27bb   :  { %v3183_v14 = vpop.f32.mrb[58].mxu0 }
0x27bc   :  { %v3187_v43 = vadd.f32 %v3181_v11, %v3059_v57  ;;  %v3184_v12 = vadd.f32 %v3523_v37, %v3183_v14  ;;  %v4001_v42 = vpop.f32.mrb[59].mxu0 }
0x27be   :  { %v3188_v35 = vadd.f32 %v3184_v12, %v3060_v61  ;;  %v3191_v24 = vsel %vm5881_vm1, %v3187_v43, 0.0 }
0x27bf   :  { %3192 = vadd.xlane.f32.xlu0 %v3191_v24 }
0x27c0   :  { %v3194_v58 = vsel %vm5882_vm11, %v3188_v35, 0.0 }
0x27c1   :  { %3195 = vadd.xlane.f32.xlu1 %v3194_v58 }
0x284c   :  { %v3193_v48 = vpop.xlane.xlu0 %3192 }
0x284d   :  { %v3197_v51 = vmul.f32 0.03125, %v3193_v48 }
0x284e   :  { %v3196_v9 = vpop.xlane.xlu1 %3195 }
0x284f   :  { %v3199_v18 = vsub.f32 %v3187_v43, %v3197_v51  ;;  %v3198_v59 = vmul.f32 0.03125, %v3196_v9 }
0x2851   :  { %v3200_v25 = vsub.f32 %v3188_v35, %v3198_v59  ;;  %v3201_v38 = vmul.f32 %v3199_v18, %v3199_v18 }
0x2853   :  { %v3203_v52 = vsel %vm5883_vm9, %v3201_v38, 0.0  ;;  %v3202_v54 = vmul.f32 %v3200_v25, %v3200_v25 }
0x2854   :  { %3204 = vadd.xlane.f32.xlu0 %v3203_v52 }
0x2855   :  { %v3206_v50 = vsel %vm5884_vm7, %v3202_v54, 0.0 }
0x2856   :  { %3207 = vadd.xlane.f32.xlu1 %v3206_v50 }
0x28e1   :  { %v3205_v28 = vpop.xlane.xlu0 %3204 }
0x28e2   :  { %v3209_v62 = vmul.f32 0.03125, %v3205_v28 }
0x28e3   :  { %v3208_v22 = vpop.xlane.xlu1 %3207 }
0x28e4   :  { %v3211_v21 = vadd.f32 1e-05, %v3209_v62  ;;  %v3210_v30 = vmul.f32 0.03125, %v3208_v22 }
0x28e6   :  { %4167 = vrsqrt.f32 %v3211_v21  ;;  %v3212_v3 = vadd.f32 1e-05, %v3210_v30 }
0x28e8   :  { %4169 = vrsqrt.f32 %v3212_v3 }
0x28f0   :  { %v4168_v63 = vpop.eup %4167 }
0x28f1   :  { %v3215_v31 = vmul.f32 %v4168_v63, %v3199_v18 }
0x28f2   :  { %v4170_v6 = vpop.eup %4169 }
0x28f3   :  { %v3216_v39 = vmul.f32 %v4170_v6, %v3200_v25  ;;  %v3221_v5 = vmul.f32 %v3527_v7, %v3215_v31 }
0x28f5   :  { %v3222_v2 = vmul.f32 %v3527_v7, %v3216_v39  ;;  %v3227_v60 = vadd.f32 %v3528_v46, %v3221_v5 }
0x28f7   :  { %v3228_v15 = vadd.f32 %v3528_v46, %v3222_v2 }
0x28f9   :  { %v3229_v33 = vpack.c.bf16 %v3228_v15, %v3227_v60 }
0x28fb   :  { %4003 = vmatpush3.bf16.msra.mxu1 %v3229_v33 }
0x28fe   :  { %4005 = vmatmul.mubr.msk.bf16.vlgmr.msra.gmra.mrb[56].mxu1 %vm5887_vm0, %v133_v34 }
0x29d1   :  { %v3267_v49 = vpop.f32.mrb[56].mxu1 }
0x29d2   :  { %v3273_v26 = vpack.c.bf16 %v3267_v49, %v3267_v49  ;;  %v4006_v1 = vpop.f32.mrb[57].mxu1 }
0x29d3   :  { %v3270_v57 = vpop.f32.mrb[58].mxu1 }
0x29d4   :  { %v4007_v61 = vpop.f32.mrb[59].mxu1  ;;  %4013 = vmatmul.mubr.msk.bf16.vlgmr.msra.gmra.mrb[60].mxu0 %vm5888_vm3, %v3273_v26 }
0x2aa7   :  { %v3333_v45 = vpop.f32.mrb[60].mxu0 }
0x2aa8   :  { %v3334_v20 = vadd.f32 %v3530_v10, %v3333_v45  ;;  %v4014_v36 = vpop.f32.mrb[61].mxu0 }
0x2aa9   :  { %v3336_v41 = vpop.f32.mrb[62].mxu0 }
0x2aaa   :  { %v4015_v47 = vpop.f32.mrb[63].mxu0  ;;  %3340 = vst.msk [vmem:[#allocation5] sm:$0x3] %vm3339_vm5, %v3334_v20 }
0x2aab   :  { %4204 = shalt.err (!%p4201_p12)
}
0x2aac   :  { %s4205_s3 = scalar_lea.hbm %s5662_s4, 32 }
0x2aad   :  { %p4206_p13 = scmp.ne.s32.totalorder %s5662_s4, %s4205_s3  ;;  %p4209_p0 = scmp.lt.u32.totalorder %s4205_s3, %s5662_s4 }
0x2aaf   :  { %p4211_p1 = pnand %p4209_p0, %p4206_p13 }
0x2ab1   :  { %4214 = shalt.err (!%p4211_p1)
}
0x2ab2   :  { %3350 = dma.vmem_to_hbm [thread:$0]  %s3348_s13, 32, %s5662_s4, [#allocation4]  }
0x2ab3   :  { %4217 = dma.done.wait [#allocation4], 32  }
0x2ab4   :  { %4218 = vsyncadd [#allocation4], 4294967264 }
0x2ab5   :  { %3354 = vsyncpa [#allocation3], 1 }
0x2ab6   :  { %3355 = vsyncpa [#allocation4], 1 }

</bundles_post_ra>
